<compile_context>
chip_gen: v7x
topology: tpu7x:2x2x1
jax: 0.10.0
libtpu: 0.0.40
codegen_flags: <defaults>
</compile_context>

<pallas_src>
import math
import functools

import jax
import jax.numpy as jnp
from jax import lax
from jax.experimental import pallas as pl
from jax.experimental.pallas import tpu as pltpu

# Safe scoped-VMEM request on v5e/v6e (128 MiB) and v7x (64 MiB).
_VMEM_LIMIT = 32 * 1024 * 1024


def _cparams(n_parallel_axes=1):
    return pltpu.CompilerParams(
        dimension_semantics=("parallel",) * n_parallel_axes,
        vmem_limit_bytes=_VMEM_LIMIT,
    )


def _pick_tile_m(m, target=256):
    """Largest row tile <= target that divides M (multiple of 8 when tiling)."""
    if m <= target:
        return m
    for tm in range(target, 7, -8):
        if m % tm == 0:
            return tm
    return m


def _layernorm_f32(x, gamma, beta, eps=1e-5):
    mu = jnp.mean(x, axis=-1, keepdims=True)
    var = jnp.mean((x - mu) ** 2, axis=-1, keepdims=True)
    return (x - mu) * lax.rsqrt(var + eps) * gamma + beta


def _mha_core(q, k, v, num_heads, mask_bias=None):
    """Per-head scaled-dot-product attention on (Sq,D)/(Sk,D) f32 arrays."""
    d = q.shape[-1]
    dh = d // num_heads
    scale = 1.0 / math.sqrt(dh)
    heads = []
    for h in range(num_heads):                        # static unroll (small H)
        sl = slice(h * dh, (h + 1) * dh)
        # Contract last dims directly: no K transpose materialized.
        s = lax.dot_general(q[:, sl], k[:, sl], (((1,), (1,)), ((), ())),
                            preferred_element_type=jnp.float32) * scale
        if mask_bias is not None:
            s = s + mask_bias
        s = s - jnp.max(s, axis=-1, keepdims=True)
        p = jnp.exp(s)
        p = p * pl.reciprocal(jnp.sum(p, axis=-1, keepdims=True), approx=True)
        heads.append(jnp.dot(p, v[:, sl], preferred_element_type=jnp.float32))
    return jnp.concatenate(heads, axis=-1)            # (Sq, D), lane-dense


# ----------------------------------------------------------------------------
# Fused kernels
# ----------------------------------------------------------------------------
def _encoder_block_kernel(x_ref, wqkv_ref, bqkv_ref, wo_ref, bo_ref,
                          g1_ref, bt1_ref, w1_ref, bb1_ref, w2_ref, bb2_ref,
                          g2_ref, bt2_ref, o_ref, *, num_heads):
    x = x_ref[0].astype(jnp.float32)                  # (S, D)
    d = x.shape[-1]

    # Self-attention sub-layer: single stacked q|k|v matmul.
    qkv = jnp.dot(x, wqkv_ref[...],
                  preferred_element_type=jnp.float32) + bqkv_ref[...]
    ctx = _mha_core(qkv[:, :d], qkv[:, d:2 * d], qkv[:, 2 * d:], num_heads)
    attn = jnp.dot(ctx, wo_ref[...],
                   preferred_element_type=jnp.float32) + bo_ref[...]
    y = _layernorm_f32(x + attn, g1_ref[...], bt1_ref[...])

    # Feed-forward sub-layer.
    h = jnp.dot(y, w1_ref[...], preferred_element_type=jnp.float32) + bb1_ref[...]
    h = jnp.maximum(h, 0.0)
    f = jnp.dot(h, w2_ref[...], preferred_element_type=jnp.float32) + bb2_ref[...]
    o_ref[0] = _layernorm_f32(y + f, g2_ref[...], bt2_ref[...]).astype(o_ref.dtype)


def _decoder_block_kernel(x_ref, enc_ref, mask_ref,
                          s_wqkv_ref, s_bqkv_ref, s_wo_ref, s_bo_ref,
                          g1_ref, bt1_ref,
                          c_wq_ref, c_bq_ref, c_wkv_ref, c_bkv_ref,
                          c_wo_ref, c_bo_ref, g2_ref, bt2_ref,
                          w1_ref, bb1_ref, w2_ref, bb2_ref, g3_ref, bt3_ref,
                          o_ref, *, num_heads):
    x = x_ref[0].astype(jnp.float32)                  # (St, D)
    enc = enc_ref[0].astype(jnp.float32)              # (Ss, D)
    d = x.shape[-1]

    # Additive mask bias computed once (shared by all heads).
    mask_bias = jnp.where(mask_ref[...] != 0, jnp.float32(0.0), jnp.float32(-1e9))

    # Masked self-attention sub-layer (stacked q|k|v projection).
    qkv = jnp.dot(x, s_wqkv_ref[...],
                  preferred_element_type=jnp.float32) + s_bqkv_ref[...]
    ctx = _mha_core(qkv[:, :d], qkv[:, d:2 * d], qkv[:, 2 * d:],
                    num_heads, mask_bias=mask_bias)
    attn = jnp.dot(ctx, s_wo_ref[...],
                   preferred_element_type=jnp.float32) + s_bo_ref[...]
    y = _layernorm_f32(x + attn, g1_ref[...], bt1_ref[...])

    # Cross-attention sub-layer: q from decoder stream, stacked k|v from enc.
    q = jnp.dot(y, c_wq_ref[...], preferred_element_type=jnp.float32) + c_bq_ref[...]
    kv = jnp.dot(enc, c_wkv_ref[...],
                 preferred_element_type=jnp.float32) + c_bkv_ref[...]
    ctx = _mha_core(q, kv[:, :d], kv[:, d:], num_heads)
    attn = jnp.dot(ctx, c_wo_ref[...],
                   preferred_element_type=jnp.float32) + c_bo_ref[...]
    y = _layernorm_f32(y + attn, g2_ref[...], bt2_ref[...])

    # Feed-forward sub-layer.
    h = jnp.dot(y, w1_ref[...], preferred_element_type=jnp.float32) + bb1_ref[...]
    h = jnp.maximum(h, 0.0)
    f = jnp.dot(h, w2_ref[...], preferred_element_type=jnp.float32) + bb2_ref[...]
    o_ref[0] = _layernorm_f32(y + f, g3_ref[...], bt3_ref[...]).astype(o_ref.dtype)


def _linear_softmax_kernel(x_ref, w_ref, b_ref, o_ref):
    y = jnp.dot(x_ref[...].astype(jnp.float32), w_ref[...],
                preferred_element_type=jnp.float32) + b_ref[...]
    y = y - jnp.max(y, axis=-1, keepdims=True)
    p = jnp.exp(y)
    # Exact divide at the model output so probabilities sum to 1 tightly.
    o_ref[...] = (p / jnp.sum(p, axis=-1, keepdims=True)).astype(o_ref.dtype)


# ----------------------------------------------------------------------------
# Pallas wrappers (one pallas_call per block)
# ----------------------------------------------------------------------------
def _const2(shape):
    return pl.BlockSpec(shape, lambda i: (0, 0))


def encoder_block(x, p, num_heads):
    B, S, D = x.shape
    a, f = p["attn"], p["ffn"]
    F = f["w1"].shape[1]
    return pl.pallas_call(
        functools.partial(_encoder_block_kernel, num_heads=num_heads),
        out_shape=jax.ShapeDtypeStruct((B, S, D), x.dtype),
        grid=(B,),
        in_specs=[
            pl.BlockSpec((1, S, D), lambda i: (i, 0, 0)),   # x
            _const2((D, 3 * D)), _const2((1, 3 * D)),       # wqkv, bqkv
            _const2((D, D)), _const2((1, D)),               # wo, bo
            _const2((1, D)), _const2((1, D)),               # ln1 gamma/beta
            _const2((D, F)), _const2((1, F)),               # ffn w1, b1
            _const2((F, D)), _const2((1, D)),               # ffn w2, b2
            _const2((1, D)), _const2((1, D)),               # ln2 gamma/beta
        ],
        out_specs=pl.BlockSpec((1, S, D), lambda i: (i, 0, 0)),
        compiler_params=_cparams(1),
    )(x, a["wqkv"], a["bqkv"], a["wo"], a["bo"],
      p["ln1_g"], p["ln1_b"],
      f["w1"], f["b1"], f["w2"], f["b2"],
      p["ln2_g"], p["ln2_b"])


def decoder_block(x, enc, mask, p, num_heads):
    B, St, D = x.shape
    Ss = enc.shape[1]
    sa, ca, f = p["self_attn"], p["cross_attn"], p["ffn"]
    F = f["w1"].shape[1]
    return pl.pallas_call(
        functools.partial(_decoder_block_kernel, num_heads=num_heads),
        out_shape=jax.ShapeDtypeStruct((B, St, D), x.dtype),
        grid=(B,),
        in_specs=[
            pl.BlockSpec((1, St, D), lambda i: (i, 0, 0)),  # x
            pl.BlockSpec((1, Ss, D), lambda i: (i, 0, 0)),  # enc
            _const2((St, St)),                              # mask
            _const2((D, 3 * D)), _const2((1, 3 * D)),       # self wqkv, bqkv
            _const2((D, D)), _const2((1, D)),               # self wo, bo
            _const2((1, D)), _const2((1, D)),               # ln1
            _const2((D, D)), _const2((1, D)),               # cross wq, bq
            _const2((D, 2 * D)), _const2((1, 2 * D)),       # cross wkv, bkv
            _const2((D, D)), _const2((1, D)),               # cross wo, bo
            _const2((1, D)), _const2((1, D)),               # ln2
            _const2((D, F)), _const2((1, F)),               # ffn w1, b1
            _const2((F, D)), _const2((1, D)),               # ffn w2, b2
            _const2((1, D)), _const2((1, D)),               # ln3
        ],
        out_specs=pl.BlockSpec((1, St, D), lambda i: (i, 0, 0)),
        compiler_params=_cparams(1),
    )(x, enc, mask,
      sa["wqkv"], sa["bqkv"], sa["wo"], sa["bo"], p["ln1_g"], p["ln1_b"],
      ca["wq"], ca["bq"], ca["wkv"], ca["bkv"], ca["wo"], ca["bo"],
      p["ln2_g"], p["ln2_b"],
      f["w1"], f["b1"], f["w2"], f["b2"], p["ln3_g"], p["ln3_b"])


def linear_softmax(x, w, b, block_m=256):
    """softmax(x @ w + b, axis=-1), tiled over M only (full N per block)."""
    M, K = x.shape
    N = w.shape[1]
    tm = _pick_tile_m(M, block_m)
    return pl.pallas_call(
        _linear_softmax_kernel,
        out_shape=jax.ShapeDtypeStruct((M, N), x.dtype),
        grid=(M // tm,),
        in_specs=[
            pl.BlockSpec((tm, K), lambda i: (i, 0)),
            pl.BlockSpec((K, N), lambda i: (0, 0)),
            pl.BlockSpec((1, N), lambda i: (0, 0)),
        ],
        out_specs=pl.BlockSpec((tm, N), lambda i: (i, 0)),
        compiler_params=_cparams(1),
    )(x, w, b)


# ----------------------------------------------------------------------------
# Model (plain-JAX glue around the fused Pallas block kernels)
# ----------------------------------------------------------------------------
def transformer_forward(params, source, target, target_mask, num_heads, lay_nums):
    x = source
    for i in range(lay_nums):
        x = encoder_block(x, params["encoder"][i], num_heads)
    enc_out = x

    x = target
    for i in range(lay_nums):
        x = decoder_block(x, enc_out, target_mask, params["decoder"][i], num_heads)

    B, S, D = x.shape
    out = linear_softmax(x.reshape(B * S, D), params["w_out"], params["b_out"])
    return out.reshape(B, S, D)


# ----------------------------------------------------------------------------
# Deterministic parameter init (PyTorch nn.Linear-style uniform bounds)
# ----------------------------------------------------------------------------
def _init_linear(key, fan_in, fan_out):
    k1, k2 = jax.random.split(key)
    bound = 1.0 / math.sqrt(fan_in)
    w = jax.random.uniform(k1, (fan_in, fan_out), jnp.float32, -bound, bound)
    b = jax.random.uniform(k2, (fan_out,), jnp.float32, -bound, bound)
    return w, b


def _init_mha_self(key, d):
    ks = jax.random.split(key, 4)
    wq, bq = _init_linear(ks[0], d, d)
    wk, bk = _init_linear(ks[1], d, d)
    wv, bv = _init_linear(ks[2], d, d)
    wo, bo = _init_linear(ks[3], d, d)
    return {
        "wqkv": jnp.concatenate([wq, wk, wv], axis=1),             # (D, 3D)
        "bqkv": jnp.concatenate([bq, bk, bv], axis=0).reshape(1, 3 * d),
        "wo": wo, "bo": bo.reshape(1, d),
    }


def _init_mha_cross(key, d):
    ks = jax.random.split(key, 4)
    wq, bq = _init_linear(ks[0], d, d)
    wk, bk = _init_linear(ks[1], d, d)
    wv, bv = _init_linear(ks[2], d, d)
    wo, bo = _init_linear(ks[3], d, d)
    return {
        "wq": wq, "bq": bq.reshape(1, d),
        "wkv": jnp.concatenate([wk, wv], axis=1),                  # (D, 2D)
        "bkv": jnp.concatenate([bk, bv], axis=0).reshape(1, 2 * d),
        "wo": wo, "bo": bo.reshape(1, d),
    }


def _init_ffn(key, d, ff):
    k1, k2 = jax.random.split(key)
    w1, b1 = _init_linear(k1, d, ff)
    w2, b2 = _init_linear(k2, ff, d)
    return {"w1": w1, "b1": b1.reshape(1, ff), "w2": w2, "b2": b2.reshape(1, d)}


def init_params(key, embed_dim, feedforward_dim, lay_nums):
    ones = jnp.ones((1, embed_dim), jnp.float32)
    zeros = jnp.zeros((1, embed_dim), jnp.float32)
    params = {"encoder": [], "decoder": []}
    for _ in range(lay_nums):
        key, k1, k2 = jax.random.split(key, 3)
        params["encoder"].append({
            "attn": _init_mha_self(k1, embed_dim),
            "ffn": _init_ffn(k2, embed_dim, feedforward_dim),
            "ln1_g": ones, "ln1_b": zeros,
            "ln2_g": ones, "ln2_b": zeros,
        })
    for _ in range(lay_nums):
        key, k1, k2, k3 = jax.random.split(key, 4)
        params["decoder"].append({
            "self_attn": _init_mha_self(k1, embed_dim),
            "cross_attn": _init_mha_cross(k2, embed_dim),
            "ffn": _init_ffn(k3, embed_dim, feedforward_dim),
            "ln1_g": ones, "ln1_b": zeros,
            "ln2_g": ones, "ln2_b": zeros,
            "ln3_g": ones, "ln3_b": zeros,
        })
    key, ko = jax.random.split(key)
    w_out, b_out = _init_linear(ko, embed_dim, embed_dim)
    params["w_out"] = w_out
    params["b_out"] = b_out.reshape(1, embed_dim)
    return params


# ----------------------------------------------------------------------------
if __name__ == "__main__":
    EMBED_DIM = 32
    NUM_HEADS = 4
    FF_DIM = 64
    LAY_NUMS = 2
    B, S_SRC, S_TGT = 2, 8, 8

    root = jax.random.PRNGKey(0)
    k_param, k_src, k_tgt = jax.random.split(root, 3)

    params = init_params(k_param, EMBED_DIM, FF_DIM, LAY_NUMS)
    source = jax.random.normal(k_src, (B, S_SRC, EMBED_DIM), jnp.float32)
    target = jax.random.normal(k_tgt, (B, S_TGT, EMBED_DIM), jnp.float32)
    # causal target mask: 1 = attend, 0 = blocked
    target_mask = jnp.tril(jnp.ones((S_TGT, S_TGT), jnp.float32))

    fwd = jax.jit(functools.partial(transformer_forward,
                                    num_heads=NUM_HEADS, lay_nums=LAY_NUMS))
    out = fwd(params, source, target, target_mask)
    out = jax.block_until_ready(out)

    assert out.shape == (B, S_TGT, EMBED_DIM)
    # rows of the final softmax must sum to 1
    assert bool(jnp.allclose(jnp.sum(out, axis=-1), 1.0, atol=1e-4))
    assert bool(jnp.all(jnp.isfinite(out)))
    print("KERNEL_OK")
</pallas_src>

<mosaic_0001>
module attributes {stable_mosaic.version = 11 : i64} {
  func.func @_encoder_block_kernel(%arg0: i32, %arg1: memref<1x8x32xf32, #tpu.memory_space<vmem>>, %arg2: memref<32x96xf32, #tpu.memory_space<vmem>>, %arg3: memref<1x96xf32, #tpu.memory_space<vmem>>, %arg4: memref<32x32xf32, #tpu.memory_space<vmem>>, %arg5: memref<1x32xf32, #tpu.memory_space<vmem>>, %arg6: memref<1x32xf32, #tpu.memory_space<vmem>>, %arg7: memref<1x32xf32, #tpu.memory_space<vmem>>, %arg8: memref<32x64xf32, #tpu.memory_space<vmem>>, %arg9: memref<1x64xf32, #tpu.memory_space<vmem>>, %arg10: memref<64x32xf32, #tpu.memory_space<vmem>>, %arg11: memref<1x32xf32, #tpu.memory_space<vmem>>, %arg12: memref<1x32xf32, #tpu.memory_space<vmem>>, %arg13: memref<1x32xf32, #tpu.memory_space<vmem>>, %arg14: memref<1x8x32xf32, #tpu.memory_space<vmem>>) attributes {dimension_semantics = [#tpu.dimension_semantics<parallel>], iteration_bounds = array<i64: 2>, scalar_prefetch = 0 : i64, scratch_operands = 0 : i64, tpu.core_type = #tpu.core_type<tc>, window_params = [{transform_indices = @transform_0, window_bounds = array<i64: 1, 8, 32>}, {pipeline_mode = #tpu.pipeline_mode<synchronous>, transform_indices = @transform_1, window_bounds = array<i64: 32, 96>}, {pipeline_mode = #tpu.pipeline_mode<synchronous>, transform_indices = @transform_2, window_bounds = array<i64: 1, 96>}, {pipeline_mode = #tpu.pipeline_mode<synchronous>, transform_indices = @transform_3, window_bounds = array<i64: 32, 32>}, {pipeline_mode = #tpu.pipeline_mode<synchronous>, transform_indices = @transform_4, window_bounds = array<i64: 1, 32>}, {pipeline_mode = #tpu.pipeline_mode<synchronous>, transform_indices = @transform_5, window_bounds = array<i64: 1, 32>}, {pipeline_mode = #tpu.pipeline_mode<synchronous>, transform_indices = @transform_6, window_bounds = array<i64: 1, 32>}, {pipeline_mode = #tpu.pipeline_mode<synchronous>, transform_indices = @transform_7, window_bounds = array<i64: 32, 64>}, {pipeline_mode = #tpu.pipeline_mode<synchronous>, transform_indices = @transform_8, window_bounds = array<i64: 1, 64>}, {pipeline_mode = #tpu.pipeline_mode<synchronous>, transform_indices = @transform_9, window_bounds = array<i64: 64, 32>}, {pipeline_mode = #tpu.pipeline_mode<synchronous>, transform_indices = @transform_10, window_bounds = array<i64: 1, 32>}, {pipeline_mode = #tpu.pipeline_mode<synchronous>, transform_indices = @transform_11, window_bounds = array<i64: 1, 32>}, {pipeline_mode = #tpu.pipeline_mode<synchronous>, transform_indices = @transform_12, window_bounds = array<i64: 1, 32>}, {transform_indices = @transform_13, window_bounds = array<i64: 1, 8, 32>}]} {
    %c0 = arith.constant 0 : index
    %c0_0 = arith.constant 0 : index
    %c0_1 = arith.constant 0 : index
    %0 = vector.load %arg1[%c0, %c0_0, %c0_1] : memref<1x8x32xf32, #tpu.memory_space<vmem>>, vector<1x8x32xf32>
    %1 = vector.shape_cast %0 : vector<1x8x32xf32> to vector<8x32xf32>
    %c0_2 = arith.constant 0 : index
    %c0_3 = arith.constant 0 : index
    %2 = vector.load %arg2[%c0_2, %c0_3] : memref<32x96xf32, #tpu.memory_space<vmem>>, vector<32x96xf32>
    %cst = arith.constant dense<0.000000e+00> : vector<8x96xf32>
    %3 = tpu.matmul %1, %2, %cst {dimension_numbers = #tpu.dot_dimension_numbers<[1], [0], [0], [1], [0, 0, 1, 1], [], []>} : vector<8x32xf32>, vector<32x96xf32>, vector<8x96xf32> -> vector<8x96xf32>
    %c0_4 = arith.constant 0 : index
    %c0_5 = arith.constant 0 : index
    %4 = vector.load %arg3[%c0_4, %c0_5] : memref<1x96xf32, #tpu.memory_space<vmem>>, vector<1x96xf32>
    %5 = vector.broadcast %4 : vector<1x96xf32> to vector<8x96xf32>
    %6 = arith.addf %3, %5 : vector<8x96xf32>
    %7 = vector.extract_strided_slice %6 {offsets = [0, 0], sizes = [8, 32], strides = [1, 1]} : vector<8x96xf32> to vector<8x32xf32>
    %8 = vector.extract_strided_slice %6 {offsets = [0, 32], sizes = [8, 32], strides = [1, 1]} : vector<8x96xf32> to vector<8x32xf32>
    %9 = vector.extract_strided_slice %6 {offsets = [0, 64], sizes = [8, 32], strides = [1, 1]} : vector<8x96xf32> to vector<8x32xf32>
    %10 = vector.extract_strided_slice %7 {offsets = [0, 0], sizes = [8, 8], strides = [1, 1]} : vector<8x32xf32> to vector<8x8xf32>
    %11 = vector.extract_strided_slice %8 {offsets = [0, 0], sizes = [8, 8], strides = [1, 1]} : vector<8x32xf32> to vector<8x8xf32>
    %cst_6 = arith.constant dense<0.000000e+00> : vector<8x8xf32>
    %12 = tpu.matmul %10, %11, %cst_6 {dimension_numbers = #tpu.dot_dimension_numbers<[1], [1], [0], [0], [0, 0, 1, 0], [], []>} : vector<8x8xf32>, vector<8x8xf32>, vector<8x8xf32> -> vector<8x8xf32>
    %cst_7 = arith.constant 0.353553385 : f32
    %13 = vector.broadcast %cst_7 : f32 to vector<8x8xf32>
    %14 = arith.mulf %12, %13 : vector<8x8xf32>
    %cst_8 = arith.constant dense<0xFF800000> : vector<8xf32>
    %15 = vector.multi_reduction <maximumf>, %14, %cst_8 [1] : vector<8x8xf32> to vector<8xf32>
    %16 = vector.shape_cast %15 : vector<8xf32> to vector<8x1xf32>
    %17 = vector.broadcast %16 : vector<8x1xf32> to vector<8x8xf32>
    %18 = arith.subf %14, %17 : vector<8x8xf32>
    %19 = math.exp %18 : vector<8x8xf32>
    %cst_9 = arith.constant dense<0.000000e+00> : vector<8xf32>
    %20 = vector.multi_reduction <add>, %19, %cst_9 [1] : vector<8x8xf32> to vector<8xf32>
    %21 = vector.shape_cast %20 : vector<8xf32> to vector<8x1xf32>
    %22 = tpu.reciprocal %21 {approx = true} : vector<8x1xf32> -> vector<8x1xf32>
    %23 = vector.broadcast %22 : vector<8x1xf32> to vector<8x8xf32>
    %24 = arith.mulf %19, %23 : vector<8x8xf32>
    %25 = vector.extract_strided_slice %9 {offsets = [0, 0], sizes = [8, 8], strides = [1, 1]} : vector<8x32xf32> to vector<8x8xf32>
    %cst_10 = arith.constant dense<0.000000e+00> : vector<8x8xf32>
    %26 = tpu.matmul %24, %25, %cst_10 {dimension_numbers = #tpu.dot_dimension_numbers<[1], [0], [0], [1], [0, 0, 1, 1], [], []>} : vector<8x8xf32>, vector<8x8xf32>, vector<8x8xf32> -> vector<8x8xf32>
    %27 = vector.extract_strided_slice %7 {offsets = [0, 8], sizes = [8, 8], strides = [1, 1]} : vector<8x32xf32> to vector<8x8xf32>
    %28 = vector.extract_strided_slice %8 {offsets = [0, 8], sizes = [8, 8], strides = [1, 1]} : vector<8x32xf32> to vector<8x8xf32>
    %cst_11 = arith.constant dense<0.000000e+00> : vector<8x8xf32>
    %29 = tpu.matmul %27, %28, %cst_11 {dimension_numbers = #tpu.dot_dimension_numbers<[1], [1], [0], [0], [0, 0, 1, 0], [], []>} : vector<8x8xf32>, vector<8x8xf32>, vector<8x8xf32> -> vector<8x8xf32>
    %cst_12 = arith.constant 0.353553385 : f32
    %30 = vector.broadcast %cst_12 : f32 to vector<8x8xf32>
    %31 = arith.mulf %29, %30 : vector<8x8xf32>
    %cst_13 = arith.constant dense<0xFF800000> : vector<8xf32>
    %32 = vector.multi_reduction <maximumf>, %31, %cst_13 [1] : vector<8x8xf32> to vector<8xf32>
    %33 = vector.shape_cast %32 : vector<8xf32> to vector<8x1xf32>
    %34 = vector.broadcast %33 : vector<8x1xf32> to vector<8x8xf32>
    %35 = arith.subf %31, %34 : vector<8x8xf32>
    %36 = math.exp %35 : vector<8x8xf32>
    %cst_14 = arith.constant dense<0.000000e+00> : vector<8xf32>
    %37 = vector.multi_reduction <add>, %36, %cst_14 [1] : vector<8x8xf32> to vector<8xf32>
    %38 = vector.shape_cast %37 : vector<8xf32> to vector<8x1xf32>
    %39 = tpu.reciprocal %38 {approx = true} : vector<8x1xf32> -> vector<8x1xf32>
    %40 = vector.broadcast %39 : vector<8x1xf32> to vector<8x8xf32>
    %41 = arith.mulf %36, %40 : vector<8x8xf32>
    %42 = vector.extract_strided_slice %9 {offsets = [0, 8], sizes = [8, 8], strides = [1, 1]} : vector<8x32xf32> to vector<8x8xf32>
    %cst_15 = arith.constant dense<0.000000e+00> : vector<8x8xf32>
    %43 = tpu.matmul %41, %42, %cst_15 {dimension_numbers = #tpu.dot_dimension_numbers<[1], [0], [0], [1], [0, 0, 1, 1], [], []>} : vector<8x8xf32>, vector<8x8xf32>, vector<8x8xf32> -> vector<8x8xf32>
    %44 = vector.extract_strided_slice %7 {offsets = [0, 16], sizes = [8, 8], strides = [1, 1]} : vector<8x32xf32> to vector<8x8xf32>
    %45 = vector.extract_strided_slice %8 {offsets = [0, 16], sizes = [8, 8], strides = [1, 1]} : vector<8x32xf32> to vector<8x8xf32>
    %cst_16 = arith.constant dense<0.000000e+00> : vector<8x8xf32>
    %46 = tpu.matmul %44, %45, %cst_16 {dimension_numbers = #tpu.dot_dimension_numbers<[1], [1], [0], [0], [0, 0, 1, 0], [], []>} : vector<8x8xf32>, vector<8x8xf32>, vector<8x8xf32> -> vector<8x8xf32>
    %cst_17 = arith.constant 0.353553385 : f32
    %47 = vector.broadcast %cst_17 : f32 to vector<8x8xf32>
    %48 = arith.mulf %46, %47 : vector<8x8xf32>
    %cst_18 = arith.constant dense<0xFF800000> : vector<8xf32>
    %49 = vector.multi_reduction <maximumf>, %48, %cst_18 [1] : vector<8x8xf32> to vector<8xf32>
    %50 = vector.shape_cast %49 : vector<8xf32> to vector<8x1xf32>
    %51 = vector.broadcast %50 : vector<8x1xf32> to vector<8x8xf32>
    %52 = arith.subf %48, %51 : vector<8x8xf32>
    %53 = math.exp %52 : vector<8x8xf32>
    %cst_19 = arith.constant dense<0.000000e+00> : vector<8xf32>
    %54 = vector.multi_reduction <add>, %53, %cst_19 [1] : vector<8x8xf32> to vector<8xf32>
    %55 = vector.shape_cast %54 : vector<8xf32> to vector<8x1xf32>
    %56 = tpu.reciprocal %55 {approx = true} : vector<8x1xf32> -> vector<8x1xf32>
    %57 = vector.broadcast %56 : vector<8x1xf32> to vector<8x8xf32>
    %58 = arith.mulf %53, %57 : vector<8x8xf32>
    %59 = vector.extract_strided_slice %9 {offsets = [0, 16], sizes = [8, 8], strides = [1, 1]} : vector<8x32xf32> to vector<8x8xf32>
    %cst_20 = arith.constant dense<0.000000e+00> : vector<8x8xf32>
    %60 = tpu.matmul %58, %59, %cst_20 {dimension_numbers = #tpu.dot_dimension_numbers<[1], [0], [0], [1], [0, 0, 1, 1], [], []>} : vector<8x8xf32>, vector<8x8xf32>, vector<8x8xf32> -> vector<8x8xf32>
    %61 = vector.extract_strided_slice %7 {offsets = [0, 24], sizes = [8, 8], strides = [1, 1]} : vector<8x32xf32> to vector<8x8xf32>
    %62 = vector.extract_strided_slice %8 {offsets = [0, 24], sizes = [8, 8], strides = [1, 1]} : vector<8x32xf32> to vector<8x8xf32>
    %cst_21 = arith.constant dense<0.000000e+00> : vector<8x8xf32>
    %63 = tpu.matmul %61, %62, %cst_21 {dimension_numbers = #tpu.dot_dimension_numbers<[1], [1], [0], [0], [0, 0, 1, 0], [], []>} : vector<8x8xf32>, vector<8x8xf32>, vector<8x8xf32> -> vector<8x8xf32>
    %cst_22 = arith.constant 0.353553385 : f32
    %64 = vector.broadcast %cst_22 : f32 to vector<8x8xf32>
    %65 = arith.mulf %63, %64 : vector<8x8xf32>
    %cst_23 = arith.constant dense<0xFF800000> : vector<8xf32>
    %66 = vector.multi_reduction <maximumf>, %65, %cst_23 [1] : vector<8x8xf32> to vector<8xf32>
    %67 = vector.shape_cast %66 : vector<8xf32> to vector<8x1xf32>
    %68 = vector.broadcast %67 : vector<8x1xf32> to vector<8x8xf32>
    %69 = arith.subf %65, %68 : vector<8x8xf32>
    %70 = math.exp %69 : vector<8x8xf32>
    %cst_24 = arith.constant dense<0.000000e+00> : vector<8xf32>
    %71 = vector.multi_reduction <add>, %70, %cst_24 [1] : vector<8x8xf32> to vector<8xf32>
    %72 = vector.shape_cast %71 : vector<8xf32> to vector<8x1xf32>
    %73 = tpu.reciprocal %72 {approx = true} : vector<8x1xf32> -> vector<8x1xf32>
    %74 = vector.broadcast %73 : vector<8x1xf32> to vector<8x8xf32>
    %75 = arith.mulf %70, %74 : vector<8x8xf32>
    %76 = vector.extract_strided_slice %9 {offsets = [0, 24], sizes = [8, 8], strides = [1, 1]} : vector<8x32xf32> to vector<8x8xf32>
    %cst_25 = arith.constant dense<0.000000e+00> : vector<8x8xf32>
    %77 = tpu.matmul %75, %76, %cst_25 {dimension_numbers = #tpu.dot_dimension_numbers<[1], [0], [0], [1], [0, 0, 1, 1], [], []>} : vector<8x8xf32>, vector<8x8xf32>, vector<8x8xf32> -> vector<8x8xf32>
    %78 = tpu.concatenate %26, %43, %60, %77 in 1 : vector<8x8xf32>, vector<8x8xf32>, vector<8x8xf32>, vector<8x8xf32> -> vector<8x32xf32>
    %c0_26 = arith.constant 0 : index
    %c0_27 = arith.constant 0 : index
    %79 = vector.load %arg4[%c0_26, %c0_27] : memref<32x32xf32, #tpu.memory_space<vmem>>, vector<32x32xf32>
    %cst_28 = arith.constant dense<0.000000e+00> : vector<8x32xf32>
    %80 = tpu.matmul %78, %79, %cst_28 {dimension_numbers = #tpu.dot_dimension_numbers<[1], [0], [0], [1], [0, 0, 1, 1], [], []>} : vector<8x32xf32>, vector<32x32xf32>, vector<8x32xf32> -> vector<8x32xf32>
    %c0_29 = arith.constant 0 : index
    %c0_30 = arith.constant 0 : index
    %81 = vector.load %arg5[%c0_29, %c0_30] : memref<1x32xf32, #tpu.memory_space<vmem>>, vector<1x32xf32>
    %82 = vector.broadcast %81 : vector<1x32xf32> to vector<8x32xf32>
    %83 = arith.addf %80, %82 : vector<8x32xf32>
    %84 = arith.addf %1, %83 : vector<8x32xf32>
    %c0_31 = arith.constant 0 : index
    %c0_32 = arith.constant 0 : index
    %85 = vector.load %arg6[%c0_31, %c0_32] : memref<1x32xf32, #tpu.memory_space<vmem>>, vector<1x32xf32>
    %c0_33 = arith.constant 0 : index
    %c0_34 = arith.constant 0 : index
    %86 = vector.load %arg7[%c0_33, %c0_34] : memref<1x32xf32, #tpu.memory_space<vmem>>, vector<1x32xf32>
    %cst_35 = arith.constant dense<0.000000e+00> : vector<8xf32>
    %87 = vector.multi_reduction <add>, %84, %cst_35 [1] : vector<8x32xf32> to vector<8xf32>
    %88 = vector.shape_cast %87 : vector<8xf32> to vector<8x1xf32>
    %cst_36 = arith.constant 3.200000e+01 : f32
    %89 = vector.broadcast %cst_36 : f32 to vector<8x1xf32>
    %90 = arith.divf %88, %89 : vector<8x1xf32>
    %91 = vector.broadcast %90 : vector<8x1xf32> to vector<8x32xf32>
    %92 = arith.subf %84, %91 : vector<8x32xf32>
    %93 = arith.mulf %92, %92 : vector<8x32xf32>
    %cst_37 = arith.constant dense<0.000000e+00> : vector<8xf32>
    %94 = vector.multi_reduction <add>, %93, %cst_37 [1] : vector<8x32xf32> to vector<8xf32>
    %95 = vector.shape_cast %94 : vector<8xf32> to vector<8x1xf32>
    %cst_38 = arith.constant 3.200000e+01 : f32
    %96 = vector.broadcast %cst_38 : f32 to vector<8x1xf32>
    %97 = arith.divf %95, %96 : vector<8x1xf32>
    %98 = vector.broadcast %90 : vector<8x1xf32> to vector<8x32xf32>
    %99 = arith.subf %84, %98 : vector<8x32xf32>
    %cst_39 = arith.constant 9.99999974E-6 : f32
    %100 = vector.broadcast %cst_39 : f32 to vector<8x1xf32>
    %101 = arith.addf %97, %100 : vector<8x1xf32>
    %102 = math.rsqrt %101 : vector<8x1xf32>
    %103 = vector.broadcast %102 : vector<8x1xf32> to vector<8x32xf32>
    %104 = arith.mulf %99, %103 : vector<8x32xf32>
    %105 = vector.broadcast %85 : vector<1x32xf32> to vector<8x32xf32>
    %106 = arith.mulf %104, %105 : vector<8x32xf32>
    %107 = vector.broadcast %86 : vector<1x32xf32> to vector<8x32xf32>
    %108 = arith.addf %106, %107 : vector<8x32xf32>
    %c0_40 = arith.constant 0 : index
    %c0_41 = arith.constant 0 : index
    %109 = vector.load %arg8[%c0_40, %c0_41] : memref<32x64xf32, #tpu.memory_space<vmem>>, vector<32x64xf32>
    %cst_42 = arith.constant dense<0.000000e+00> : vector<8x64xf32>
    %110 = tpu.matmul %108, %109, %cst_42 {dimension_numbers = #tpu.dot_dimension_numbers<[1], [0], [0], [1], [0, 0, 1, 1], [], []>} : vector<8x32xf32>, vector<32x64xf32>, vector<8x64xf32> -> vector<8x64xf32>
    %c0_43 = arith.constant 0 : index
    %c0_44 = arith.constant 0 : index
    %111 = vector.load %arg9[%c0_43, %c0_44] : memref<1x64xf32, #tpu.memory_space<vmem>>, vector<1x64xf32>
    %112 = vector.broadcast %111 : vector<1x64xf32> to vector<8x64xf32>
    %113 = arith.addf %110, %112 : vector<8x64xf32>
    %cst_45 = arith.constant 0.000000e+00 : f32
    %114 = vector.broadcast %cst_45 : f32 to vector<8x64xf32>
    %115 = arith.maximumf %113, %114 : vector<8x64xf32>
    %c0_46 = arith.constant 0 : index
    %c0_47 = arith.constant 0 : index
    %116 = vector.load %arg10[%c0_46, %c0_47] : memref<64x32xf32, #tpu.memory_space<vmem>>, vector<64x32xf32>
    %cst_48 = arith.constant dense<0.000000e+00> : vector<8x32xf32>
    %117 = tpu.matmul %115, %116, %cst_48 {dimension_numbers = #tpu.dot_dimension_numbers<[1], [0], [0], [1], [0, 0, 1, 1], [], []>} : vector<8x64xf32>, vector<64x32xf32>, vector<8x32xf32> -> vector<8x32xf32>
    %c0_49 = arith.constant 0 : index
    %c0_50 = arith.constant 0 : index
    %118 = vector.load %arg11[%c0_49, %c0_50] : memref<1x32xf32, #tpu.memory_space<vmem>>, vector<1x32xf32>
    %119 = vector.broadcast %118 : vector<1x32xf32> to vector<8x32xf32>
    %120 = arith.addf %117, %119 : vector<8x32xf32>
    %121 = arith.addf %108, %120 : vector<8x32xf32>
    %c0_51 = arith.constant 0 : index
    %c0_52 = arith.constant 0 : index
    %122 = vector.load %arg12[%c0_51, %c0_52] : memref<1x32xf32, #tpu.memory_space<vmem>>, vector<1x32xf32>
    %c0_53 = arith.constant 0 : index
    %c0_54 = arith.constant 0 : index
    %123 = vector.load %arg13[%c0_53, %c0_54] : memref<1x32xf32, #tpu.memory_space<vmem>>, vector<1x32xf32>
    %cst_55 = arith.constant dense<0.000000e+00> : vector<8xf32>
    %124 = vector.multi_reduction <add>, %121, %cst_55 [1] : vector<8x32xf32> to vector<8xf32>
    %125 = vector.shape_cast %124 : vector<8xf32> to vector<8x1xf32>
    %cst_56 = arith.constant 3.200000e+01 : f32
    %126 = vector.broadcast %cst_56 : f32 to vector<8x1xf32>
    %127 = arith.divf %125, %126 : vector<8x1xf32>
    %128 = vector.broadcast %127 : vector<8x1xf32> to vector<8x32xf32>
    %129 = arith.subf %121, %128 : vector<8x32xf32>
    %130 = arith.mulf %129, %129 : vector<8x32xf32>
    %cst_57 = arith.constant dense<0.000000e+00> : vector<8xf32>
    %131 = vector.multi_reduction <add>, %130, %cst_57 [1] : vector<8x32xf32> to vector<8xf32>
    %132 = vector.shape_cast %131 : vector<8xf32> to vector<8x1xf32>
    %cst_58 = arith.constant 3.200000e+01 : f32
    %133 = vector.broadcast %cst_58 : f32 to vector<8x1xf32>
    %134 = arith.divf %132, %133 : vector<8x1xf32>
    %135 = vector.broadcast %127 : vector<8x1xf32> to vector<8x32xf32>
    %136 = arith.subf %121, %135 : vector<8x32xf32>
    %cst_59 = arith.constant 9.99999974E-6 : f32
    %137 = vector.broadcast %cst_59 : f32 to vector<8x1xf32>
    %138 = arith.addf %134, %137 : vector<8x1xf32>
    %139 = math.rsqrt %138 : vector<8x1xf32>
    %140 = vector.broadcast %139 : vector<8x1xf32> to vector<8x32xf32>
    %141 = arith.mulf %136, %140 : vector<8x32xf32>
    %142 = vector.broadcast %122 : vector<1x32xf32> to vector<8x32xf32>
    %143 = arith.mulf %141, %142 : vector<8x32xf32>
    %144 = vector.broadcast %123 : vector<1x32xf32> to vector<8x32xf32>
    %145 = arith.addf %143, %144 : vector<8x32xf32>
    %c0_60 = arith.constant 0 : index
    %c0_61 = arith.constant 0 : index
    %c0_62 = arith.constant 0 : index
    %146 = vector.load %arg14[%c0_60, %c0_61, %c0_62] : memref<1x8x32xf32, #tpu.memory_space<vmem>>, vector<1x8x32xf32>
    %147 = vector.shape_cast %146 : vector<1x8x32xf32> to vector<8x32xf32>
    %148 = vector.shape_cast %145 : vector<8x32xf32> to vector<1x8x32xf32>
    tpu.vector_store %arg14[%c0_60, %c0_61, %c0_62], %148 {strides = array<i32>} : memref<1x8x32xf32, #tpu.memory_space<vmem>>, vector<1x8x32xf32>,
    return
  }
  func.func @transform_0(%arg0: i32) -> (i32, i32, i32) {
    %c0_i32 = arith.constant 0 : i32
    %c0_i32_0 = arith.constant 0 : i32
    %c0_i32_1 = arith.constant 0 : i32
    return %arg0, %c0_i32, %c0_i32_0 : i32, i32, i32
  }
  func.func @transform_1(%arg0: i32) -> (i32, i32) {
    %c0_i32 = arith.constant 0 : i32
    %c0_i32_0 = arith.constant 0 : i32
    %c0_i32_1 = arith.constant 0 : i32
    return %c0_i32, %c0_i32_0 : i32, i32
  }
  func.func @transform_2(%arg0: i32) -> (i32, i32) {
    %c0_i32 = arith.constant 0 : i32
    %c0_i32_0 = arith.constant 0 : i32
    %c0_i32_1 = arith.constant 0 : i32
    return %c0_i32, %c0_i32_0 : i32, i32
  }
  func.func @transform_3(%arg0: i32) -> (i32, i32) {
    %c0_i32 = arith.constant 0 : i32
    %c0_i32_0 = arith.constant 0 : i32
    %c0_i32_1 = arith.constant 0 : i32
    return %c0_i32, %c0_i32_0 : i32, i32
  }
  func.func @transform_4(%arg0: i32) -> (i32, i32) {
    %c0_i32 = arith.constant 0 : i32
    %c0_i32_0 = arith.constant 0 : i32
    %c0_i32_1 = arith.constant 0 : i32
    return %c0_i32, %c0_i32_0 : i32, i32
  }
  func.func @transform_5(%arg0: i32) -> (i32, i32) {
    %c0_i32 = arith.constant 0 : i32
    %c0_i32_0 = arith.constant 0 : i32
    %c0_i32_1 = arith.constant 0 : i32
    return %c0_i32, %c0_i32_0 : i32, i32
  }
  func.func @transform_6(%arg0: i32) -> (i32, i32) {
    %c0_i32 = arith.constant 0 : i32
    %c0_i32_0 = arith.constant 0 : i32
    %c0_i32_1 = arith.constant 0 : i32
    return %c0_i32, %c0_i32_0 : i32, i32
  }
  func.func @transform_7(%arg0: i32) -> (i32, i32) {
    %c0_i32 = arith.constant 0 : i32
    %c0_i32_0 = arith.constant 0 : i32
    %c0_i32_1 = arith.constant 0 : i32
    return %c0_i32, %c0_i32_0 : i32, i32
  }
  func.func @transform_8(%arg0: i32) -> (i32, i32) {
    %c0_i32 = arith.constant 0 : i32
    %c0_i32_0 = arith.constant 0 : i32
    %c0_i32_1 = arith.constant 0 : i32
    return %c0_i32, %c0_i32_0 : i32, i32
  }
  func.func @transform_9(%arg0: i32) -> (i32, i32) {
    %c0_i32 = arith.constant 0 : i32
    %c0_i32_0 = arith.constant 0 : i32
    %c0_i32_1 = arith.constant 0 : i32
    return %c0_i32, %c0_i32_0 : i32, i32
  }
  func.func @transform_10(%arg0: i32) -> (i32, i32) {
    %c0_i32 = arith.constant 0 : i32
    %c0_i32_0 = arith.constant 0 : i32
    %c0_i32_1 = arith.constant 0 : i32
    return %c0_i32, %c0_i32_0 : i32, i32
  }
  func.func @transform_11(%arg0: i32) -> (i32, i32) {
    %c0_i32 = arith.constant 0 : i32
    %c0_i32_0 = arith.constant 0 : i32
    %c0_i32_1 = arith.constant 0 : i32
    return %c0_i32, %c0_i32_0 : i32, i32
  }
  func.func @transform_12(%arg0: i32) -> (i32, i32) {
    %c0_i32 = arith.constant 0 : i32
    %c0_i32_0 = arith.constant 0 : i32
    %c0_i32_1 = arith.constant 0 : i32
    return %c0_i32, %c0_i32_0 : i32, i32
  }
  func.func @transform_13(%arg0: i32) -> (i32, i32, i32) {
    %c0_i32 = arith.constant 0 : i32
    %c0_i32_0 = arith.constant 0 : i32
    %c0_i32_1 = arith.constant 0 : i32
    return %arg0, %c0_i32, %c0_i32_0 : i32, i32, i32
  }
}

module attributes {stable_mosaic.version = 11 : i64} {
  func.func @_decoder_block_kernel(%arg0: i32, %arg1: memref<1x8x32xf32, #tpu.memory_space<vmem>>, %arg2: memref<1x8x32xf32, #tpu.memory_space<vmem>>, %arg3: memref<8x8xf32, #tpu.memory_space<vmem>>, %arg4: memref<32x96xf32, #tpu.memory_space<vmem>>, %arg5: memref<1x96xf32, #tpu.memory_space<vmem>>, %arg6: memref<32x32xf32, #tpu.memory_space<vmem>>, %arg7: memref<1x32xf32, #tpu.memory_space<vmem>>, %arg8: memref<1x32xf32, #tpu.memory_space<vmem>>, %arg9: memref<1x32xf32, #tpu.memory_space<vmem>>, %arg10: memref<32x32xf32, #tpu.memory_space<vmem>>, %arg11: memref<1x32xf32, #tpu.memory_space<vmem>>, %arg12: memref<32x64xf32, #tpu.memory_space<vmem>>, %arg13: memref<1x64xf32, #tpu.memory_space<vmem>>, %arg14: memref<32x32xf32, #tpu.memory_space<vmem>>, %arg15: memref<1x32xf32, #tpu.memory_space<vmem>>, %arg16: memref<1x32xf32, #tpu.memory_space<vmem>>, %arg17: memref<1x32xf32, #tpu.memory_space<vmem>>, %arg18: memref<32x64xf32, #tpu.memory_space<vmem>>, %arg19: memref<1x64xf32, #tpu.memory_space<vmem>>, %arg20: memref<64x32xf32, #tpu.memory_space<vmem>>, %arg21: memref<1x32xf32, #tpu.memory_space<vmem>>, %arg22: memref<1x32xf32, #tpu.memory_space<vmem>>, %arg23: memref<1x32xf32, #tpu.memory_space<vmem>>, %arg24: memref<1x8x32xf32, #tpu.memory_space<vmem>>) attributes {dimension_semantics = [#tpu.dimension_semantics<parallel>], iteration_bounds = array<i64: 2>, scalar_prefetch = 0 : i64, scratch_operands = 0 : i64, tpu.core_type = #tpu.core_type<tc>, window_params = [{transform_indices = @transform_0, window_bounds = array<i64: 1, 8, 32>}, {transform_indices = @transform_1, window_bounds = array<i64: 1, 8, 32>}, {pipeline_mode = #tpu.pipeline_mode<synchronous>, transform_indices = @transform_2, window_bounds = array<i64: 8, 8>}, {pipeline_mode = #tpu.pipeline_mode<synchronous>, transform_indices = @transform_3, window_bounds = array<i64: 32, 96>}, {pipeline_mode = #tpu.pipeline_mode<synchronous>, transform_indices = @transform_4, window_bounds = array<i64: 1, 96>}, {pipeline_mode = #tpu.pipeline_mode<synchronous>, transform_indices = @transform_5, window_bounds = array<i64: 32, 32>}, {pipeline_mode = #tpu.pipeline_mode<synchronous>, transform_indices = @transform_6, window_bounds = array<i64: 1, 32>}, {pipeline_mode = #tpu.pipeline_mode<synchronous>, transform_indices = @transform_7, window_bounds = array<i64: 1, 32>}, {pipeline_mode = #tpu.pipeline_mode<synchronous>, transform_indices = @transform_8, window_bounds = array<i64: 1, 32>}, {pipeline_mode = #tpu.pipeline_mode<synchronous>, transform_indices = @transform_9, window_bounds = array<i64: 32, 32>}, {pipeline_mode = #tpu.pipeline_mode<synchronous>, transform_indices = @transform_10, window_bounds = array<i64: 1, 32>}, {pipeline_mode = #tpu.pipeline_mode<synchronous>, transform_indices = @transform_11, window_bounds = array<i64: 32, 64>}, {pipeline_mode = #tpu.pipeline_mode<synchronous>, transform_indices = @transform_12, window_bounds = array<i64: 1, 64>}, {pipeline_mode = #tpu.pipeline_mode<synchronous>, transform_indices = @transform_13, window_bounds = array<i64: 32, 32>}, {pipeline_mode = #tpu.pipeline_mode<synchronous>, transform_indices = @transform_14, window_bounds = array<i64: 1, 32>}, {pipeline_mode = #tpu.pipeline_mode<synchronous>, transform_indices = @transform_15, window_bounds = array<i64: 1, 32>}, {pipeline_mode = #tpu.pipeline_mode<synchronous>, transform_indices = @transform_16, window_bounds = array<i64: 1, 32>}, {pipeline_mode = #tpu.pipeline_mode<synchronous>, transform_indices = @transform_17, window_bounds = array<i64: 32, 64>}, {pipeline_mode = #tpu.pipeline_mode<synchronous>, transform_indices = @transform_18, window_bounds = array<i64: 1, 64>}, {pipeline_mode = #tpu.pipeline_mode<synchronous>, transform_indices = @transform_19, window_bounds = array<i64: 64, 32>}, {pipeline_mode = #tpu.pipeline_mode<synchronous>, transform_indices = @transform_20, window_bounds = array<i64: 1, 32>}, {pipeline_mode = #tpu.pipeline_mode<synchronous>, transform_indices = @transform_21, window_bounds = array<i64: 1, 32>}, {pipeline_mode = #tpu.pipeline_mode<synchronous>, transform_indices = @transform_22, window_bounds = array<i64: 1, 32>}, {transform_indices = @transform_23, window_bounds = array<i64: 1, 8, 32>}]} {
    %c0 = arith.constant 0 : index
    %c0_0 = arith.constant 0 : index
    %c0_1 = arith.constant 0 : index
    %0 = vector.load %arg1[%c0, %c0_0, %c0_1] : memref<1x8x32xf32, #tpu.memory_space<vmem>>, vector<1x8x32xf32>
    %1 = vector.shape_cast %0 : vector<1x8x32xf32> to vector<8x32xf32>
    %c0_2 = arith.constant 0 : index
    %c0_3 = arith.constant 0 : index
    %c0_4 = arith.constant 0 : index
    %2 = vector.load %arg2[%c0_2, %c0_3, %c0_4] : memref<1x8x32xf32, #tpu.memory_space<vmem>>, vector<1x8x32xf32>
    %3 = vector.shape_cast %2 : vector<1x8x32xf32> to vector<8x32xf32>
    %c0_5 = arith.constant 0 : index
    %c0_6 = arith.constant 0 : index
    %4 = vector.load %arg3[%c0_5, %c0_6] : memref<8x8xf32, #tpu.memory_space<vmem>>, vector<8x8xf32>
    %cst = arith.constant 0.000000e+00 : f32
    %5 = vector.broadcast %cst : f32 to vector<8x8xf32>
    %6 = arith.cmpf one, %4, %5 : vector<8x8xf32>
    %cst_7 = arith.constant 0.000000e+00 : f32
    %cst_8 = arith.constant -1.000000e+09 : f32
    %7 = vector.broadcast %cst_7 : f32 to vector<8x8xf32>
    %8 = vector.broadcast %cst_8 : f32 to vector<8x8xf32>
    %9 = arith.select %6, %7, %8 : vector<8x8xi1>, vector<8x8xf32>
    %c0_9 = arith.constant 0 : index
    %c0_10 = arith.constant 0 : index
    %10 = vector.load %arg4[%c0_9, %c0_10] : memref<32x96xf32, #tpu.memory_space<vmem>>, vector<32x96xf32>
    %cst_11 = arith.constant dense<0.000000e+00> : vector<8x96xf32>
    %11 = tpu.matmul %1, %10, %cst_11 {dimension_numbers = #tpu.dot_dimension_numbers<[1], [0], [0], [1], [0, 0, 1, 1], [], []>} : vector<8x32xf32>, vector<32x96xf32>, vector<8x96xf32> -> vector<8x96xf32>
    %c0_12 = arith.constant 0 : index
    %c0_13 = arith.constant 0 : index
    %12 = vector.load %arg5[%c0_12, %c0_13] : memref<1x96xf32, #tpu.memory_space<vmem>>, vector<1x96xf32>
    %13 = vector.broadcast %12 : vector<1x96xf32> to vector<8x96xf32>
    %14 = arith.addf %11, %13 : vector<8x96xf32>
    %15 = vector.extract_strided_slice %14 {offsets = [0, 0], sizes = [8, 32], strides = [1, 1]} : vector<8x96xf32> to vector<8x32xf32>
    %16 = vector.extract_strided_slice %14 {offsets = [0, 32], sizes = [8, 32], strides = [1, 1]} : vector<8x96xf32> to vector<8x32xf32>
    %17 = vector.extract_strided_slice %14 {offsets = [0, 64], sizes = [8, 32], strides = [1, 1]} : vector<8x96xf32> to vector<8x32xf32>
    %18 = vector.extract_strided_slice %15 {offsets = [0, 0], sizes = [8, 8], strides = [1, 1]} : vector<8x32xf32> to vector<8x8xf32>
    %19 = vector.extract_strided_slice %16 {offsets = [0, 0], sizes = [8, 8], strides = [1, 1]} : vector<8x32xf32> to vector<8x8xf32>
    %cst_14 = arith.constant dense<0.000000e+00> : vector<8x8xf32>
    %20 = tpu.matmul %18, %19, %cst_14 {dimension_numbers = #tpu.dot_dimension_numbers<[1], [1], [0], [0], [0, 0, 1, 0], [], []>} : vector<8x8xf32>, vector<8x8xf32>, vector<8x8xf32> -> vector<8x8xf32>
    %cst_15 = arith.constant 0.353553385 : f32
    %21 = vector.broadcast %cst_15 : f32 to vector<8x8xf32>
    %22 = arith.mulf %20, %21 : vector<8x8xf32>
    %23 = arith.addf %22, %9 : vector<8x8xf32>
    %cst_16 = arith.constant dense<0xFF800000> : vector<8xf32>
    %24 = vector.multi_reduction <maximumf>, %23, %cst_16 [1] : vector<8x8xf32> to vector<8xf32>
    %25 = vector.shape_cast %24 : vector<8xf32> to vector<8x1xf32>
    %26 = vector.broadcast %25 : vector<8x1xf32> to vector<8x8xf32>
    %27 = arith.subf %23, %26 : vector<8x8xf32>
    %28 = math.exp %27 : vector<8x8xf32>
    %cst_17 = arith.constant dense<0.000000e+00> : vector<8xf32>
    %29 = vector.multi_reduction <add>, %28, %cst_17 [1] : vector<8x8xf32> to vector<8xf32>
    %30 = vector.shape_cast %29 : vector<8xf32> to vector<8x1xf32>
    %31 = tpu.reciprocal %30 {approx = true} : vector<8x1xf32> -> vector<8x1xf32>
    %32 = vector.broadcast %31 : vector<8x1xf32> to vector<8x8xf32>
    %33 = arith.mulf %28, %32 : vector<8x8xf32>
    %34 = vector.extract_strided_slice %17 {offsets = [0, 0], sizes = [8, 8], strides = [1, 1]} : vector<8x32xf32> to vector<8x8xf32>
    %cst_18 = arith.constant dense<0.000000e+00> : vector<8x8xf32>
    %35 = tpu.matmul %33, %34, %cst_18 {dimension_numbers = #tpu.dot_dimension_numbers<[1], [0], [0], [1], [0, 0, 1, 1], [], []>} : vector<8x8xf32>, vector<8x8xf32>, vector<8x8xf32> -> vector<8x8xf32>
    %36 = vector.extract_strided_slice %15 {offsets = [0, 8], sizes = [8, 8], strides = [1, 1]} : vector<8x32xf32> to vector<8x8xf32>
    %37 = vector.extract_strided_slice %16 {offsets = [0, 8], sizes = [8, 8], strides = [1, 1]} : vector<8x32xf32> to vector<8x8xf32>
    %cst_19 = arith.constant dense<0.000000e+00> : vector<8x8xf32>
    %38 = tpu.matmul %36, %37, %cst_19 {dimension_numbers = #tpu.dot_dimension_numbers<[1], [1], [0], [0], [0, 0, 1, 0], [], []>} : vector<8x8xf32>, vector<8x8xf32>, vector<8x8xf32> -> vector<8x8xf32>
    %cst_20 = arith.constant 0.353553385 : f32
    %39 = vector.broadcast %cst_20 : f32 to vector<8x8xf32>
    %40 = arith.mulf %38, %39 : vector<8x8xf32>
    %41 = arith.addf %40, %9 : vector<8x8xf32>
    %cst_21 = arith.constant dense<0xFF800000> : vector<8xf32>
    %42 = vector.multi_reduction <maximumf>, %41, %cst_21 [1] : vector<8x8xf32> to vector<8xf32>
    %43 = vector.shape_cast %42 : vector<8xf32> to vector<8x1xf32>
    %44 = vector.broadcast %43 : vector<8x1xf32> to vector<8x8xf32>
    %45 = arith.subf %41, %44 : vector<8x8xf32>
    %46 = math.exp %45 : vector<8x8xf32>
    %cst_22 = arith.constant dense<0.000000e+00> : vector<8xf32>
    %47 = vector.multi_reduction <add>, %46, %cst_22 [1] : vector<8x8xf32> to vector<8xf32>
    %48 = vector.shape_cast %47 : vector<8xf32> to vector<8x1xf32>
    %49 = tpu.reciprocal %48 {approx = true} : vector<8x1xf32> -> vector<8x1xf32>
    %50 = vector.broadcast %49 : vector<8x1xf32> to vector<8x8xf32>
    %51 = arith.mulf %46, %50 : vector<8x8xf32>
    %52 = vector.extract_strided_slice %17 {offsets = [0, 8], sizes = [8, 8], strides = [1, 1]} : vector<8x32xf32> to vector<8x8xf32>
    %cst_23 = arith.constant dense<0.000000e+00> : vector<8x8xf32>
    %53 = tpu.matmul %51, %52, %cst_23 {dimension_numbers = #tpu.dot_dimension_numbers<[1], [0], [0], [1], [0, 0, 1, 1], [], []>} : vector<8x8xf32>, vector<8x8xf32>, vector<8x8xf32> -> vector<8x8xf32>
    %54 = vector.extract_strided_slice %15 {offsets = [0, 16], sizes = [8, 8], strides = [1, 1]} : vector<8x32xf32> to vector<8x8xf32>
    %55 = vector.extract_strided_slice %16 {offsets = [0, 16], sizes = [8, 8], strides = [1, 1]} : vector<8x32xf32> to vector<8x8xf32>
    %cst_24 = arith.constant dense<0.000000e+00> : vector<8x8xf32>
    %56 = tpu.matmul %54, %55, %cst_24 {dimension_numbers = #tpu.dot_dimension_numbers<[1], [1], [0], [0], [0, 0, 1, 0], [], []>} : vector<8x8xf32>, vector<8x8xf32>, vector<8x8xf32> -> vector<8x8xf32>
    %cst_25 = arith.constant 0.353553385 : f32
    %57 = vector.broadcast %cst_25 : f32 to vector<8x8xf32>
    %58 = arith.mulf %56, %57 : vector<8x8xf32>
    %59 = arith.addf %58, %9 : vector<8x8xf32>
    %cst_26 = arith.constant dense<0xFF800000> : vector<8xf32>
    %60 = vector.multi_reduction <maximumf>, %59, %cst_26 [1] : vector<8x8xf32> to vector<8xf32>
    %61 = vector.shape_cast %60 : vector<8xf32> to vector<8x1xf32>
    %62 = vector.broadcast %61 : vector<8x1xf32> to vector<8x8xf32>
    %63 = arith.subf %59, %62 : vector<8x8xf32>
    %64 = math.exp %63 : vector<8x8xf32>
    %cst_27 = arith.constant dense<0.000000e+00> : vector<8xf32>
    %65 = vector.multi_reduction <add>, %64, %cst_27 [1] : vector<8x8xf32> to vector<8xf32>
    %66 = vector.shape_cast %65 : vector<8xf32> to vector<8x1xf32>
    %67 = tpu.reciprocal %66 {approx = true} : vector<8x1xf32> -> vector<8x1xf32>
    %68 = vector.broadcast %67 : vector<8x1xf32> to vector<8x8xf32>
    %69 = arith.mulf %64, %68 : vector<8x8xf32>
    %70 = vector.extract_strided_slice %17 {offsets = [0, 16], sizes = [8, 8], strides = [1, 1]} : vector<8x32xf32> to vector<8x8xf32>
    %cst_28 = arith.constant dense<0.000000e+00> : vector<8x8xf32>
    %71 = tpu.matmul %69, %70, %cst_28 {dimension_numbers = #tpu.dot_dimension_numbers<[1], [0], [0], [1], [0, 0, 1, 1], [], []>} : vector<8x8xf32>, vector<8x8xf32>, vector<8x8xf32> -> vector<8x8xf32>
    %72 = vector.extract_strided_slice %15 {offsets = [0, 24], sizes = [8, 8], strides = [1, 1]} : vector<8x32xf32> to vector<8x8xf32>
    %73 = vector.extract_strided_slice %16 {offsets = [0, 24], sizes = [8, 8], strides = [1, 1]} : vector<8x32xf32> to vector<8x8xf32>
    %cst_29 = arith.constant dense<0.000000e+00> : vector<8x8xf32>
    %74 = tpu.matmul %72, %73, %cst_29 {dimension_numbers = #tpu.dot_dimension_numbers<[1], [1], [0], [0], [0, 0, 1, 0], [], []>} : vector<8x8xf32>, vector<8x8xf32>, vector<8x8xf32> -> vector<8x8xf32>
    %cst_30 = arith.constant 0.353553385 : f32
    %75 = vector.broadcast %cst_30 : f32 to vector<8x8xf32>
    %76 = arith.mulf %74, %75 : vector<8x8xf32>
    %77 = arith.addf %76, %9 : vector<8x8xf32>
    %cst_31 = arith.constant dense<0xFF800000> : vector<8xf32>
    %78 = vector.multi_reduction <maximumf>, %77, %cst_31 [1] : vector<8x8xf32> to vector<8xf32>
    %79 = vector.shape_cast %78 : vector<8xf32> to vector<8x1xf32>
    %80 = vector.broadcast %79 : vector<8x1xf32> to vector<8x8xf32>
    %81 = arith.subf %77, %80 : vector<8x8xf32>
    %82 = math.exp %81 : vector<8x8xf32>
    %cst_32 = arith.constant dense<0.000000e+00> : vector<8xf32>
    %83 = vector.multi_reduction <add>, %82, %cst_32 [1] : vector<8x8xf32> to vector<8xf32>
    %84 = vector.shape_cast %83 : vector<8xf32> to vector<8x1xf32>
    %85 = tpu.reciprocal %84 {approx = true} : vector<8x1xf32> -> vector<8x1xf32>
    %86 = vector.broadcast %85 : vector<8x1xf32> to vector<8x8xf32>
    %87 = arith.mulf %82, %86 : vector<8x8xf32>
    %88 = vector.extract_strided_slice %17 {offsets = [0, 24], sizes = [8, 8], strides = [1, 1]} : vector<8x32xf32> to vector<8x8xf32>
    %cst_33 = arith.constant dense<0.000000e+00> : vector<8x8xf32>
    %89 = tpu.matmul %87, %88, %cst_33 {dimension_numbers = #tpu.dot_dimension_numbers<[1], [0], [0], [1], [0, 0, 1, 1], [], []>} : vector<8x8xf32>, vector<8x8xf32>, vector<8x8xf32> -> vector<8x8xf32>
    %90 = tpu.concatenate %35, %53, %71, %89 in 1 : vector<8x8xf32>, vector<8x8xf32>, vector<8x8xf32>, vector<8x8xf32> -> vector<8x32xf32>
    %c0_34 = arith.constant 0 : index
    %c0_35 = arith.constant 0 : index
    %91 = vector.load %arg6[%c0_34, %c0_35] : memref<32x32xf32, #tpu.memory_space<vmem>>, vector<32x32xf32>
    %cst_36 = arith.constant dense<0.000000e+00> : vector<8x32xf32>
    %92 = tpu.matmul %90, %91, %cst_36 {dimension_numbers = #tpu.dot_dimension_numbers<[1], [0], [0], [1], [0, 0, 1, 1], [], []>} : vector<8x32xf32>, vector<32x32xf32>, vector<8x32xf32> -> vector<8x32xf32>
    %c0_37 = arith.constant 0 : index
    %c0_38 = arith.constant 0 : index
    %93 = vector.load %arg7[%c0_37, %c0_38] : memref<1x32xf32, #tpu.memory_space<vmem>>, vector<1x32xf32>
    %94 = vector.broadcast %93 : vector<1x32xf32> to vector<8x32xf32>
    %95 = arith.addf %92, %94 : vector<8x32xf32>
    %96 = arith.addf %1, %95 : vector<8x32xf32>
    %c0_39 = arith.constant 0 : index
    %c0_40 = arith.constant 0 : index
    %97 = vector.load %arg8[%c0_39, %c0_40] : memref<1x32xf32, #tpu.memory_space<vmem>>, vector<1x32xf32>
    %c0_41 = arith.constant 0 : index
    %c0_42 = arith.constant 0 : index
    %98 = vector.load %arg9[%c0_41, %c0_42] : memref<1x32xf32, #tpu.memory_space<vmem>>, vector<1x32xf32>
    %cst_43 = arith.constant dense<0.000000e+00> : vector<8xf32>
    %99 = vector.multi_reduction <add>, %96, %cst_43 [1] : vector<8x32xf32> to vector<8xf32>
    %100 = vector.shape_cast %99 : vector<8xf32> to vector<8x1xf32>
    %cst_44 = arith.constant 3.200000e+01 : f32
    %101 = vector.broadcast %cst_44 : f32 to vector<8x1xf32>
    %102 = arith.divf %100, %101 : vector<8x1xf32>
    %103 = vector.broadcast %102 : vector<8x1xf32> to vector<8x32xf32>
    %104 = arith.subf %96, %103 : vector<8x32xf32>
    %105 = arith.mulf %104, %104 : vector<8x32xf32>
    %cst_45 = arith.constant dense<0.000000e+00> : vector<8xf32>
    %106 = vector.multi_reduction <add>, %105, %cst_45 [1] : vector<8x32xf32> to vector<8xf32>
    %107 = vector.shape_cast %106 : vector<8xf32> to vector<8x1xf32>
    %cst_46 = arith.constant 3.200000e+01 : f32
    %108 = vector.broadcast %cst_46 : f32 to vector<8x1xf32>
    %109 = arith.divf %107, %108 : vector<8x1xf32>
    %110 = vector.broadcast %102 : vector<8x1xf32> to vector<8x32xf32>
    %111 = arith.subf %96, %110 : vector<8x32xf32>
    %cst_47 = arith.constant 9.99999974E-6 : f32
    %112 = vector.broadcast %cst_47 : f32 to vector<8x1xf32>
    %113 = arith.addf %109, %112 : vector<8x1xf32>
    %114 = math.rsqrt %113 : vector<8x1xf32>
    %115 = vector.broadcast %114 : vector<8x1xf32> to vector<8x32xf32>
    %116 = arith.mulf %111, %115 : vector<8x32xf32>
    %117 = vector.broadcast %97 : vector<1x32xf32> to vector<8x32xf32>
    %118 = arith.mulf %116, %117 : vector<8x32xf32>
    %119 = vector.broadcast %98 : vector<1x32xf32> to vector<8x32xf32>
    %120 = arith.addf %118, %119 : vector<8x32xf32>
    %c0_48 = arith.constant 0 : index
    %c0_49 = arith.constant 0 : index
    %121 = vector.load %arg10[%c0_48, %c0_49] : memref<32x32xf32, #tpu.memory_space<vmem>>, vector<32x32xf32>
    %cst_50 = arith.constant dense<0.000000e+00> : vector<8x32xf32>
    %122 = tpu.matmul %120, %121, %cst_50 {dimension_numbers = #tpu.dot_dimension_numbers<[1], [0], [0], [1], [0, 0, 1, 1], [], []>} : vector<8x32xf32>, vector<32x32xf32>, vector<8x32xf32> -> vector<8x32xf32>
    %c0_51 = arith.constant 0 : index
    %c0_52 = arith.constant 0 : index
    %123 = vector.load %arg11[%c0_51, %c0_52] : memref<1x32xf32, #tpu.memory_space<vmem>>, vector<1x32xf32>
    %124 = vector.broadcast %123 : vector<1x32xf32> to vector<8x32xf32>
    %125 = arith.addf %122, %124 : vector<8x32xf32>
    %c0_53 = arith.constant 0 : index
    %c0_54 = arith.constant 0 : index
    %126 = vector.load %arg12[%c0_53, %c0_54] : memref<32x64xf32, #tpu.memory_space<vmem>>, vector<32x64xf32>
    %cst_55 = arith.constant dense<0.000000e+00> : vector<8x64xf32>
    %127 = tpu.matmul %3, %126, %cst_55 {dimension_numbers = #tpu.dot_dimension_numbers<[1], [0], [0], [1], [0, 0, 1, 1], [], []>} : vector<8x32xf32>, vector<32x64xf32>, vector<8x64xf32> -> vector<8x64xf32>
    %c0_56 = arith.constant 0 : index
    %c0_57 = arith.constant 0 : index
    %128 = vector.load %arg13[%c0_56, %c0_57] : memref<1x64xf32, #tpu.memory_space<vmem>>, vector<1x64xf32>
    %129 = vector.broadcast %128 : vector<1x64xf32> to vector<8x64xf32>
    %130 = arith.addf %127, %129 : vector<8x64xf32>
    %131 = vector.extract_strided_slice %130 {offsets = [0, 0], sizes = [8, 32], strides = [1, 1]} : vector<8x64xf32> to vector<8x32xf32>
    %132 = vector.extract_strided_slice %130 {offsets = [0, 32], sizes = [8, 32], strides = [1, 1]} : vector<8x64xf32> to vector<8x32xf32>
    %133 = vector.extract_strided_slice %125 {offsets = [0, 0], sizes = [8, 8], strides = [1, 1]} : vector<8x32xf32> to vector<8x8xf32>
    %134 = vector.extract_strided_slice %131 {offsets = [0, 0], sizes = [8, 8], strides = [1, 1]} : vector<8x32xf32> to vector<8x8xf32>
    %cst_58 = arith.constant dense<0.000000e+00> : vector<8x8xf32>
    %135 = tpu.matmul %133, %134, %cst_58 {dimension_numbers = #tpu.dot_dimension_numbers<[1], [1], [0], [0], [0, 0, 1, 0], [], []>} : vector<8x8xf32>, vector<8x8xf32>, vector<8x8xf32> -> vector<8x8xf32>
    %cst_59 = arith.constant 0.353553385 : f32
    %136 = vector.broadcast %cst_59 : f32 to vector<8x8xf32>
    %137 = arith.mulf %135, %136 : vector<8x8xf32>
    %cst_60 = arith.constant dense<0xFF800000> : vector<8xf32>
    %138 = vector.multi_reduction <maximumf>, %137, %cst_60 [1] : vector<8x8xf32> to vector<8xf32>
    %139 = vector.shape_cast %138 : vector<8xf32> to vector<8x1xf32>
    %140 = vector.broadcast %139 : vector<8x1xf32> to vector<8x8xf32>
    %141 = arith.subf %137, %140 : vector<8x8xf32>
    %142 = math.exp %141 : vector<8x8xf32>
    %cst_61 = arith.constant dense<0.000000e+00> : vector<8xf32>
    %143 = vector.multi_reduction <add>, %142, %cst_61 [1] : vector<8x8xf32> to vector<8xf32>
    %144 = vector.shape_cast %143 : vector<8xf32> to vector<8x1xf32>
    %145 = tpu.reciprocal %144 {approx = true} : vector<8x1xf32> -> vector<8x1xf32>
    %146 = vector.broadcast %145 : vector<8x1xf32> to vector<8x8xf32>
    %147 = arith.mulf %142, %146 : vector<8x8xf32>
    %148 = vector.extract_strided_slice %132 {offsets = [0, 0], sizes = [8, 8], strides = [1, 1]} : vector<8x32xf32> to vector<8x8xf32>
    %cst_62 = arith.constant dense<0.000000e+00> : vector<8x8xf32>
    %149 = tpu.matmul %147, %148, %cst_62 {dimension_numbers = #tpu.dot_dimension_numbers<[1], [0], [0], [1], [0, 0, 1, 1], [], []>} : vector<8x8xf32>, vector<8x8xf32>, vector<8x8xf32> -> vector<8x8xf32>
    %150 = vector.extract_strided_slice %125 {offsets = [0, 8], sizes = [8, 8], strides = [1, 1]} : vector<8x32xf32> to vector<8x8xf32>
    %151 = vector.extract_strided_slice %131 {offsets = [0, 8], sizes = [8, 8], strides = [1, 1]} : vector<8x32xf32> to vector<8x8xf32>
    %cst_63 = arith.constant dense<0.000000e+00> : vector<8x8xf32>
    %152 = tpu.matmul %150, %151, %cst_63 {dimension_numbers = #tpu.dot_dimension_numbers<[1], [1], [0], [0], [0, 0, 1, 0], [], []>} : vector<8x8xf32>, vector<8x8xf32>, vector<8x8xf32> -> vector<8x8xf32>
    %cst_64 = arith.constant 0.353553385 : f32
    %153 = vector.broadcast %cst_64 : f32 to vector<8x8xf32>
    %154 = arith.mulf %152, %153 : vector<8x8xf32>
    %cst_65 = arith.constant dense<0xFF800000> : vector<8xf32>
    %155 = vector.multi_reduction <maximumf>, %154, %cst_65 [1] : vector<8x8xf32> to vector<8xf32>
    %156 = vector.shape_cast %155 : vector<8xf32> to vector<8x1xf32>
    %157 = vector.broadcast %156 : vector<8x1xf32> to vector<8x8xf32>
    %158 = arith.subf %154, %157 : vector<8x8xf32>
    %159 = math.exp %158 : vector<8x8xf32>
    %cst_66 = arith.constant dense<0.000000e+00> : vector<8xf32>
    %160 = vector.multi_reduction <add>, %159, %cst_66 [1] : vector<8x8xf32> to vector<8xf32>
    %161 = vector.shape_cast %160 : vector<8xf32> to vector<8x1xf32>
    %162 = tpu.reciprocal %161 {approx = true} : vector<8x1xf32> -> vector<8x1xf32>
    %163 = vector.broadcast %162 : vector<8x1xf32> to vector<8x8xf32>
    %164 = arith.mulf %159, %163 : vector<8x8xf32>
    %165 = vector.extract_strided_slice %132 {offsets = [0, 8], sizes = [8, 8], strides = [1, 1]} : vector<8x32xf32> to vector<8x8xf32>
    %cst_67 = arith.constant dense<0.000000e+00> : vector<8x8xf32>
    %166 = tpu.matmul %164, %165, %cst_67 {dimension_numbers = #tpu.dot_dimension_numbers<[1], [0], [0], [1], [0, 0, 1, 1], [], []>} : vector<8x8xf32>, vector<8x8xf32>, vector<8x8xf32> -> vector<8x8xf32>
    %167 = vector.extract_strided_slice %125 {offsets = [0, 16], sizes = [8, 8], strides = [1, 1]} : vector<8x32xf32> to vector<8x8xf32>
    %168 = vector.extract_strided_slice %131 {offsets = [0, 16], sizes = [8, 8], strides = [1, 1]} : vector<8x32xf32> to vector<8x8xf32>
    %cst_68 = arith.constant dense<0.000000e+00> : vector<8x8xf32>
    %169 = tpu.matmul %167, %168, %cst_68 {dimension_numbers = #tpu.dot_dimension_numbers<[1], [1], [0], [0], [0, 0, 1, 0], [], []>} : vector<8x8xf32>, vector<8x8xf32>, vector<8x8xf32> -> vector<8x8xf32>
    %cst_69 = arith.constant 0.353553385 : f32
    %170 = vector.broadcast %cst_69 : f32 to vector<8x8xf32>
    %171 = arith.mulf %169, %170 : vector<8x8xf32>
    %cst_70 = arith.constant dense<0xFF800000> : vector<8xf32>
    %172 = vector.multi_reduction <maximumf>, %171, %cst_70 [1] : vector<8x8xf32> to vector<8xf32>
    %173 = vector.shape_cast %172 : vector<8xf32> to vector<8x1xf32>
    %174 = vector.broadcast %173 : vector<8x1xf32> to vector<8x8xf32>
    %175 = arith.subf %171, %174 : vector<8x8xf32>
    %176 = math.exp %175 : vector<8x8xf32>
    %cst_71 = arith.constant dense<0.000000e+00> : vector<8xf32>
    %177 = vector.multi_reduction <add>, %176, %cst_71 [1] : vector<8x8xf32> to vector<8xf32>
    %178 = vector.shape_cast %177 : vector<8xf32> to vector<8x1xf32>
    %179 = tpu.reciprocal %178 {approx = true} : vector<8x1xf32> -> vector<8x1xf32>
    %180 = vector.broadcast %179 : vector<8x1xf32> to vector<8x8xf32>
    %181 = arith.mulf %176, %180 : vector<8x8xf32>
    %182 = vector.extract_strided_slice %132 {offsets = [0, 16], sizes = [8, 8], strides = [1, 1]} : vector<8x32xf32> to vector<8x8xf32>
    %cst_72 = arith.constant dense<0.000000e+00> : vector<8x8xf32>
    %183 = tpu.matmul %181, %182, %cst_72 {dimension_numbers = #tpu.dot_dimension_numbers<[1], [0], [0], [1], [0, 0, 1, 1], [], []>} : vector<8x8xf32>, vector<8x8xf32>, vector<8x8xf32> -> vector<8x8xf32>
    %184 = vector.extract_strided_slice %125 {offsets = [0, 24], sizes = [8, 8], strides = [1, 1]} : vector<8x32xf32> to vector<8x8xf32>
    %185 = vector.extract_strided_slice %131 {offsets = [0, 24], sizes = [8, 8], strides = [1, 1]} : vector<8x32xf32> to vector<8x8xf32>
    %cst_73 = arith.constant dense<0.000000e+00> : vector<8x8xf32>
    %186 = tpu.matmul %184, %185, %cst_73 {dimension_numbers = #tpu.dot_dimension_numbers<[1], [1], [0], [0], [0, 0, 1, 0], [], []>} : vector<8x8xf32>, vector<8x8xf32>, vector<8x8xf32> -> vector<8x8xf32>
    %cst_74 = arith.constant 0.353553385 : f32
    %187 = vector.broadcast %cst_74 : f32 to vector<8x8xf32>
    %188 = arith.mulf %186, %187 : vector<8x8xf32>
    %cst_75 = arith.constant dense<0xFF800000> : vector<8xf32>
    %189 = vector.multi_reduction <maximumf>, %188, %cst_75 [1] : vector<8x8xf32> to vector<8xf32>
    %190 = vector.shape_cast %189 : vector<8xf32> to vector<8x1xf32>
    %191 = vector.broadcast %190 : vector<8x1xf32> to vector<8x8xf32>
    %192 = arith.subf %188, %191 : vector<8x8xf32>
    %193 = math.exp %192 : vector<8x8xf32>
    %cst_76 = arith.constant dense<0.000000e+00> : vector<8xf32>
    %194 = vector.multi_reduction <add>, %193, %cst_76 [1] : vector<8x8xf32> to vector<8xf32>
    %195 = vector.shape_cast %194 : vector<8xf32> to vector<8x1xf32>
    %196 = tpu.reciprocal %195 {approx = true} : vector<8x1xf32> -> vector<8x1xf32>
    %197 = vector.broadcast %196 : vector<8x1xf32> to vector<8x8xf32>
    %198 = arith.mulf %193, %197 : vector<8x8xf32>
    %199 = vector.extract_strided_slice %132 {offsets = [0, 24], sizes = [8, 8], strides = [1, 1]} : vector<8x32xf32> to vector<8x8xf32>
    %cst_77 = arith.constant dense<0.000000e+00> : vector<8x8xf32>
    %200 = tpu.matmul %198, %199, %cst_77 {dimension_numbers = #tpu.dot_dimension_numbers<[1], [0], [0], [1], [0, 0, 1, 1], [], []>} : vector<8x8xf32>, vector<8x8xf32>, vector<8x8xf32> -> vector<8x8xf32>
    %201 = tpu.concatenate %149, %166, %183, %200 in 1 : vector<8x8xf32>, vector<8x8xf32>, vector<8x8xf32>, vector<8x8xf32> -> vector<8x32xf32>
    %c0_78 = arith.constant 0 : index
    %c0_79 = arith.constant 0 : index
    %202 = vector.load %arg14[%c0_78, %c0_79] : memref<32x32xf32, #tpu.memory_space<vmem>>, vector<32x32xf32>
    %cst_80 = arith.constant dense<0.000000e+00> : vector<8x32xf32>
    %203 = tpu.matmul %201, %202, %cst_80 {dimension_numbers = #tpu.dot_dimension_numbers<[1], [0], [0], [1], [0, 0, 1, 1], [], []>} : vector<8x32xf32>, vector<32x32xf32>, vector<8x32xf32> -> vector<8x32xf32>
    %c0_81 = arith.constant 0 : index
    %c0_82 = arith.constant 0 : index
    %204 = vector.load %arg15[%c0_81, %c0_82] : memref<1x32xf32, #tpu.memory_space<vmem>>, vector<1x32xf32>
    %205 = vector.broadcast %204 : vector<1x32xf32> to vector<8x32xf32>
    %206 = arith.addf %203, %205 : vector<8x32xf32>
    %207 = arith.addf %120, %206 : vector<8x32xf32>
    %c0_83 = arith.constant 0 : index
    %c0_84 = arith.constant 0 : index
    %208 = vector.load %arg16[%c0_83, %c0_84] : memref<1x32xf32, #tpu.memory_space<vmem>>, vector<1x32xf32>
    %c0_85 = arith.constant 0 : index
    %c0_86 = arith.constant 0 : index
    %209 = vector.load %arg17[%c0_85, %c0_86] : memref<1x32xf32, #tpu.memory_space<vmem>>, vector<1x32xf32>
    %cst_87 = arith.constant dense<0.000000e+00> : vector<8xf32>
    %210 = vector.multi_reduction <add>, %207, %cst_87 [1] : vector<8x32xf32> to vector<8xf32>
    %211 = vector.shape_cast %210 : vector<8xf32> to vector<8x1xf32>
    %cst_88 = arith.constant 3.200000e+01 : f32
    %212 = vector.broadcast %cst_88 : f32 to vector<8x1xf32>
    %213 = arith.divf %211, %212 : vector<8x1xf32>
    %214 = vector.broadcast %213 : vector<8x1xf32> to vector<8x32xf32>
    %215 = arith.subf %207, %214 : vector<8x32xf32>
    %216 = arith.mulf %215, %215 : vector<8x32xf32>
    %cst_89 = arith.constant dense<0.000000e+00> : vector<8xf32>
    %217 = vector.multi_reduction <add>, %216, %cst_89 [1] : vector<8x32xf32> to vector<8xf32>
    %218 = vector.shape_cast %217 : vector<8xf32> to vector<8x1xf32>
    %cst_90 = arith.constant 3.200000e+01 : f32
    %219 = vector.broadcast %cst_90 : f32 to vector<8x1xf32>
    %220 = arith.divf %218, %219 : vector<8x1xf32>
    %221 = vector.broadcast %213 : vector<8x1xf32> to vector<8x32xf32>
    %222 = arith.subf %207, %221 : vector<8x32xf32>
    %cst_91 = arith.constant 9.99999974E-6 : f32
    %223 = vector.broadcast %cst_91 : f32 to vector<8x1xf32>
    %224 = arith.addf %220, %223 : vector<8x1xf32>
    %225 = math.rsqrt %224 : vector<8x1xf32>
    %226 = vector.broadcast %225 : vector<8x1xf32> to vector<8x32xf32>
    %227 = arith.mulf %222, %226 : vector<8x32xf32>
    %228 = vector.broadcast %208 : vector<1x32xf32> to vector<8x32xf32>
    %229 = arith.mulf %227, %228 : vector<8x32xf32>
    %230 = vector.broadcast %209 : vector<1x32xf32> to vector<8x32xf32>
    %231 = arith.addf %229, %230 : vector<8x32xf32>
    %c0_92 = arith.constant 0 : index
    %c0_93 = arith.constant 0 : index
    %232 = vector.load %arg18[%c0_92, %c0_93] : memref<32x64xf32, #tpu.memory_space<vmem>>, vector<32x64xf32>
    %cst_94 = arith.constant dense<0.000000e+00> : vector<8x64xf32>
    %233 = tpu.matmul %231, %232, %cst_94 {dimension_numbers = #tpu.dot_dimension_numbers<[1], [0], [0], [1], [0, 0, 1, 1], [], []>} : vector<8x32xf32>, vector<32x64xf32>, vector<8x64xf32> -> vector<8x64xf32>
    %c0_95 = arith.constant 0 : index
    %c0_96 = arith.constant 0 : index
    %234 = vector.load %arg19[%c0_95, %c0_96] : memref<1x64xf32, #tpu.memory_space<vmem>>, vector<1x64xf32>
    %235 = vector.broadcast %234 : vector<1x64xf32> to vector<8x64xf32>
    %236 = arith.addf %233, %235 : vector<8x64xf32>
    %cst_97 = arith.constant 0.000000e+00 : f32
    %237 = vector.broadcast %cst_97 : f32 to vector<8x64xf32>
    %238 = arith.maximumf %236, %237 : vector<8x64xf32>
    %c0_98 = arith.constant 0 : index
    %c0_99 = arith.constant 0 : index
    %239 = vector.load %arg20[%c0_98, %c0_99] : memref<64x32xf32, #tpu.memory_space<vmem>>, vector<64x32xf32>
    %cst_100 = arith.constant dense<0.000000e+00> : vector<8x32xf32>
    %240 = tpu.matmul %238, %239, %cst_100 {dimension_numbers = #tpu.dot_dimension_numbers<[1], [0], [0], [1], [0, 0, 1, 1], [], []>} : vector<8x64xf32>, vector<64x32xf32>, vector<8x32xf32> -> vector<8x32xf32>
    %c0_101 = arith.constant 0 : index
    %c0_102 = arith.constant 0 : index
    %241 = vector.load %arg21[%c0_101, %c0_102] : memref<1x32xf32, #tpu.memory_space<vmem>>, vector<1x32xf32>
    %242 = vector.broadcast %241 : vector<1x32xf32> to vector<8x32xf32>
    %243 = arith.addf %240, %242 : vector<8x32xf32>
    %244 = arith.addf %231, %243 : vector<8x32xf32>
    %c0_103 = arith.constant 0 : index
    %c0_104 = arith.constant 0 : index
    %245 = vector.load %arg22[%c0_103, %c0_104] : memref<1x32xf32, #tpu.memory_space<vmem>>, vector<1x32xf32>
    %c0_105 = arith.constant 0 : index
    %c0_106 = arith.constant 0 : index
    %246 = vector.load %arg23[%c0_105, %c0_106] : memref<1x32xf32, #tpu.memory_space<vmem>>, vector<1x32xf32>
    %cst_107 = arith.constant dense<0.000000e+00> : vector<8xf32>
    %247 = vector.multi_reduction <add>, %244, %cst_107 [1] : vector<8x32xf32> to vector<8xf32>
    %248 = vector.shape_cast %247 : vector<8xf32> to vector<8x1xf32>
    %cst_108 = arith.constant 3.200000e+01 : f32
    %249 = vector.broadcast %cst_108 : f32 to vector<8x1xf32>
    %250 = arith.divf %248, %249 : vector<8x1xf32>
    %251 = vector.broadcast %250 : vector<8x1xf32> to vector<8x32xf32>
    %252 = arith.subf %244, %251 : vector<8x32xf32>
    %253 = arith.mulf %252, %252 : vector<8x32xf32>
    %cst_109 = arith.constant dense<0.000000e+00> : vector<8xf32>
    %254 = vector.multi_reduction <add>, %253, %cst_109 [1] : vector<8x32xf32> to vector<8xf32>
    %255 = vector.shape_cast %254 : vector<8xf32> to vector<8x1xf32>
    %cst_110 = arith.constant 3.200000e+01 : f32
    %256 = vector.broadcast %cst_110 : f32 to vector<8x1xf32>
    %257 = arith.divf %255, %256 : vector<8x1xf32>
    %258 = vector.broadcast %250 : vector<8x1xf32> to vector<8x32xf32>
    %259 = arith.subf %244, %258 : vector<8x32xf32>
    %cst_111 = arith.constant 9.99999974E-6 : f32
    %260 = vector.broadcast %cst_111 : f32 to vector<8x1xf32>
    %261 = arith.addf %257, %260 : vector<8x1xf32>
    %262 = math.rsqrt %261 : vector<8x1xf32>
    %263 = vector.broadcast %262 : vector<8x1xf32> to vector<8x32xf32>
    %264 = arith.mulf %259, %263 : vector<8x32xf32>
    %265 = vector.broadcast %245 : vector<1x32xf32> to vector<8x32xf32>
    %266 = arith.mulf %264, %265 : vector<8x32xf32>
    %267 = vector.broadcast %246 : vector<1x32xf32> to vector<8x32xf32>
    %268 = arith.addf %266, %267 : vector<8x32xf32>
    %c0_112 = arith.constant 0 : index
    %c0_113 = arith.constant 0 : index
    %c0_114 = arith.constant 0 : index
    %269 = vector.load %arg24[%c0_112, %c0_113, %c0_114] : memref<1x8x32xf32, #tpu.memory_space<vmem>>, vector<1x8x32xf32>
    %270 = vector.shape_cast %269 : vector<1x8x32xf32> to vector<8x32xf32>
    %271 = vector.shape_cast %268 : vector<8x32xf32> to vector<1x8x32xf32>
    tpu.vector_store %arg24[%c0_112, %c0_113, %c0_114], %271 {strides = array<i32>} : memref<1x8x32xf32, #tpu.memory_space<vmem>>, vector<1x8x32xf32>,
    return
  }
  func.func @transform_0(%arg0: i32) -> (i32, i32, i32) {
    %c0_i32 = arith.constant 0 : i32
    %c0_i32_0 = arith.constant 0 : i32
    %c0_i32_1 = arith.constant 0 : i32
    return %arg0, %c0_i32, %c0_i32_0 : i32, i32, i32
  }
  func.func @transform_1(%arg0: i32) -> (i32, i32, i32) {
    %c0_i32 = arith.constant 0 : i32
    %c0_i32_0 = arith.constant 0 : i32
    %c0_i32_1 = arith.constant 0 : i32
    return %arg0, %c0_i32, %c0_i32_0 : i32, i32, i32
  }
  func.func @transform_2(%arg0: i32) -> (i32, i32) {
    %c0_i32 = arith.constant 0 : i32
    %c0_i32_0 = arith.constant 0 : i32
    %c0_i32_1 = arith.constant 0 : i32
    return %c0_i32, %c0_i32_0 : i32, i32
  }
  func.func @transform_3(%arg0: i32) -> (i32, i32) {
    %c0_i32 = arith.constant 0 : i32
    %c0_i32_0 = arith.constant 0 : i32
    %c0_i32_1 = arith.constant 0 : i32
    return %c0_i32, %c0_i32_0 : i32, i32
  }
  func.func @transform_4(%arg0: i32) -> (i32, i32) {
    %c0_i32 = arith.constant 0 : i32
    %c0_i32_0 = arith.constant 0 : i32
    %c0_i32_1 = arith.constant 0 : i32
    return %c0_i32, %c0_i32_0 : i32, i32
  }
  func.func @transform_5(%arg0: i32) -> (i32, i32) {
    %c0_i32 = arith.constant 0 : i32
    %c0_i32_0 = arith.constant 0 : i32
    %c0_i32_1 = arith.constant 0 : i32
    return %c0_i32, %c0_i32_0 : i32, i32
  }
  func.func @transform_6(%arg0: i32) -> (i32, i32) {
    %c0_i32 = arith.constant 0 : i32
    %c0_i32_0 = arith.constant 0 : i32
    %c0_i32_1 = arith.constant 0 : i32
    return %c0_i32, %c0_i32_0 : i32, i32
  }
  func.func @transform_7(%arg0: i32) -> (i32, i32) {
    %c0_i32 = arith.constant 0 : i32
    %c0_i32_0 = arith.constant 0 : i32
    %c0_i32_1 = arith.constant 0 : i32
    return %c0_i32, %c0_i32_0 : i32, i32
  }
  func.func @transform_8(%arg0: i32) -> (i32, i32) {
    %c0_i32 = arith.constant 0 : i32
    %c0_i32_0 = arith.constant 0 : i32
    %c0_i32_1 = arith.constant 0 : i32
    return %c0_i32, %c0_i32_0 : i32, i32
  }
  func.func @transform_9(%arg0: i32) -> (i32, i32) {
    %c0_i32 = arith.constant 0 : i32
    %c0_i32_0 = arith.constant 0 : i32
    %c0_i32_1 = arith.constant 0 : i32
    return %c0_i32, %c0_i32_0 : i32, i32
  }
  func.func @transform_10(%arg0: i32) -> (i32, i32) {
    %c0_i32 = arith.constant 0 : i32
    %c0_i32_0 = arith.constant 0 : i32
    %c0_i32_1 = arith.constant 0 : i32
    return %c0_i32, %c0_i32_0 : i32, i32
  }
  func.func @transform_11(%arg0: i32) -> (i32, i32) {
    %c0_i32 = arith.constant 0 : i32
    %c0_i32_0 = arith.constant 0 : i32
    %c0_i32_1 = arith.constant 0 : i32
    return %c0_i32, %c0_i32_0 : i32, i32
  }
  func.func @transform_12(%arg0: i32) -> (i32, i32) {
    %c0_i32 = arith.constant 0 : i32
    %c0_i32_0 = arith.constant 0 : i32
    %c0_i32_1 = arith.constant 0 : i32
    return %c0_i32, %c0_i32_0 : i32, i32
  }
  func.func @transform_13(%arg0: i32) -> (i32, i32) {
    %c0_i32 = arith.constant 0 : i32
    %c0_i32_0 = arith.constant 0 : i32
    %c0_i32_1 = arith.constant 0 : i32
    return %c0_i32, %c0_i32_0 : i32, i32
  }
  func.func @transform_14(%arg0: i32) -> (i32, i32) {
    %c0_i32 = arith.constant 0 : i32
    %c0_i32_0 = arith.constant 0 : i32
    %c0_i32_1 = arith.constant 0 : i32
    return %c0_i32, %c0_i32_0 : i32, i32
  }
  func.func @transform_15(%arg0: i32) -> (i32, i32) {
    %c0_i32 = arith.constant 0 : i32
    %c0_i32_0 = arith.constant 0 : i32
    %c0_i32_1 = arith.constant 0 : i32
    return %c0_i32, %c0_i32_0 : i32, i32
  }
  func.func @transform_16(%arg0: i32) -> (i32, i32) {
    %c0_i32 = arith.constant 0 : i32
    %c0_i32_0 = arith.constant 0 : i32
    %c0_i32_1 = arith.constant 0 : i32
    return %c0_i32, %c0_i32_0 : i32, i32
  }
  func.func @transform_17(%arg0: i32) -> (i32, i32) {
    %c0_i32 = arith.constant 0 : i32
    %c0_i32_0 = arith.constant 0 : i32
    %c0_i32_1 = arith.constant 0 : i32
    return %c0_i32, %c0_i32_0 : i32, i32
  }
  func.func @transform_18(%arg0: i32) -> (i32, i32) {
    %c0_i32 = arith.constant 0 : i32
    %c0_i32_0 = arith.constant 0 : i32
    %c0_i32_1 = arith.constant 0 : i32
    return %c0_i32, %c0_i32_0 : i32, i32
  }
  func.func @transform_19(%arg0: i32) -> (i32, i32) {
    %c0_i32 = arith.constant 0 : i32
    %c0_i32_0 = arith.constant 0 : i32
    %c0_i32_1 = arith.constant 0 : i32
    return %c0_i32, %c0_i32_0 : i32, i32
  }
  func.func @transform_20(%arg0: i32) -> (i32, i32) {
    %c0_i32 = arith.constant 0 : i32
    %c0_i32_0 = arith.constant 0 : i32
    %c0_i32_1 = arith.constant 0 : i32
    return %c0_i32, %c0_i32_0 : i32, i32
  }
  func.func @transform_21(%arg0: i32) -> (i32, i32) {
    %c0_i32 = arith.constant 0 : i32
    %c0_i32_0 = arith.constant 0 : i32
    %c0_i32_1 = arith.constant 0 : i32
    return %c0_i32, %c0_i32_0 : i32, i32
  }
  func.func @transform_22(%arg0: i32) -> (i32, i32) {
    %c0_i32 = arith.constant 0 : i32
    %c0_i32_0 = arith.constant 0 : i32
    %c0_i32_1 = arith.constant 0 : i32
    return %c0_i32, %c0_i32_0 : i32, i32
  }
  func.func @transform_23(%arg0: i32) -> (i32, i32, i32) {
    %c0_i32 = arith.constant 0 : i32
    %c0_i32_0 = arith.constant 0 : i32
    %c0_i32_1 = arith.constant 0 : i32
    return %arg0, %c0_i32, %c0_i32_0 : i32, i32, i32
  }
}

module attributes {stable_mosaic.version = 11 : i64} {
  func.func @_decoder_block_kernel(%arg0: i32, %arg1: memref<1x8x32xf32, #tpu.memory_space<vmem>>, %arg2: memref<1x8x32xf32, #tpu.memory_space<vmem>>, %arg3: memref<8x8xf32, #tpu.memory_space<vmem>>, %arg4: memref<32x96xf32, #tpu.memory_space<vmem>>, %arg5: memref<1x96xf32, #tpu.memory_space<vmem>>, %arg6: memref<32x32xf32, #tpu.memory_space<vmem>>, %arg7: memref<1x32xf32, #tpu.memory_space<vmem>>, %arg8: memref<1x32xf32, #tpu.memory_space<vmem>>, %arg9: memref<1x32xf32, #tpu.memory_space<vmem>>, %arg10: memref<32x32xf32, #tpu.memory_space<vmem>>, %arg11: memref<1x32xf32, #tpu.memory_space<vmem>>, %arg12: memref<32x64xf32, #tpu.memory_space<vmem>>, %arg13: memref<1x64xf32, #tpu.memory_space<vmem>>, %arg14: memref<32x32xf32, #tpu.memory_space<vmem>>, %arg15: memref<1x32xf32, #tpu.memory_space<vmem>>, %arg16: memref<1x32xf32, #tpu.memory_space<vmem>>, %arg17: memref<1x32xf32, #tpu.memory_space<vmem>>, %arg18: memref<32x64xf32, #tpu.memory_space<vmem>>, %arg19: memref<1x64xf32, #tpu.memory_space<vmem>>, %arg20: memref<64x32xf32, #tpu.memory_space<vmem>>, %arg21: memref<1x32xf32, #tpu.memory_space<vmem>>, %arg22: memref<1x32xf32, #tpu.memory_space<vmem>>, %arg23: memref<1x32xf32, #tpu.memory_space<vmem>>, %arg24: memref<1x8x32xf32, #tpu.memory_space<vmem>>) attributes {dimension_semantics = [#tpu.dimension_semantics<parallel>], iteration_bounds = array<i64: 2>, scalar_prefetch = 0 : i64, scratch_operands = 0 : i64, tpu.core_type = #tpu.core_type<tc>, window_params = [{transform_indices = @transform_0, window_bounds = array<i64: 1, 8, 32>}, {transform_indices = @transform_1, window_bounds = array<i64: 1, 8, 32>}, {pipeline_mode = #tpu.pipeline_mode<synchronous>, transform_indices = @transform_2, window_bounds = array<i64: 8, 8>}, {pipeline_mode = #tpu.pipeline_mode<synchronous>, transform_indices = @transform_3, window_bounds = array<i64: 32, 96>}, {pipeline_mode = #tpu.pipeline_mode<synchronous>, transform_indices = @transform_4, window_bounds = array<i64: 1, 96>}, {pipeline_mode = #tpu.pipeline_mode<synchronous>, transform_indices = @transform_5, window_bounds = array<i64: 32, 32>}, {pipeline_mode = #tpu.pipeline_mode<synchronous>, transform_indices = @transform_6, window_bounds = array<i64: 1, 32>}, {pipeline_mode = #tpu.pipeline_mode<synchronous>, transform_indices = @transform_7, window_bounds = array<i64: 1, 32>}, {pipeline_mode = #tpu.pipeline_mode<synchronous>, transform_indices = @transform_8, window_bounds = array<i64: 1, 32>}, {pipeline_mode = #tpu.pipeline_mode<synchronous>, transform_indices = @transform_9, window_bounds = array<i64: 32, 32>}, {pipeline_mode = #tpu.pipeline_mode<synchronous>, transform_indices = @transform_10, window_bounds = array<i64: 1, 32>}, {pipeline_mode = #tpu.pipeline_mode<synchronous>, transform_indices = @transform_11, window_bounds = array<i64: 32, 64>}, {pipeline_mode = #tpu.pipeline_mode<synchronous>, transform_indices = @transform_12, window_bounds = array<i64: 1, 64>}, {pipeline_mode = #tpu.pipeline_mode<synchronous>, transform_indices = @transform_13, window_bounds = array<i64: 32, 32>}, {pipeline_mode = #tpu.pipeline_mode<synchronous>, transform_indices = @transform_14, window_bounds = array<i64: 1, 32>}, {pipeline_mode = #tpu.pipeline_mode<synchronous>, transform_indices = @transform_15, window_bounds = array<i64: 1, 32>}, {pipeline_mode = #tpu.pipeline_mode<synchronous>, transform_indices = @transform_16, window_bounds = array<i64: 1, 32>}, {pipeline_mode = #tpu.pipeline_mode<synchronous>, transform_indices = @transform_17, window_bounds = array<i64: 32, 64>}, {pipeline_mode = #tpu.pipeline_mode<synchronous>, transform_indices = @transform_18, window_bounds = array<i64: 1, 64>}, {pipeline_mode = #tpu.pipeline_mode<synchronous>, transform_indices = @transform_19, window_bounds = array<i64: 64, 32>}, {pipeline_mode = #tpu.pipeline_mode<synchronous>, transform_indices = @transform_20, window_bounds = array<i64: 1, 32>}, {pipeline_mode = #tpu.pipeline_mode<synchronous>, transform_indices = @transform_21, window_bounds = array<i64: 1, 32>}, {pipeline_mode = #tpu.pipeline_mode<synchronous>, transform_indices = @transform_22, window_bounds = array<i64: 1, 32>}, {transform_indices = @transform_23, window_bounds = array<i64: 1, 8, 32>}]} {
    %c0 = arith.constant 0 : index
    %c0_0 = arith.constant 0 : index
    %c0_1 = arith.constant 0 : index
    %0 = vector.load %arg1[%c0, %c0_0, %c0_1] : memref<1x8x32xf32, #tpu.memory_space<vmem>>, vector<1x8x32xf32>
    %1 = vector.shape_cast %0 : vector<1x8x32xf32> to vector<8x32xf32>
    %c0_2 = arith.constant 0 : index
    %c0_3 = arith.constant 0 : index
    %c0_4 = arith.constant 0 : index
    %2 = vector.load %arg2[%c0_2, %c0_3, %c0_4] : memref<1x8x32xf32, #tpu.memory_space<vmem>>, vector<1x8x32xf32>
    %3 = vector.shape_cast %2 : vector<1x8x32xf32> to vector<8x32xf32>
    %c0_5 = arith.constant 0 : index
    %c0_6 = arith.constant 0 : index
    %4 = vector.load %arg3[%c0_5, %c0_6] : memref<8x8xf32, #tpu.memory_space<vmem>>, vector<8x8xf32>
    %cst = arith.constant 0.000000e+00 : f32
    %5 = vector.broadcast %cst : f32 to vector<8x8xf32>
    %6 = arith.cmpf one, %4, %5 : vector<8x8xf32>
    %cst_7 = arith.constant 0.000000e+00 : f32
    %cst_8 = arith.constant -1.000000e+09 : f32
    %7 = vector.broadcast %cst_7 : f32 to vector<8x8xf32>
    %8 = vector.broadcast %cst_8 : f32 to vector<8x8xf32>
    %9 = arith.select %6, %7, %8 : vector<8x8xi1>, vector<8x8xf32>
    %c0_9 = arith.constant 0 : index
    %c0_10 = arith.constant 0 : index
    %10 = vector.load %arg4[%c0_9, %c0_10] : memref<32x96xf32, #tpu.memory_space<vmem>>, vector<32x96xf32>
    %cst_11 = arith.constant dense<0.000000e+00> : vector<8x96xf32>
    %11 = tpu.matmul %1, %10, %cst_11 {dimension_numbers = #tpu.dot_dimension_numbers<[1], [0], [0], [1], [0, 0, 1, 1], [], []>} : vector<8x32xf32>, vector<32x96xf32>, vector<8x96xf32> -> vector<8x96xf32>
    %c0_12 = arith.constant 0 : index
    %c0_13 = arith.constant 0 : index
    %12 = vector.load %arg5[%c0_12, %c0_13] : memref<1x96xf32, #tpu.memory_space<vmem>>, vector<1x96xf32>
    %13 = vector.broadcast %12 : vector<1x96xf32> to vector<8x96xf32>
    %14 = arith.addf %11, %13 : vector<8x96xf32>
    %15 = vector.extract_strided_slice %14 {offsets = [0, 0], sizes = [8, 32], strides = [1, 1]} : vector<8x96xf32> to vector<8x32xf32>
    %16 = vector.extract_strided_slice %14 {offsets = [0, 32], sizes = [8, 32], strides = [1, 1]} : vector<8x96xf32> to vector<8x32xf32>
    %17 = vector.extract_strided_slice %14 {offsets = [0, 64], sizes = [8, 32], strides = [1, 1]} : vector<8x96xf32> to vector<8x32xf32>
    %18 = vector.extract_strided_slice %15 {offsets = [0, 0], sizes = [8, 8], strides = [1, 1]} : vector<8x32xf32> to vector<8x8xf32>
    %19 = vector.extract_strided_slice %16 {offsets = [0, 0], sizes = [8, 8], strides = [1, 1]} : vector<8x32xf32> to vector<8x8xf32>
    %cst_14 = arith.constant dense<0.000000e+00> : vector<8x8xf32>
    %20 = tpu.matmul %18, %19, %cst_14 {dimension_numbers = #tpu.dot_dimension_numbers<[1], [1], [0], [0], [0, 0, 1, 0], [], []>} : vector<8x8xf32>, vector<8x8xf32>, vector<8x8xf32> -> vector<8x8xf32>
    %cst_15 = arith.constant 0.353553385 : f32
    %21 = vector.broadcast %cst_15 : f32 to vector<8x8xf32>
    %22 = arith.mulf %20, %21 : vector<8x8xf32>
    %23 = arith.addf %22, %9 : vector<8x8xf32>
    %cst_16 = arith.constant dense<0xFF800000> : vector<8xf32>
    %24 = vector.multi_reduction <maximumf>, %23, %cst_16 [1] : vector<8x8xf32> to vector<8xf32>
    %25 = vector.shape_cast %24 : vector<8xf32> to vector<8x1xf32>
    %26 = vector.broadcast %25 : vector<8x1xf32> to vector<8x8xf32>
    %27 = arith.subf %23, %26 : vector<8x8xf32>
    %28 = math.exp %27 : vector<8x8xf32>
    %cst_17 = arith.constant dense<0.000000e+00> : vector<8xf32>
    %29 = vector.multi_reduction <add>, %28, %cst_17 [1] : vector<8x8xf32> to vector<8xf32>
    %30 = vector.shape_cast %29 : vector<8xf32> to vector<8x1xf32>
    %31 = tpu.reciprocal %30 {approx = true} : vector<8x1xf32> -> vector<8x1xf32>
    %32 = vector.broadcast %31 : vector<8x1xf32> to vector<8x8xf32>
    %33 = arith.mulf %28, %32 : vector<8x8xf32>
    %34 = vector.extract_strided_slice %17 {offsets = [0, 0], sizes = [8, 8], strides = [1, 1]} : vector<8x32xf32> to vector<8x8xf32>
    %cst_18 = arith.constant dense<0.000000e+00> : vector<8x8xf32>
    %35 = tpu.matmul %33, %34, %cst_18 {dimension_numbers = #tpu.dot_dimension_numbers<[1], [0], [0], [1], [0, 0, 1, 1], [], []>} : vector<8x8xf32>, vector<8x8xf32>, vector<8x8xf32> -> vector<8x8xf32>
    %36 = vector.extract_strided_slice %15 {offsets = [0, 8], sizes = [8, 8], strides = [1, 1]} : vector<8x32xf32> to vector<8x8xf32>
    %37 = vector.extract_strided_slice %16 {offsets = [0, 8], sizes = [8, 8], strides = [1, 1]} : vector<8x32xf32> to vector<8x8xf32>
    %cst_19 = arith.constant dense<0.000000e+00> : vector<8x8xf32>
    %38 = tpu.matmul %36, %37, %cst_19 {dimension_numbers = #tpu.dot_dimension_numbers<[1], [1], [0], [0], [0, 0, 1, 0], [], []>} : vector<8x8xf32>, vector<8x8xf32>, vector<8x8xf32> -> vector<8x8xf32>
    %cst_20 = arith.constant 0.353553385 : f32
    %39 = vector.broadcast %cst_20 : f32 to vector<8x8xf32>
    %40 = arith.mulf %38, %39 : vector<8x8xf32>
    %41 = arith.addf %40, %9 : vector<8x8xf32>
    %cst_21 = arith.constant dense<0xFF800000> : vector<8xf32>
    %42 = vector.multi_reduction <maximumf>, %41, %cst_21 [1] : vector<8x8xf32> to vector<8xf32>
    %43 = vector.shape_cast %42 : vector<8xf32> to vector<8x1xf32>
    %44 = vector.broadcast %43 : vector<8x1xf32> to vector<8x8xf32>
    %45 = arith.subf %41, %44 : vector<8x8xf32>
    %46 = math.exp %45 : vector<8x8xf32>
    %cst_22 = arith.constant dense<0.000000e+00> : vector<8xf32>
    %47 = vector.multi_reduction <add>, %46, %cst_22 [1] : vector<8x8xf32> to vector<8xf32>
    %48 = vector.shape_cast %47 : vector<8xf32> to vector<8x1xf32>
    %49 = tpu.reciprocal %48 {approx = true} : vector<8x1xf32> -> vector<8x1xf32>
    %50 = vector.broadcast %49 : vector<8x1xf32> to vector<8x8xf32>
    %51 = arith.mulf %46, %50 : vector<8x8xf32>
    %52 = vector.extract_strided_slice %17 {offsets = [0, 8], sizes = [8, 8], strides = [1, 1]} : vector<8x32xf32> to vector<8x8xf32>
    %cst_23 = arith.constant dense<0.000000e+00> : vector<8x8xf32>
    %53 = tpu.matmul %51, %52, %cst_23 {dimension_numbers = #tpu.dot_dimension_numbers<[1], [0], [0], [1], [0, 0, 1, 1], [], []>} : vector<8x8xf32>, vector<8x8xf32>, vector<8x8xf32> -> vector<8x8xf32>
    %54 = vector.extract_strided_slice %15 {offsets = [0, 16], sizes = [8, 8], strides = [1, 1]} : vector<8x32xf32> to vector<8x8xf32>
    %55 = vector.extract_strided_slice %16 {offsets = [0, 16], sizes = [8, 8], strides = [1, 1]} : vector<8x32xf32> to vector<8x8xf32>
    %cst_24 = arith.constant dense<0.000000e+00> : vector<8x8xf32>
    %56 = tpu.matmul %54, %55, %cst_24 {dimension_numbers = #tpu.dot_dimension_numbers<[1], [1], [0], [0], [0, 0, 1, 0], [], []>} : vector<8x8xf32>, vector<8x8xf32>, vector<8x8xf32> -> vector<8x8xf32>
    %cst_25 = arith.constant 0.353553385 : f32
    %57 = vector.broadcast %cst_25 : f32 to vector<8x8xf32>
    %58 = arith.mulf %56, %57 : vector<8x8xf32>
    %59 = arith.addf %58, %9 : vector<8x8xf32>
    %cst_26 = arith.constant dense<0xFF800000> : vector<8xf32>
    %60 = vector.multi_reduction <maximumf>, %59, %cst_26 [1] : vector<8x8xf32> to vector<8xf32>
    %61 = vector.shape_cast %60 : vector<8xf32> to vector<8x1xf32>
    %62 = vector.broadcast %61 : vector<8x1xf32> to vector<8x8xf32>
    %63 = arith.subf %59, %62 : vector<8x8xf32>
    %64 = math.exp %63 : vector<8x8xf32>
    %cst_27 = arith.constant dense<0.000000e+00> : vector<8xf32>
    %65 = vector.multi_reduction <add>, %64, %cst_27 [1] : vector<8x8xf32> to vector<8xf32>
    %66 = vector.shape_cast %65 : vector<8xf32> to vector<8x1xf32>
    %67 = tpu.reciprocal %66 {approx = true} : vector<8x1xf32> -> vector<8x1xf32>
    %68 = vector.broadcast %67 : vector<8x1xf32> to vector<8x8xf32>
    %69 = arith.mulf %64, %68 : vector<8x8xf32>
    %70 = vector.extract_strided_slice %17 {offsets = [0, 16], sizes = [8, 8], strides = [1, 1]} : vector<8x32xf32> to vector<8x8xf32>
    %cst_28 = arith.constant dense<0.000000e+00> : vector<8x8xf32>
    %71 = tpu.matmul %69, %70, %cst_28 {dimension_numbers = #tpu.dot_dimension_numbers<[1], [0], [0], [1], [0, 0, 1, 1], [], []>} : vector<8x8xf32>, vector<8x8xf32>, vector<8x8xf32> -> vector<8x8xf32>
    %72 = vector.extract_strided_slice %15 {offsets = [0, 24], sizes = [8, 8], strides = [1, 1]} : vector<8x32xf32> to vector<8x8xf32>
    %73 = vector.extract_strided_slice %16 {offsets = [0, 24], sizes = [8, 8], strides = [1, 1]} : vector<8x32xf32> to vector<8x8xf32>
    %cst_29 = arith.constant dense<0.000000e+00> : vector<8x8xf32>
    %74 = tpu.matmul %72, %73, %cst_29 {dimension_numbers = #tpu.dot_dimension_numbers<[1], [1], [0], [0], [0, 0, 1, 0], [], []>} : vector<8x8xf32>, vector<8x8xf32>, vector<8x8xf32> -> vector<8x8xf32>
    %cst_30 = arith.constant 0.353553385 : f32
    %75 = vector.broadcast %cst_30 : f32 to vector<8x8xf32>
    %76 = arith.mulf %74, %75 : vector<8x8xf32>
    %77 = arith.addf %76, %9 : vector<8x8xf32>
    %cst_31 = arith.constant dense<0xFF800000> : vector<8xf32>
    %78 = vector.multi_reduction <maximumf>, %77, %cst_31 [1] : vector<8x8xf32> to vector<8xf32>
    %79 = vector.shape_cast %78 : vector<8xf32> to vector<8x1xf32>
    %80 = vector.broadcast %79 : vector<8x1xf32> to vector<8x8xf32>
    %81 = arith.subf %77, %80 : vector<8x8xf32>
    %82 = math.exp %81 : vector<8x8xf32>
    %cst_32 = arith.constant dense<0.000000e+00> : vector<8xf32>
    %83 = vector.multi_reduction <add>, %82, %cst_32 [1] : vector<8x8xf32> to vector<8xf32>
    %84 = vector.shape_cast %83 : vector<8xf32> to vector<8x1xf32>
    %85 = tpu.reciprocal %84 {approx = true} : vector<8x1xf32> -> vector<8x1xf32>
    %86 = vector.broadcast %85 : vector<8x1xf32> to vector<8x8xf32>
    %87 = arith.mulf %82, %86 : vector<8x8xf32>
    %88 = vector.extract_strided_slice %17 {offsets = [0, 24], sizes = [8, 8], strides = [1, 1]} : vector<8x32xf32> to vector<8x8xf32>
    %cst_33 = arith.constant dense<0.000000e+00> : vector<8x8xf32>
    %89 = tpu.matmul %87, %88, %cst_33 {dimension_numbers = #tpu.dot_dimension_numbers<[1], [0], [0], [1], [0, 0, 1, 1], [], []>} : vector<8x8xf32>, vector<8x8xf32>, vector<8x8xf32> -> vector<8x8xf32>
    %90 = tpu.concatenate %35, %53, %71, %89 in 1 : vector<8x8xf32>, vector<8x8xf32>, vector<8x8xf32>, vector<8x8xf32> -> vector<8x32xf32>
    %c0_34 = arith.constant 0 : index
    %c0_35 = arith.constant 0 : index
    %91 = vector.load %arg6[%c0_34, %c0_35] : memref<32x32xf32, #tpu.memory_space<vmem>>, vector<32x32xf32>
    %cst_36 = arith.constant dense<0.000000e+00> : vector<8x32xf32>
    %92 = tpu.matmul %90, %91, %cst_36 {dimension_numbers = #tpu.dot_dimension_numbers<[1], [0], [0], [1], [0, 0, 1, 1], [], []>} : vector<8x32xf32>, vector<32x32xf32>, vector<8x32xf32> -> vector<8x32xf32>
    %c0_37 = arith.constant 0 : index
    %c0_38 = arith.constant 0 : index
    %93 = vector.load %arg7[%c0_37, %c0_38] : memref<1x32xf32, #tpu.memory_space<vmem>>, vector<1x32xf32>
    %94 = vector.broadcast %93 : vector<1x32xf32> to vector<8x32xf32>
    %95 = arith.addf %92, %94 : vector<8x32xf32>
    %96 = arith.addf %1, %95 : vector<8x32xf32>
    %c0_39 = arith.constant 0 : index
    %c0_40 = arith.constant 0 : index
    %97 = vector.load %arg8[%c0_39, %c0_40] : memref<1x32xf32, #tpu.memory_space<vmem>>, vector<1x32xf32>
    %c0_41 = arith.constant 0 : index
    %c0_42 = arith.constant 0 : index
    %98 = vector.load %arg9[%c0_41, %c0_42] : memref<1x32xf32, #tpu.memory_space<vmem>>, vector<1x32xf32>
    %cst_43 = arith.constant dense<0.000000e+00> : vector<8xf32>
    %99 = vector.multi_reduction <add>, %96, %cst_43 [1] : vector<8x32xf32> to vector<8xf32>
    %100 = vector.shape_cast %99 : vector<8xf32> to vector<8x1xf32>
    %cst_44 = arith.constant 3.200000e+01 : f32
    %101 = vector.broadcast %cst_44 : f32 to vector<8x1xf32>
    %102 = arith.divf %100, %101 : vector<8x1xf32>
    %103 = vector.broadcast %102 : vector<8x1xf32> to vector<8x32xf32>
    %104 = arith.subf %96, %103 : vector<8x32xf32>
    %105 = arith.mulf %104, %104 : vector<8x32xf32>
    %cst_45 = arith.constant dense<0.000000e+00> : vector<8xf32>
    %106 = vector.multi_reduction <add>, %105, %cst_45 [1] : vector<8x32xf32> to vector<8xf32>
    %107 = vector.shape_cast %106 : vector<8xf32> to vector<8x1xf32>
    %cst_46 = arith.constant 3.200000e+01 : f32
    %108 = vector.broadcast %cst_46 : f32 to vector<8x1xf32>
    %109 = arith.divf %107, %108 : vector<8x1xf32>
    %110 = vector.broadcast %102 : vector<8x1xf32> to vector<8x32xf32>
    %111 = arith.subf %96, %110 : vector<8x32xf32>
    %cst_47 = arith.constant 9.99999974E-6 : f32
    %112 = vector.broadcast %cst_47 : f32 to vector<8x1xf32>
    %113 = arith.addf %109, %112 : vector<8x1xf32>
    %114 = math.rsqrt %113 : vector<8x1xf32>
    %115 = vector.broadcast %114 : vector<8x1xf32> to vector<8x32xf32>
    %116 = arith.mulf %111, %115 : vector<8x32xf32>
    %117 = vector.broadcast %97 : vector<1x32xf32> to vector<8x32xf32>
    %118 = arith.mulf %116, %117 : vector<8x32xf32>
    %119 = vector.broadcast %98 : vector<1x32xf32> to vector<8x32xf32>
    %120 = arith.addf %118, %119 : vector<8x32xf32>
    %c0_48 = arith.constant 0 : index
    %c0_49 = arith.constant 0 : index
    %121 = vector.load %arg10[%c0_48, %c0_49] : memref<32x32xf32, #tpu.memory_space<vmem>>, vector<32x32xf32>
    %cst_50 = arith.constant dense<0.000000e+00> : vector<8x32xf32>
    %122 = tpu.matmul %120, %121, %cst_50 {dimension_numbers = #tpu.dot_dimension_numbers<[1], [0], [0], [1], [0, 0, 1, 1], [], []>} : vector<8x32xf32>, vector<32x32xf32>, vector<8x32xf32> -> vector<8x32xf32>
    %c0_51 = arith.constant 0 : index
    %c0_52 = arith.constant 0 : index
    %123 = vector.load %arg11[%c0_51, %c0_52] : memref<1x32xf32, #tpu.memory_space<vmem>>, vector<1x32xf32>
    %124 = vector.broadcast %123 : vector<1x32xf32> to vector<8x32xf32>
    %125 = arith.addf %122, %124 : vector<8x32xf32>
    %c0_53 = arith.constant 0 : index
    %c0_54 = arith.constant 0 : index
    %126 = vector.load %arg12[%c0_53, %c0_54] : memref<32x64xf32, #tpu.memory_space<vmem>>, vector<32x64xf32>
    %cst_55 = arith.constant dense<0.000000e+00> : vector<8x64xf32>
    %127 = tpu.matmul %3, %126, %cst_55 {dimension_numbers = #tpu.dot_dimension_numbers<[1], [0], [0], [1], [0, 0, 1, 1], [], []>} : vector<8x32xf32>, vector<32x64xf32>, vector<8x64xf32> -> vector<8x64xf32>
    %c0_56 = arith.constant 0 : index
    %c0_57 = arith.constant 0 : index
    %128 = vector.load %arg13[%c0_56, %c0_57] : memref<1x64xf32, #tpu.memory_space<vmem>>, vector<1x64xf32>
    %129 = vector.broadcast %128 : vector<1x64xf32> to vector<8x64xf32>
    %130 = arith.addf %127, %129 : vector<8x64xf32>
    %131 = vector.extract_strided_slice %130 {offsets = [0, 0], sizes = [8, 32], strides = [1, 1]} : vector<8x64xf32> to vector<8x32xf32>
    %132 = vector.extract_strided_slice %130 {offsets = [0, 32], sizes = [8, 32], strides = [1, 1]} : vector<8x64xf32> to vector<8x32xf32>
    %133 = vector.extract_strided_slice %125 {offsets = [0, 0], sizes = [8, 8], strides = [1, 1]} : vector<8x32xf32> to vector<8x8xf32>
    %134 = vector.extract_strided_slice %131 {offsets = [0, 0], sizes = [8, 8], strides = [1, 1]} : vector<8x32xf32> to vector<8x8xf32>
    %cst_58 = arith.constant dense<0.000000e+00> : vector<8x8xf32>
    %135 = tpu.matmul %133, %134, %cst_58 {dimension_numbers = #tpu.dot_dimension_numbers<[1], [1], [0], [0], [0, 0, 1, 0], [], []>} : vector<8x8xf32>, vector<8x8xf32>, vector<8x8xf32> -> vector<8x8xf32>
    %cst_59 = arith.constant 0.353553385 : f32
    %136 = vector.broadcast %cst_59 : f32 to vector<8x8xf32>
    %137 = arith.mulf %135, %136 : vector<8x8xf32>
    %cst_60 = arith.constant dense<0xFF800000> : vector<8xf32>
    %138 = vector.multi_reduction <maximumf>, %137, %cst_60 [1] : vector<8x8xf32> to vector<8xf32>
    %139 = vector.shape_cast %138 : vector<8xf32> to vector<8x1xf32>
    %140 = vector.broadcast %139 : vector<8x1xf32> to vector<8x8xf32>
    %141 = arith.subf %137, %140 : vector<8x8xf32>
    %142 = math.exp %141 : vector<8x8xf32>
    %cst_61 = arith.constant dense<0.000000e+00> : vector<8xf32>
    %143 = vector.multi_reduction <add>, %142, %cst_61 [1] : vector<8x8xf32> to vector<8xf32>
    %144 = vector.shape_cast %143 : vector<8xf32> to vector<8x1xf32>
    %145 = tpu.reciprocal %144 {approx = true} : vector<8x1xf32> -> vector<8x1xf32>
    %146 = vector.broadcast %145 : vector<8x1xf32> to vector<8x8xf32>
    %147 = arith.mulf %142, %146 : vector<8x8xf32>
    %148 = vector.extract_strided_slice %132 {offsets = [0, 0], sizes = [8, 8], strides = [1, 1]} : vector<8x32xf32> to vector<8x8xf32>
    %cst_62 = arith.constant dense<0.000000e+00> : vector<8x8xf32>
    %149 = tpu.matmul %147, %148, %cst_62 {dimension_numbers = #tpu.dot_dimension_numbers<[1], [0], [0], [1], [0, 0, 1, 1], [], []>} : vector<8x8xf32>, vector<8x8xf32>, vector<8x8xf32> -> vector<8x8xf32>
    %150 = vector.extract_strided_slice %125 {offsets = [0, 8], sizes = [8, 8], strides = [1, 1]} : vector<8x32xf32> to vector<8x8xf32>
    %151 = vector.extract_strided_slice %131 {offsets = [0, 8], sizes = [8, 8], strides = [1, 1]} : vector<8x32xf32> to vector<8x8xf32>
    %cst_63 = arith.constant dense<0.000000e+00> : vector<8x8xf32>
    %152 = tpu.matmul %150, %151, %cst_63 {dimension_numbers = #tpu.dot_dimension_numbers<[1], [1], [0], [0], [0, 0, 1, 0], [], []>} : vector<8x8xf32>, vector<8x8xf32>, vector<8x8xf32> -> vector<8x8xf32>
    %cst_64 = arith.constant 0.353553385 : f32
    %153 = vector.broadcast %cst_64 : f32 to vector<8x8xf32>
    %154 = arith.mulf %152, %153 : vector<8x8xf32>
    %cst_65 = arith.constant dense<0xFF800000> : vector<8xf32>
    %155 = vector.multi_reduction <maximumf>, %154, %cst_65 [1] : vector<8x8xf32> to vector<8xf32>
    %156 = vector.shape_cast %155 : vector<8xf32> to vector<8x1xf32>
    %157 = vector.broadcast %156 : vector<8x1xf32> to vector<8x8xf32>
    %158 = arith.subf %154, %157 : vector<8x8xf32>
    %159 = math.exp %158 : vector<8x8xf32>
    %cst_66 = arith.constant dense<0.000000e+00> : vector<8xf32>
    %160 = vector.multi_reduction <add>, %159, %cst_66 [1] : vector<8x8xf32> to vector<8xf32>
    %161 = vector.shape_cast %160 : vector<8xf32> to vector<8x1xf32>
    %162 = tpu.reciprocal %161 {approx = true} : vector<8x1xf32> -> vector<8x1xf32>
    %163 = vector.broadcast %162 : vector<8x1xf32> to vector<8x8xf32>
    %164 = arith.mulf %159, %163 : vector<8x8xf32>
    %165 = vector.extract_strided_slice %132 {offsets = [0, 8], sizes = [8, 8], strides = [1, 1]} : vector<8x32xf32> to vector<8x8xf32>
    %cst_67 = arith.constant dense<0.000000e+00> : vector<8x8xf32>
    %166 = tpu.matmul %164, %165, %cst_67 {dimension_numbers = #tpu.dot_dimension_numbers<[1], [0], [0], [1], [0, 0, 1, 1], [], []>} : vector<8x8xf32>, vector<8x8xf32>, vector<8x8xf32> -> vector<8x8xf32>
    %167 = vector.extract_strided_slice %125 {offsets = [0, 16], sizes = [8, 8], strides = [1, 1]} : vector<8x32xf32> to vector<8x8xf32>
    %168 = vector.extract_strided_slice %131 {offsets = [0, 16], sizes = [8, 8], strides = [1, 1]} : vector<8x32xf32> to vector<8x8xf32>
    %cst_68 = arith.constant dense<0.000000e+00> : vector<8x8xf32>
    %169 = tpu.matmul %167, %168, %cst_68 {dimension_numbers = #tpu.dot_dimension_numbers<[1], [1], [0], [0], [0, 0, 1, 0], [], []>} : vector<8x8xf32>, vector<8x8xf32>, vector<8x8xf32> -> vector<8x8xf32>
    %cst_69 = arith.constant 0.353553385 : f32
    %170 = vector.broadcast %cst_69 : f32 to vector<8x8xf32>
    %171 = arith.mulf %169, %170 : vector<8x8xf32>
    %cst_70 = arith.constant dense<0xFF800000> : vector<8xf32>
    %172 = vector.multi_reduction <maximumf>, %171, %cst_70 [1] : vector<8x8xf32> to vector<8xf32>
    %173 = vector.shape_cast %172 : vector<8xf32> to vector<8x1xf32>
    %174 = vector.broadcast %173 : vector<8x1xf32> to vector<8x8xf32>
    %175 = arith.subf %171, %174 : vector<8x8xf32>
    %176 = math.exp %175 : vector<8x8xf32>
    %cst_71 = arith.constant dense<0.000000e+00> : vector<8xf32>
    %177 = vector.multi_reduction <add>, %176, %cst_71 [1] : vector<8x8xf32> to vector<8xf32>
    %178 = vector.shape_cast %177 : vector<8xf32> to vector<8x1xf32>
    %179 = tpu.reciprocal %178 {approx = true} : vector<8x1xf32> -> vector<8x1xf32>
    %180 = vector.broadcast %179 : vector<8x1xf32> to vector<8x8xf32>
    %181 = arith.mulf %176, %180 : vector<8x8xf32>
    %182 = vector.extract_strided_slice %132 {offsets = [0, 16], sizes = [8, 8], strides = [1, 1]} : vector<8x32xf32> to vector<8x8xf32>
    %cst_72 = arith.constant dense<0.000000e+00> : vector<8x8xf32>
    %183 = tpu.matmul %181, %182, %cst_72 {dimension_numbers = #tpu.dot_dimension_numbers<[1], [0], [0], [1], [0, 0, 1, 1], [], []>} : vector<8x8xf32>, vector<8x8xf32>, vector<8x8xf32> -> vector<8x8xf32>
    %184 = vector.extract_strided_slice %125 {offsets = [0, 24], sizes = [8, 8], strides = [1, 1]} : vector<8x32xf32> to vector<8x8xf32>
    %185 = vector.extract_strided_slice %131 {offsets = [0, 24], sizes = [8, 8], strides = [1, 1]} : vector<8x32xf32> to vector<8x8xf32>
    %cst_73 = arith.constant dense<0.000000e+00> : vector<8x8xf32>
    %186 = tpu.matmul %184, %185, %cst_73 {dimension_numbers = #tpu.dot_dimension_numbers<[1], [1], [0], [0], [0, 0, 1, 0], [], []>} : vector<8x8xf32>, vector<8x8xf32>, vector<8x8xf32> -> vector<8x8xf32>
    %cst_74 = arith.constant 0.353553385 : f32
    %187 = vector.broadcast %cst_74 : f32 to vector<8x8xf32>
    %188 = arith.mulf %186, %187 : vector<8x8xf32>
    %cst_75 = arith.constant dense<0xFF800000> : vector<8xf32>
    %189 = vector.multi_reduction <maximumf>, %188, %cst_75 [1] : vector<8x8xf32> to vector<8xf32>
    %190 = vector.shape_cast %189 : vector<8xf32> to vector<8x1xf32>
    %191 = vector.broadcast %190 : vector<8x1xf32> to vector<8x8xf32>
    %192 = arith.subf %188, %191 : vector<8x8xf32>
    %193 = math.exp %192 : vector<8x8xf32>
    %cst_76 = arith.constant dense<0.000000e+00> : vector<8xf32>
    %194 = vector.multi_reduction <add>, %193, %cst_76 [1] : vector<8x8xf32> to vector<8xf32>
    %195 = vector.shape_cast %194 : vector<8xf32> to vector<8x1xf32>
    %196 = tpu.reciprocal %195 {approx = true} : vector<8x1xf32> -> vector<8x1xf32>
    %197 = vector.broadcast %196 : vector<8x1xf32> to vector<8x8xf32>
    %198 = arith.mulf %193, %197 : vector<8x8xf32>
    %199 = vector.extract_strided_slice %132 {offsets = [0, 24], sizes = [8, 8], strides = [1, 1]} : vector<8x32xf32> to vector<8x8xf32>
    %cst_77 = arith.constant dense<0.000000e+00> : vector<8x8xf32>
    %200 = tpu.matmul %198, %199, %cst_77 {dimension_numbers = #tpu.dot_dimension_numbers<[1], [0], [0], [1], [0, 0, 1, 1], [], []>} : vector<8x8xf32>, vector<8x8xf32>, vector<8x8xf32> -> vector<8x8xf32>
    %201 = tpu.concatenate %149, %166, %183, %200 in 1 : vector<8x8xf32>, vector<8x8xf32>, vector<8x8xf32>, vector<8x8xf32> -> vector<8x32xf32>
    %c0_78 = arith.constant 0 : index
    %c0_79 = arith.constant 0 : index
    %202 = vector.load %arg14[%c0_78, %c0_79] : memref<32x32xf32, #tpu.memory_space<vmem>>, vector<32x32xf32>
    %cst_80 = arith.constant dense<0.000000e+00> : vector<8x32xf32>
    %203 = tpu.matmul %201, %202, %cst_80 {dimension_numbers = #tpu.dot_dimension_numbers<[1], [0], [0], [1], [0, 0, 1, 1], [], []>} : vector<8x32xf32>, vector<32x32xf32>, vector<8x32xf32> -> vector<8x32xf32>
    %c0_81 = arith.constant 0 : index
    %c0_82 = arith.constant 0 : index
    %204 = vector.load %arg15[%c0_81, %c0_82] : memref<1x32xf32, #tpu.memory_space<vmem>>, vector<1x32xf32>
    %205 = vector.broadcast %204 : vector<1x32xf32> to vector<8x32xf32>
    %206 = arith.addf %203, %205 : vector<8x32xf32>
    %207 = arith.addf %120, %206 : vector<8x32xf32>
    %c0_83 = arith.constant 0 : index
    %c0_84 = arith.constant 0 : index
    %208 = vector.load %arg16[%c0_83, %c0_84] : memref<1x32xf32, #tpu.memory_space<vmem>>, vector<1x32xf32>
    %c0_85 = arith.constant 0 : index
    %c0_86 = arith.constant 0 : index
    %209 = vector.load %arg17[%c0_85, %c0_86] : memref<1x32xf32, #tpu.memory_space<vmem>>, vector<1x32xf32>
    %cst_87 = arith.constant dense<0.000000e+00> : vector<8xf32>
    %210 = vector.multi_reduction <add>, %207, %cst_87 [1] : vector<8x32xf32> to vector<8xf32>
    %211 = vector.shape_cast %210 : vector<8xf32> to vector<8x1xf32>
    %cst_88 = arith.constant 3.200000e+01 : f32
    %212 = vector.broadcast %cst_88 : f32 to vector<8x1xf32>
    %213 = arith.divf %211, %212 : vector<8x1xf32>
    %214 = vector.broadcast %213 : vector<8x1xf32> to vector<8x32xf32>
    %215 = arith.subf %207, %214 : vector<8x32xf32>
    %216 = arith.mulf %215, %215 : vector<8x32xf32>
    %cst_89 = arith.constant dense<0.000000e+00> : vector<8xf32>
    %217 = vector.multi_reduction <add>, %216, %cst_89 [1] : vector<8x32xf32> to vector<8xf32>
    %218 = vector.shape_cast %217 : vector<8xf32> to vector<8x1xf32>
    %cst_90 = arith.constant 3.200000e+01 : f32
    %219 = vector.broadcast %cst_90 : f32 to vector<8x1xf32>
    %220 = arith.divf %218, %219 : vector<8x1xf32>
    %221 = vector.broadcast %213 : vector<8x1xf32> to vector<8x32xf32>
    %222 = arith.subf %207, %221 : vector<8x32xf32>
    %cst_91 = arith.constant 9.99999974E-6 : f32
    %223 = vector.broadcast %cst_91 : f32 to vector<8x1xf32>
    %224 = arith.addf %220, %223 : vector<8x1xf32>
    %225 = math.rsqrt %224 : vector<8x1xf32>
    %226 = vector.broadcast %225 : vector<8x1xf32> to vector<8x32xf32>
    %227 = arith.mulf %222, %226 : vector<8x32xf32>
    %228 = vector.broadcast %208 : vector<1x32xf32> to vector<8x32xf32>
    %229 = arith.mulf %227, %228 : vector<8x32xf32>
    %230 = vector.broadcast %209 : vector<1x32xf32> to vector<8x32xf32>
    %231 = arith.addf %229, %230 : vector<8x32xf32>
    %c0_92 = arith.constant 0 : index
    %c0_93 = arith.constant 0 : index
    %232 = vector.load %arg18[%c0_92, %c0_93] : memref<32x64xf32, #tpu.memory_space<vmem>>, vector<32x64xf32>
    %cst_94 = arith.constant dense<0.000000e+00> : vector<8x64xf32>
    %233 = tpu.matmul %231, %232, %cst_94 {dimension_numbers = #tpu.dot_dimension_numbers<[1], [0], [0], [1], [0, 0, 1, 1], [], []>} : vector<8x32xf32>, vector<32x64xf32>, vector<8x64xf32> -> vector<8x64xf32>
    %c0_95 = arith.constant 0 : index
    %c0_96 = arith.constant 0 : index
    %234 = vector.load %arg19[%c0_95, %c0_96] : memref<1x64xf32, #tpu.memory_space<vmem>>, vector<1x64xf32>
    %235 = vector.broadcast %234 : vector<1x64xf32> to vector<8x64xf32>
    %236 = arith.addf %233, %235 : vector<8x64xf32>
    %cst_97 = arith.constant 0.000000e+00 : f32
    %237 = vector.broadcast %cst_97 : f32 to vector<8x64xf32>
    %238 = arith.maximumf %236, %237 : vector<8x64xf32>
    %c0_98 = arith.constant 0 : index
    %c0_99 = arith.constant 0 : index
    %239 = vector.load %arg20[%c0_98, %c0_99] : memref<64x32xf32, #tpu.memory_space<vmem>>, vector<64x32xf32>
    %cst_100 = arith.constant dense<0.000000e+00> : vector<8x32xf32>
    %240 = tpu.matmul %238, %239, %cst_100 {dimension_numbers = #tpu.dot_dimension_numbers<[1], [0], [0], [1], [0, 0, 1, 1], [], []>} : vector<8x64xf32>, vector<64x32xf32>, vector<8x32xf32> -> vector<8x32xf32>
    %c0_101 = arith.constant 0 : index
    %c0_102 = arith.constant 0 : index
    %241 = vector.load %arg21[%c0_101, %c0_102] : memref<1x32xf32, #tpu.memory_space<vmem>>, vector<1x32xf32>
    %242 = vector.broadcast %241 : vector<1x32xf32> to vector<8x32xf32>
    %243 = arith.addf %240, %242 : vector<8x32xf32>
    %244 = arith.addf %231, %243 : vector<8x32xf32>
    %c0_103 = arith.constant 0 : index
    %c0_104 = arith.constant 0 : index
    %245 = vector.load %arg22[%c0_103, %c0_104] : memref<1x32xf32, #tpu.memory_space<vmem>>, vector<1x32xf32>
    %c0_105 = arith.constant 0 : index
    %c0_106 = arith.constant 0 : index
    %246 = vector.load %arg23[%c0_105, %c0_106] : memref<1x32xf32, #tpu.memory_space<vmem>>, vector<1x32xf32>
    %cst_107 = arith.constant dense<0.000000e+00> : vector<8xf32>
    %247 = vector.multi_reduction <add>, %244, %cst_107 [1] : vector<8x32xf32> to vector<8xf32>
    %248 = vector.shape_cast %247 : vector<8xf32> to vector<8x1xf32>
    %cst_108 = arith.constant 3.200000e+01 : f32
    %249 = vector.broadcast %cst_108 : f32 to vector<8x1xf32>
    %250 = arith.divf %248, %249 : vector<8x1xf32>
    %251 = vector.broadcast %250 : vector<8x1xf32> to vector<8x32xf32>
    %252 = arith.subf %244, %251 : vector<8x32xf32>
    %253 = arith.mulf %252, %252 : vector<8x32xf32>
    %cst_109 = arith.constant dense<0.000000e+00> : vector<8xf32>
    %254 = vector.multi_reduction <add>, %253, %cst_109 [1] : vector<8x32xf32> to vector<8xf32>
    %255 = vector.shape_cast %254 : vector<8xf32> to vector<8x1xf32>
    %cst_110 = arith.constant 3.200000e+01 : f32
    %256 = vector.broadcast %cst_110 : f32 to vector<8x1xf32>
    %257 = arith.divf %255, %256 : vector<8x1xf32>
    %258 = vector.broadcast %250 : vector<8x1xf32> to vector<8x32xf32>
    %259 = arith.subf %244, %258 : vector<8x32xf32>
    %cst_111 = arith.constant 9.99999974E-6 : f32
    %260 = vector.broadcast %cst_111 : f32 to vector<8x1xf32>
    %261 = arith.addf %257, %260 : vector<8x1xf32>
    %262 = math.rsqrt %261 : vector<8x1xf32>
    %263 = vector.broadcast %262 : vector<8x1xf32> to vector<8x32xf32>
    %264 = arith.mulf %259, %263 : vector<8x32xf32>
    %265 = vector.broadcast %245 : vector<1x32xf32> to vector<8x32xf32>
    %266 = arith.mulf %264, %265 : vector<8x32xf32>
    %267 = vector.broadcast %246 : vector<1x32xf32> to vector<8x32xf32>
    %268 = arith.addf %266, %267 : vector<8x32xf32>
    %c0_112 = arith.constant 0 : index
    %c0_113 = arith.constant 0 : index
    %c0_114 = arith.constant 0 : index
    %269 = vector.load %arg24[%c0_112, %c0_113, %c0_114] : memref<1x8x32xf32, #tpu.memory_space<vmem>>, vector<1x8x32xf32>
    %270 = vector.shape_cast %269 : vector<1x8x32xf32> to vector<8x32xf32>
    %271 = vector.shape_cast %268 : vector<8x32xf32> to vector<1x8x32xf32>
    tpu.vector_store %arg24[%c0_112, %c0_113, %c0_114], %271 {strides = array<i32>} : memref<1x8x32xf32, #tpu.memory_space<vmem>>, vector<1x8x32xf32>,
    return
  }
  func.func @transform_0(%arg0: i32) -> (i32, i32, i32) {
    %c0_i32 = arith.constant 0 : i32
    %c0_i32_0 = arith.constant 0 : i32
    %c0_i32_1 = arith.constant 0 : i32
    return %arg0, %c0_i32, %c0_i32_0 : i32, i32, i32
  }
  func.func @transform_1(%arg0: i32) -> (i32, i32, i32) {
    %c0_i32 = arith.constant 0 : i32
    %c0_i32_0 = arith.constant 0 : i32
    %c0_i32_1 = arith.constant 0 : i32
    return %arg0, %c0_i32, %c0_i32_0 : i32, i32, i32
  }
  func.func @transform_2(%arg0: i32) -> (i32, i32) {
    %c0_i32 = arith.constant 0 : i32
    %c0_i32_0 = arith.constant 0 : i32
    %c0_i32_1 = arith.constant 0 : i32
    return %c0_i32, %c0_i32_0 : i32, i32
  }
  func.func @transform_3(%arg0: i32) -> (i32, i32) {
    %c0_i32 = arith.constant 0 : i32
    %c0_i32_0 = arith.constant 0 : i32
    %c0_i32_1 = arith.constant 0 : i32
    return %c0_i32, %c0_i32_0 : i32, i32
  }
  func.func @transform_4(%arg0: i32) -> (i32, i32) {
    %c0_i32 = arith.constant 0 : i32
    %c0_i32_0 = arith.constant 0 : i32
    %c0_i32_1 = arith.constant 0 : i32
    return %c0_i32, %c0_i32_0 : i32, i32
  }
  func.func @transform_5(%arg0: i32) -> (i32, i32) {
    %c0_i32 = arith.constant 0 : i32
    %c0_i32_0 = arith.constant 0 : i32
    %c0_i32_1 = arith.constant 0 : i32
    return %c0_i32, %c0_i32_0 : i32, i32
  }
  func.func @transform_6(%arg0: i32) -> (i32, i32) {
    %c0_i32 = arith.constant 0 : i32
    %c0_i32_0 = arith.constant 0 : i32
    %c0_i32_1 = arith.constant 0 : i32
    return %c0_i32, %c0_i32_0 : i32, i32
  }
  func.func @transform_7(%arg0: i32) -> (i32, i32) {
    %c0_i32 = arith.constant 0 : i32
    %c0_i32_0 = arith.constant 0 : i32
    %c0_i32_1 = arith.constant 0 : i32
    return %c0_i32, %c0_i32_0 : i32, i32
  }
  func.func @transform_8(%arg0: i32) -> (i32, i32) {
    %c0_i32 = arith.constant 0 : i32
    %c0_i32_0 = arith.constant 0 : i32
    %c0_i32_1 = arith.constant 0 : i32
    return %c0_i32, %c0_i32_0 : i32, i32
  }
  func.func @transform_9(%arg0: i32) -> (i32, i32) {
    %c0_i32 = arith.constant 0 : i32
    %c0_i32_0 = arith.constant 0 : i32
    %c0_i32_1 = arith.constant 0 : i32
    return %c0_i32, %c0_i32_0 : i32, i32
  }
  func.func @transform_10(%arg0: i32) -> (i32, i32) {
    %c0_i32 = arith.constant 0 : i32
    %c0_i32_0 = arith.constant 0 : i32
    %c0_i32_1 = arith.constant 0 : i32
    return %c0_i32, %c0_i32_0 : i32, i32
  }
  func.func @transform_11(%arg0: i32) -> (i32, i32) {
    %c0_i32 = arith.constant 0 : i32
    %c0_i32_0 = arith.constant 0 : i32
    %c0_i32_1 = arith.constant 0 : i32
    return %c0_i32, %c0_i32_0 : i32, i32
  }
  func.func @transform_12(%arg0: i32) -> (i32, i32) {
    %c0_i32 = arith.constant 0 : i32
    %c0_i32_0 = arith.constant 0 : i32
    %c0_i32_1 = arith.constant 0 : i32
    return %c0_i32, %c0_i32_0 : i32, i32
  }
  func.func @transform_13(%arg0: i32) -> (i32, i32) {
    %c0_i32 = arith.constant 0 : i32
    %c0_i32_0 = arith.constant 0 : i32
    %c0_i32_1 = arith.constant 0 : i32
    return %c0_i32, %c0_i32_0 : i32, i32
  }
  func.func @transform_14(%arg0: i32) -> (i32, i32) {
    %c0_i32 = arith.constant 0 : i32
    %c0_i32_0 = arith.constant 0 : i32
    %c0_i32_1 = arith.constant 0 : i32
    return %c0_i32, %c0_i32_0 : i32, i32
  }
  func.func @transform_15(%arg0: i32) -> (i32, i32) {
    %c0_i32 = arith.constant 0 : i32
    %c0_i32_0 = arith.constant 0 : i32
    %c0_i32_1 = arith.constant 0 : i32
    return %c0_i32, %c0_i32_0 : i32, i32
  }
  func.func @transform_16(%arg0: i32) -> (i32, i32) {
    %c0_i32 = arith.constant 0 : i32
    %c0_i32_0 = arith.constant 0 : i32
    %c0_i32_1 = arith.constant 0 : i32
    return %c0_i32, %c0_i32_0 : i32, i32
  }
  func.func @transform_17(%arg0: i32) -> (i32, i32) {
    %c0_i32 = arith.constant 0 : i32
    %c0_i32_0 = arith.constant 0 : i32
    %c0_i32_1 = arith.constant 0 : i32
    return %c0_i32, %c0_i32_0 : i32, i32
  }
  func.func @transform_18(%arg0: i32) -> (i32, i32) {
    %c0_i32 = arith.constant 0 : i32
    %c0_i32_0 = arith.constant 0 : i32
    %c0_i32_1 = arith.constant 0 : i32
    return %c0_i32, %c0_i32_0 : i32, i32
  }
  func.func @transform_19(%arg0: i32) -> (i32, i32) {
    %c0_i32 = arith.constant 0 : i32
    %c0_i32_0 = arith.constant 0 : i32
    %c0_i32_1 = arith.constant 0 : i32
    return %c0_i32, %c0_i32_0 : i32, i32
  }
  func.func @transform_20(%arg0: i32) -> (i32, i32) {
    %c0_i32 = arith.constant 0 : i32
    %c0_i32_0 = arith.constant 0 : i32
    %c0_i32_1 = arith.constant 0 : i32
    return %c0_i32, %c0_i32_0 : i32, i32
  }
  func.func @transform_21(%arg0: i32) -> (i32, i32) {
    %c0_i32 = arith.constant 0 : i32
    %c0_i32_0 = arith.constant 0 : i32
    %c0_i32_1 = arith.constant 0 : i32
    return %c0_i32, %c0_i32_0 : i32, i32
  }
  func.func @transform_22(%arg0: i32) -> (i32, i32) {
    %c0_i32 = arith.constant 0 : i32
    %c0_i32_0 = arith.constant 0 : i32
    %c0_i32_1 = arith.constant 0 : i32
    return %c0_i32, %c0_i32_0 : i32, i32
  }
  func.func @transform_23(%arg0: i32) -> (i32, i32, i32) {
    %c0_i32 = arith.constant 0 : i32
    %c0_i32_0 = arith.constant 0 : i32
    %c0_i32_1 = arith.constant 0 : i32
    return %arg0, %c0_i32, %c0_i32_0 : i32, i32, i32
  }
}

module attributes {stable_mosaic.version = 11 : i64} {
  func.func @_linear_softmax_kernel(%arg0: i32, %arg1: memref<16x32xf32, #tpu.memory_space<vmem>>, %arg2: memref<32x32xf32, #tpu.memory_space<vmem>>, %arg3: memref<1x32xf32, #tpu.memory_space<vmem>>, %arg4: memref<16x32xf32, #tpu.memory_space<vmem>>) attributes {dimension_semantics = [#tpu.dimension_semantics<parallel>], iteration_bounds = array<i64: 1>, scalar_prefetch = 0 : i64, scratch_operands = 0 : i64, tpu.core_type = #tpu.core_type<tc>, window_params = [{transform_indices = @transform_0, window_bounds = array<i64: 16, 32>}, {pipeline_mode = #tpu.pipeline_mode<synchronous>, transform_indices = @transform_1, window_bounds = array<i64: 32, 32>}, {pipeline_mode = #tpu.pipeline_mode<synchronous>, transform_indices = @transform_2, window_bounds = array<i64: 1, 32>}, {transform_indices = @transform_3, window_bounds = array<i64: 16, 32>}]} {
    %c0 = arith.constant 0 : index
    %c0_0 = arith.constant 0 : index
    %0 = vector.load %arg1[%c0, %c0_0] : memref<16x32xf32, #tpu.memory_space<vmem>>, vector<16x32xf32>
    %c0_1 = arith.constant 0 : index
    %c0_2 = arith.constant 0 : index
    %1 = vector.load %arg2[%c0_1, %c0_2] : memref<32x32xf32, #tpu.memory_space<vmem>>, vector<32x32xf32>
    %cst = arith.constant dense<0.000000e+00> : vector<16x32xf32>
    %2 = tpu.matmul %0, %1, %cst {dimension_numbers = #tpu.dot_dimension_numbers<[1], [0], [0], [1], [0, 0, 1, 1], [], []>} : vector<16x32xf32>, vector<32x32xf32>, vector<16x32xf32> -> vector<16x32xf32>
    %c0_3 = arith.constant 0 : index
    %c0_4 = arith.constant 0 : index
    %3 = vector.load %arg3[%c0_3, %c0_4] : memref<1x32xf32, #tpu.memory_space<vmem>>, vector<1x32xf32>
    %4 = vector.broadcast %3 : vector<1x32xf32> to vector<16x32xf32>
    %5 = arith.addf %2, %4 : vector<16x32xf32>
    %cst_5 = arith.constant dense<0xFF800000> : vector<16xf32>
    %6 = vector.multi_reduction <maximumf>, %5, %cst_5 [1] : vector<16x32xf32> to vector<16xf32>
    %7 = vector.shape_cast %6 : vector<16xf32> to vector<16x1xf32>
    %8 = vector.broadcast %7 : vector<16x1xf32> to vector<16x32xf32>
    %9 = arith.subf %5, %8 : vector<16x32xf32>
    %10 = math.exp %9 : vector<16x32xf32>
    %cst_6 = arith.constant dense<0.000000e+00> : vector<16xf32>
    %11 = vector.multi_reduction <add>, %10, %cst_6 [1] : vector<16x32xf32> to vector<16xf32>
    %12 = vector.shape_cast %11 : vector<16xf32> to vector<16x1xf32>
    %13 = vector.broadcast %12 : vector<16x1xf32> to vector<16x32xf32>
    %14 = arith.divf %10, %13 : vector<16x32xf32>
    %c0_7 = arith.constant 0 : index
    %c0_8 = arith.constant 0 : index
    %15 = vector.load %arg4[%c0_7, %c0_8] : memref<16x32xf32, #tpu.memory_space<vmem>>, vector<16x32xf32>
    tpu.vector_store %arg4[%c0_7, %c0_8], %14 {strides = array<i32>} : memref<16x32xf32, #tpu.memory_space<vmem>>, vector<16x32xf32>,
    return
  }
  func.func @transform_0(%arg0: i32) -> (i32, i32) {
    %c0_i32 = arith.constant 0 : i32
    %c0_i32_0 = arith.constant 0 : i32
    return %arg0, %c0_i32 : i32, i32
  }
  func.func @transform_1(%arg0: i32) -> (i32, i32) {
    %c0_i32 = arith.constant 0 : i32
    %c0_i32_0 = arith.constant 0 : i32
    %c0_i32_1 = arith.constant 0 : i32
    return %c0_i32, %c0_i32_0 : i32, i32
  }
  func.func @transform_2(%arg0: i32) -> (i32, i32) {
    %c0_i32 = arith.constant 0 : i32
    %c0_i32_0 = arith.constant 0 : i32
    %c0_i32_1 = arith.constant 0 : i32
    return %c0_i32, %c0_i32_0 : i32, i32
  }
  func.func @transform_3(%arg0: i32) -> (i32, i32) {
    %c0_i32 = arith.constant 0 : i32
    %c0_i32_0 = arith.constant 0 : i32
    return %arg0, %c0_i32 : i32, i32
  }
}

</mosaic_0001>

<bundles_post_ra>
// kernel: transformer_forward.9
= control target key start
LH: loop header
LB: loop body
LE: loop exit
PB: predicated region body
PF: predicated region fallthrough
CT: control target
= control target key end

     0   :  { %vm28_vm0 = vcmask 261120   ;;  %s277_s0 = inlined_call_operand.vmem [shape: f32[16,32], index: 0, kind: input, shape index: {}]   ;;  %s278_s1 = inlined_call_operand.vmem [shape: f32[32,32], index: 1, kind: input, shape index: {}]   ;;  %s279_s2 = inlined_call_operand.vmem [shape: f32[1,32], index: 2, kind: input, shape index: {}]   ;;  %s280_s3 = inlined_call_operand.hbm [shape: f32[16,32], index: 3, kind: output, shape index: {}]  }
   0x1   :  { %v17_v0 = vld [vmem:[%s278_s1] sm:$0xff]  ;;  %v18_v1 = vld [vmem:[%s278_s1 + $0x8] sm:$0xff]  ;;  %v19_v2 = vld [vmem:[%s278_s1 + $0x10] sm:$0xff] }
   0x2   :  { %v170_v3 = vpack.c.bf16 %v18_v1, %v17_v0  ;;  %v20_v4 = vld [vmem:[%s278_s1 + $0x18] sm:$0xff]  ;;  %v15_v5 = vld [vmem:[%s277_s0] sm:$0xff] }
   0x3   :  { %v174_v6 = vpack.c.bf16 %v20_v4, %v19_v2  ;;  %167 = vmatprep.mubr.msk.f32.mxu0 %vm28_vm0, %v15_v5 }
   0x4   :  { %8 = vsyncpa [#allocation3], 0  ;;  %171 = vmatprep.subr.bf16.mxu0 %v170_v3  ;;  %v16_v7 = vld [vmem:[%s277_s0 + $0x8] sm:$0xff]  ;;  %v150_v8 = vld [vmem:[%s279_s2] ss:$0 sm:$0xff]  ;;  %s213_s0 = smov [#allocation2]  }
   0x5   :  { %173 = vmatpush3.bf16.msra.mxu0 %v170_v3  ;;  %s139_s2 = sshll.u32 %s213_s0, 4  ;;  %s140_s2 = int_to_ptr.vmem [resolvable:$true] %s139_s2 }
   0x6   :  { %175 = vmatprep.subr.bf16.mxu0 %v174_v6  ;;  %s189_s25 = scalar_lea.vmem %s140_s2, 256  ;;  %p194_p1 = scmp.lt.s32.totalorder %s140_s2, %s140_s2 }
   0x7   :  { %p190_p0 = scmp.ne.s32.totalorder %s140_s2, %s189_s25  ;;  %p195_p2 = scmp.lt.s32.totalorder %s189_s25, %s189_s25 }
   0x9   :  { %177 = vmatpush3.bf16.msra.mxu0 %v174_v6  ;;  %p196_p3 = por %p195_p2, %p194_p1 }
   0xb   :  { %p197_p4 = pnand %p196_p3, %p190_p0 }
   0xc   :  { %168 = vmatmul.mubr.msk.f32.vlgmr.msra.gmra.mrb[0].mxu0 %vm28_vm0, %v16_v7 }
  0xdf   :  { %v169_v9 = vpop.f32.mrb[0].mxu0 }
  0xe0   :  { %v101_v10 = vpop.f32.mrb[1].mxu0  ;;  %v107_v12 = vadd.f32 %v169_v9, %v150_v8 }
  0xe1   :  { %v102_v11 = vadd.f32 %v150_v8, %v101_v10 }
  0xe2   :  { %v113_v14 = vsel %vm28_vm0, %v107_v12, -inf }
  0xe3   :  { %v110_v13 = vsel %vm28_vm0, %v102_v11, -inf }
  0xe4   :  { %111 = vmax.xlane.f32.xlu0 %v110_v13 }
  0xe8   :  { %114 = vmax.xlane.f32.xlu0 %v113_v14 }
 0x171   :  { %v112_v15 = vpop.xlane.xlu0 %111 }
 0x172   :  { %v116_v16 = vsub.f32 %v102_v11, %v112_v15 }
 0x174   :  { %v118_v17 = vmul.f32 1.442695, %v116_v16 }
 0x175   :  { %v115_v18 = vpop.xlane.xlu0 %114 }
 0x176   :  { %181 = vpow2.f32 %v118_v17  ;;  %v117_v19 = vsub.f32 %v107_v12, %v115_v18 }
 0x178   :  { %v120_v20 = vmul.f32 1.442695, %v117_v19 }
 0x17a   :  { %183 = vpow2.f32 %v120_v20 }
 0x180   :  { %v182_v21 = vpop.eup %181 }
 0x181   :  { %v122_v22 = vsel %vm28_vm0, %v182_v21, 0.0 }
 0x182   :  { %123 = vadd.xlane.f32.xlu1 %v122_v22 }
 0x184   :  { %v184_v23 = vpop.eup %183 }
 0x185   :  { %v125_v24 = vsel %vm28_vm0, %v184_v23, 0.0 }
 0x186   :  { %126 = vadd.xlane.f32.xlu1 %v125_v24 }
 0x20f   :  { %v124_v25 = vpop.xlane.xlu1 %123 }
 0x210   :  { %185 = vrcp.f32 %v124_v25 }
 0x213   :  { %v127_v26 = vpop.xlane.xlu1 %126 }
 0x214   :  { %187 = vrcp.f32 %v127_v26 }
 0x21a   :  { %v186_v27 = vpop.eup %185 }
 0x21b   :  { %v129_v28 = vmul.f32 %v186_v27, %v182_v21 }
 0x21d   :  { %132 = vst.msk [vmem:[#allocation2] sm:$0xff] %vm28_vm0, %v129_v28 }
 0x21e   :  { %v188_v29 = vpop.eup %187 }
 0x21f   :  { %v131_v30 = vmul.f32 %v188_v29, %v184_v23 }
 0x221   :  { %133 = vst.msk [vmem:[#allocation2 + $0x8] sm:$0xff] %vm28_vm0, %v131_v30 }
 0x222   :  { %200 = shalt.err (!%p197_p4)
}
 0x223   :  { %s201_s28 = scalar_lea.hbm %s280_s3, 256 }
 0x224   :  { %p202_p5 = scmp.ne.s32.totalorder %s280_s3, %s201_s28  ;;  %p205_p6 = scmp.lt.u32.totalorder %s201_s28, %s280_s3 }
 0x226   :  { %p207_p7 = pnand %p205_p6, %p202_p5 }
 0x228   :  { %210 = shalt.err (!%p207_p7)
}
 0x229   :  { %s214_s6 = smov 128   ;;  %s215_s7 = smov 8  }
 0x22a   :  { %145 = dma.vmem_to_hbm [thread:$0]  %s140_s2, 256, %s280_s3, [#allocation3], %s214_s6, %s214_s6, %s215_s7  }
 0x22b   :  { %211 = dma.done.wait [#allocation3], 256  }
 0x22c   :  { %212 = vsyncadd [#allocation3], 4294967040 }
 0x22d   :  { %149 = vsyncpa [#allocation3], 1 }

// kernel: transformer_forward.5
= control target key start
LH: loop header
LB: loop body
LE: loop exit
PB: predicated region body
PF: predicated region fallthrough
CT: control target
= control target key end

     0   :  { %s1911_s25 = smov 0   ;;  %s2108_s0 = inlined_call_operand.vmem [shape: f32[2,8,32], index: 0, kind: input, shape index: {}]   ;;  %s2109_s1 = inlined_call_operand.vmem [shape: f32[32,96], index: 1, kind: input, shape index: {}]   ;;  %s2110_s2 = inlined_call_operand.vmem [shape: f32[1,96], index: 2, kind: input, shape index: {}]   ;;  %s2111_s3 = inlined_call_operand.vmem [shape: f32[32,32], index: 3, kind: input, shape index: {}]   ;;  %s2112_s4 = inlined_call_operand.vmem [shape: f32[1,32], index: 4, kind: input, shape index: {}]   ;;  %s2113_s5 = inlined_call_operand.vmem [shape: f32[1,32], index: 5, kind: input, shape index: {}]   ;;  %s2114_s6 = inlined_call_operand.vmem [shape: f32[1,32], index: 6, kind: input, shape index: {}]   ;;  %s2115_s7 = inlined_call_operand.vmem [shape: f32[32,64], index: 7, kind: input, shape index: {}]   ;;  %s2116_s8 = inlined_call_operand.vmem [shape: f32[1,64], index: 8, kind: input, shape index: {}]   ;;  %s2117_s9 = inlined_call_operand.vmem [shape: f32[64,32], index: 9, kind: input, shape index: {}]   ;;  %s2118_s10 = inlined_call_operand.vmem [shape: f32[1,32], index: 10, kind: input, shape index: {}]   ;;  %s2119_s11 = inlined_call_operand.vmem [shape: f32[1,32], index: 11, kind: input, shape index: {}]   ;;  %s2120_s12 = inlined_call_operand.vmem [shape: f32[1,32], index: 12, kind: input, shape index: {}]   ;;  %s2121_s13 = inlined_call_operand.vmem [shape: f32[2,8,32], index: 13, kind: output, shape index: {}]  }
   0x1 LB: > { %s1576_s26 = sadd.s32 4294967295, %s1822_s25   ;;  %p1580_p0 = scmp.ge.s32.totalorder %s1822_s25, 1  ;;  %s1822_s25 = sphi %s1911_s25, %s23_s25  }
   0x2   : > { %p386_p1 = scmp.lt.s32.totalorder %s1822_s25, 3 }
   0x4   : > { %p387_p2 = pnand %p1580_p0, %p386_p1 }
   0x5   : > { %v437_v0 = vld [vmem:[%s2109_s1] sm:$0xff] (!%p387_p2)  ;;  %v438_v1 = vld [vmem:[%s2109_s1 + $0x8] sm:$0xff] (!%p387_p2)  ;;  %v439_v2 = vld [vmem:[%s2109_s1 + $0x10] sm:$0xff] (!%p387_p2)  ;;  %v1824_v3 = vmov (!%p387_p2), 0.0|0.0   ;;  %vm1825_vm0 = vmmov (!%p387_p2), 0   ;;  %v1826_v6 = vmov (!%p387_p2), 0.0  }
   0x6   : > { %390 = sbr.rel (%p387_p2) target bundleno = 2537 (0x9e9), region = 72  ;;  %1741 = vmatprep.subr.bf16.mxu1 (!%p387_p2), %v1824_v3  ;;  %v1742_v4 = vpack.c.bf16 (!%p387_p2), %v438_v1, %v437_v0  ;;  %v440_v5 = vld [vmem:[%s2109_s1 + $0x18] sm:$0xff] (!%p387_p2)  ;;  %1657 = vmatprep.mubr.msk.f32.mxu1 (!%p387_p2), %vm1825_vm0, %v1826_v6  ;;  %p428_p3 = scmp.lt.s32.totalorder (!%p387_p2), %s1576_s26, 1  ;;  %vm448_vm1 = vcmask (!%p387_p2), 261120   ;;  %v1583_v9 = vld [vmem:[%s2110_s2] ss:$0 sm:$0xff] (!%p387_p2) }
   0x7   : > { %1670 = vmatprep.subr.mxu0 (!%p387_p2), %v1826_v6  ;;  %1672 = vmatprep.mubr.msk.f32.mxu0 (!%p387_p2), %vm1825_vm0, %v1826_v6  ;;  %v1745_v7 = vpack.c.bf16 (!%p387_p2), %v440_v5, %v439_v2  ;;  %s1827_s24 = smov (!%p387_p2), 120   ;;  %s1828_s27 = smov (!%p387_p2), 96   ;;  %vm525_vm2 = vcmask (!%p387_p2), 64512   ;;  %vm1199_vm3 = vcmask (!%p387_p2), 130048   ;;  %vm1201_vm4 = vcmask (!%p387_p2), 195584  }
   0x8   : > { %1743 = vmatpush3.bf16.msra.mxu1 (!%p387_p2), %v1742_v4  ;;  %s1829_s28 = smov (!%p387_p2), 80   ;;  %s1830_s29 = smov (!%p387_p2), 88   ;;  %vm1418_vm5 = vcmask (!%p387_p2), 523264  }
   0x9   : > { %1744 = vmatprep.subr.bf16.mxu1 (!%p387_p2), %v1824_v3  ;;  %s1831_s30 = smov (!%p387_p2), 72   ;;  %s1832_s14 = smov (!%p387_p2), 112  }
   0xa   : > { %s1833_s15 = smov (!%p387_p2), 104   ;;  %s1834_s16 = smov (!%p387_p2), 56  }
   0xb   : > { %s1835_s17 = smov (!%p387_p2), 64   ;;  %s1836_s19 = smov (!%p387_p2), 48  }
   0xc   : > { %1746 = vmatpush3.bf16.msra.mxu1 (!%p387_p2), %v1745_v7  ;;  %s1837_s20 = smov (!%p387_p2), 40  }
   0xd   : > { %s2123_s26 = smov (!%p428_p3, %s1576_s26), 1  ;;  %1660 = vmatprep.subr.mxu1 %v1826_v6 }
   0xe   : > { %s1581_s18 = sshll.u32 %s2123_s26, 3 }
   0xf   : > { %s431_s21 = scalar_lea.vmem %s2108_s0, %s1581_s18 }
  0x10   : > { %v1946_v8 = vld [vmem:[%s431_s21] sm:$0xff] }
  0x11   : > { %1658 = vmatmul.mubr.msk.f32.vlgmr.msra.gmra.mrb[0].mxu1 %vm448_vm1, %v1946_v8 }
  0x12   : > { %1662 = vmatprep.mubr.msk.f32.mxu1 %vm1825_vm0, %v1826_v6 }
  0xe4   : > { %v518_v10 = vpop.f32.mrb[0].mxu1 }
  0xe5   : > { %v1956_v11 = vadd.f32 %v1583_v9, %v518_v10  ;;  %v1659_v12 = vpop.f32.mrb[1].mxu1 }
  0xe6   : > { %v1204_v12 = vld [vmem:[%s2111_s3 + $0x8] sm:$0xff] }
  0xe7   : > { %688 = vrot.lane.b32.xlu1 %v1956_v11, %s1827_s24  ;;  %523 = vrot.lane.b32.xlu0 %v1956_v11, %s1828_s27  ;;  %s1838_s27 = smov 8  }
  0xeb   : > { %856 = vrot.lane.b32.xlu1 %v1956_v11, %s1829_s28  ;;  %690 = vrot.lane.b32.xlu0 %v1956_v11, %s1830_s29 }
  0xef   : > { %1022 = vrot.lane.b32.xlu1 %v1956_v11, %s1831_s30  ;;  %854 = vrot.lane.b32.xlu0 %v1956_v11, %s1832_s14 }
  0xf3   : > { %1020 = vrot.lane.b32.xlu0 %v1956_v11, %s1833_s15  ;;  %s1839_s15 = smov 16  }
 0x159   : > { %v689_v13 = vpop.permute.xlu1 %688  ;;  %v524_v14 = vpop.permute.xlu0 %523 }
 0x15a   : > { %1661 = vmatpush3.xpose.msk.msra.mxu1 %vm525_vm2, %v524_v14 }
 0x15b   : > { %1665 = vmatprep.subr.mxu1 %v1826_v6 }
 0x15d   : > { %1663 = vmatmul.mubr.msk.f32.vlgmr.msra.gmra.mrb[2].mxu1 %vm525_vm2, %v1956_v11  ;;  %v691_v15 = vpop.permute.xlu0 %690  ;;  %v857_v16 = vpop.permute.xlu1 %856 }
 0x15e   : > { %1671 = vmatpush3.xpose.msk.msra.mxu0 %vm525_vm2, %v691_v15  ;;  %1667 = vmatprep.mubr.msk.f32.mxu1 %vm1825_vm0, %v1826_v6 }
 0x15f   : > { %1680 = vmatprep.subr.mxu0 %v1826_v6 }
 0x161   : > { %1673 = vmatmul.mubr.msk.f32.vlgmr.msra.gmra.mrb[0].mxu0 %vm525_vm2, %v689_v13  ;;  %v855_v17 = vpop.permute.xlu0 %854  ;;  %v1023_v18 = vpop.permute.xlu1 %1022 }
 0x162   : > { %1681 = vmatpush3.xpose.msk.msra.mxu0 %vm525_vm2, %v857_v16  ;;  %1682 = vmatprep.mubr.msk.f32.mxu0 %vm1825_vm0, %v1826_v6 }
 0x163   : > { %1690 = vmatprep.subr.mxu0 %v1826_v6 }
 0x165   : > { %1683 = vmatmul.mubr.msk.f32.vlgmr.msra.gmra.mrb[2].mxu0 %vm525_vm2, %v855_v17  ;;  %v1021_v19 = vpop.permute.xlu0 %1020 }
 0x166   : > { %1691 = vmatpush3.xpose.msk.msra.mxu0 %vm525_vm2, %v1023_v18  ;;  %1692 = vmatprep.mubr.msk.f32.mxu0 %vm1825_vm0, %v1826_v6  ;;  %v1205_v18 = vld [vmem:[%s2111_s3 + $0x10] sm:$0xff] }
 0x167   : > { %1747 = vmatprep.subr.bf16.mxu0 %v1824_v3 }
 0x169   : > { %1693 = vmatmul.mubr.msk.f32.vlgmr.msra.gmra.mrb[4].mxu0 %vm525_vm2, %v1021_v19  ;;  %v1206_v19 = vld [vmem:[%s2111_s3 + $0x18] sm:$0xff] }
 0x16a   : > { %1708 = vmatprep.mubr.msk.f32.mxu0 %vm1825_vm0, %v1826_v6 }
 0x230   : > { %v596_v20 = vpop.f32.mrb[2].mxu1 }
 0x231   : > { %v600_v21 = vmul.f32 0.35355338, %v596_v20  ;;  %v1664_v22 = vpop.f32.mrb[3].mxu1  ;;  %v1751_v20 = vpack.c.bf16 %v1206_v19, %v1205_v18 }
 0x233   : > { %v601_v23 = vsel %vm525_vm2, %v600_v21, -inf }
 0x234   : > { %v762_v24 = vpop.f32.mrb[0].mxu0  ;;  %602 = vmax.xlane.f32.xlu1 %v601_v23 }
 0x235   : > { %v766_v25 = vmul.f32 0.35355338, %v762_v24  ;;  %v1674_v26 = vpop.f32.mrb[1].mxu0 }
 0x237   : > { %v767_v27 = vsel %vm525_vm2, %v766_v25, -inf }
 0x238   : > { %768 = vmax.xlane.f32.xlu0 %v767_v27  ;;  %v928_v28 = vpop.f32.mrb[2].mxu0 }
 0x239   : > { %v932_v29 = vmul.f32 0.35355338, %v928_v28  ;;  %v1684_v30 = vpop.f32.mrb[3].mxu0 }
 0x23b   : > { %v933_v31 = vsel %vm525_vm2, %v932_v29, -inf }
 0x23c   : > { %934 = vmax.xlane.f32.xlu0 %v933_v31  ;;  %v1094_v32 = vpop.f32.mrb[4].mxu0  ;;  %v1597_v31 = vld [vmem:[%s2112_s4] ss:$0 sm:$0xff] }
 0x23d   : > { %v1098_v33 = vmul.f32 0.35355338, %v1094_v32  ;;  %v1694_v34 = vpop.f32.mrb[5].mxu0 }
 0x23f   : > { %v1099_v35 = vsel %vm525_vm2, %v1098_v33, -inf }
 0x240   : > { %1100 = vmax.xlane.f32.xlu1 %v1099_v35 }
 0x251   : > { %778 = vrot.lane.b32.xlu1 %v1956_v11, %s1834_s16  ;;  %s1840_s16 = smov 24  }
 0x2c1   : > { %v603_v36 = vpop.xlane.xlu1 %602 }
 0x2c2   : > { %v604_v37 = vsub.f32 %v600_v21, %v603_v36 }
 0x2c4   : > { %v605_v38 = vmul.f32 1.442695, %v604_v37 }
 0x2c5   : > { %v769_v39 = vpop.xlane.xlu0 %768 }
 0x2c6   : > { %1796 = vpow2.f32 %v605_v38  ;;  %v770_v40 = vsub.f32 %v766_v25, %v769_v39 }
 0x2c8   : > { %v771_v41 = vmul.f32 1.442695, %v770_v40 }
 0x2c9   : > { %v935_v51 = vpop.xlane.xlu0 %934 }
 0x2ca   : > { %1798 = vpow2.f32 %v771_v41  ;;  %v936_v52 = vsub.f32 %v932_v29, %v935_v51 }
 0x2cc   : > { %v937_v53 = vmul.f32 1.442695, %v936_v52  ;;  %v1407_v52 = vld [vmem:[%s2117_s9 + $0x20] sm:$0xff] }
 0x2cd   : > { %v1101_v42 = vpop.xlane.xlu1 %1100 }
 0x2ce   : > { %v1102_v43 = vsub.f32 %v1098_v33, %v1101_v42  ;;  %v1319_v42 = vld [vmem:[%s2115_s7 + $0x8] sm:$0xff] }
 0x2d0   : > { %v1797_v44 = vpop.eup %1796  ;;  %v1103_v45 = vmul.f32 1.442695, %v1102_v43 }
 0x2d1   : > { %v607_v46 = vsel %vm525_vm2, %v1797_v44, 0.0  ;;  %v779_v56 = vpop.permute.xlu1 %778 }
 0x2d2   : > { %1800 = vpow2.f32 %v1103_v45  ;;  %608 = vadd.xlane.f32.xlu0 %v607_v46  ;;  %v1403_v46 = vld [vmem:[%s2117_s9] sm:$0xff] }
 0x2d3   : > { %1802 = vpow2.f32 %v937_v53  ;;  %v1408_v53 = vld [vmem:[%s2117_s9 + $0x28] sm:$0xff] }
 0x2d4   : > { %v1799_v47 = vpop.eup %1798 }
 0x2d5   : > { %v773_v48 = vsel %vm525_vm2, %v1799_v47, 0.0 }
 0x2d6   : > { %774 = vadd.xlane.f32.xlu1 %v773_v48  ;;  %v1405_v48 = vld [vmem:[%s2117_s9 + $0x10] sm:$0xff] }
 0x2dc   : > { %v1801_v49 = vpop.eup %1800 }
 0x2dd   : > { %v1105_v50 = vsel %vm525_vm2, %v1801_v49, 0.0  ;;  %v1803_v54 = vpop.eup %1802 }
 0x2de   : > { %1106 = vadd.xlane.f32.xlu1 %v1105_v50  ;;  %v939_v55 = vsel %vm525_vm2, %v1803_v54, 0.0  ;;  %v1406_v50 = vld [vmem:[%s2117_s9 + $0x18] sm:$0xff] }
 0x2df   : > { %v1763_v51 = vpack.c.bf16 %v1406_v50, %v1405_v48 }
 0x2e8   : > { %612 = vrot.lane.b32.xlu0 %v1956_v11, %s1835_s17 }
 0x2ef   : > { %944 = vrot.lane.b32.xlu1 %v1956_v11, %s1836_s19 }
 0x307   : > { %940 = vadd.xlane.f32.xlu0 %v939_v55 }
 0x31d   : > { %1110 = vrot.lane.b32.xlu0 %v1956_v11, %s1837_s20  ;;  %v1203_v11 = vld [vmem:[%s2111_s3] sm:$0xff] }
 0x31e   : > { %v1748_v13 = vpack.c.bf16 %v1204_v12, %v1203_v11 }
 0x320   : > { %1749 = vmatpush3.bf16.msra.mxu0 %v1748_v13 }
 0x321   : > { %1750 = vmatprep.subr.bf16.mxu0 %v1824_v3 }
 0x324   : > { %1752 = vmatpush3.bf16.msra.mxu0 %v1751_v20 }
 0x325   : > { %1759 = vmatprep.subr.bf16.mxu0 %v1824_v3 }
 0x35f   : > { %v609_v57 = vpop.xlane.xlu0 %608 }
 0x360   : > { %1804 = vrcp.f32 %v609_v57 }
 0x363   : > { %v613_v58 = vpop.permute.xlu0 %612  ;;  %v775_v59 = vpop.xlane.xlu1 %774 }
 0x364   : > { %1806 = vrcp.f32 %v775_v59  ;;  %1666 = vmatpush3.msra.mxu1 %v613_v58  ;;  %v1599_v59 = vld [vmem:[%s2113_s5] ss:$0 sm:$0xff] }
 0x365   : > { %1675 = vmatprep.subr.mxu1 %v1826_v6 }
 0x36a   : > { %v1805_v60 = vpop.eup %1804 }
 0x36b   : > { %v611_v61 = vmul.f32 %v1805_v60, %v1797_v44  ;;  %v1107_v62 = vpop.xlane.xlu1 %1106  ;;  %v1321_v44 = vld [vmem:[%s2115_s7 + $0x18] sm:$0xff] }
 0x36d   : > { %1668 = vmatmul.mubr.msk.f32.vlgmr.msra.gmra.mrb[4].mxu1 %vm525_vm2, %v611_v61  ;;  %v1600_v61 = vld [vmem:[%s2114_s6] ss:$0 sm:$0xff] }
 0x36e   : > { %v1807_v63 = vpop.eup %1806  ;;  %1676 = vmatpush3.msra.mxu1 %v779_v56  ;;  %1677 = vmatprep.mubr.msk.f32.mxu1 %vm1825_vm0, %v1826_v6 }
 0x36f   : > { %v777_v0 = vmul.f32 %v1807_v63, %v1799_v47  ;;  %v945_v1 = vpop.permute.xlu1 %944  ;;  %1685 = vmatprep.subr.mxu1 %v1826_v6  ;;  %v1404_v47 = vld [vmem:[%s2117_s9 + $0x8] sm:$0xff] }
 0x371   : > { %1678 = vmatmul.mubr.msk.f32.vlgmr.msra.gmra.mrb[6].mxu1 %vm525_vm2, %v777_v0  ;;  %v1410_v0 = vld [vmem:[%s2117_s9 + $0x38] sm:$0xff] }
 0x372   : > { %1686 = vmatpush3.msra.mxu1 %v945_v1  ;;  %1687 = vmatprep.mubr.msk.f32.mxu1 %vm1825_vm0, %v1826_v6 }
 0x373   : > { %1695 = vmatprep.subr.mxu1 %v1826_v6 }
 0x394   : > { %v941_v2 = vpop.xlane.xlu0 %940 }
 0x395   : > { %1808 = vrcp.f32 %v941_v2  ;;  %v1601_v2 = vld [vmem:[%s2116_s8] ss:$0 sm:$0xff] }
 0x396   : > { %1810 = vrcp.f32 %v1107_v62 }
 0x398   : > { %v1111_v9 = vpop.permute.xlu0 %1110 }
 0x39f   : > { %v1809_v4 = vpop.eup %1808 }
 0x3a0   : > { %v943_v5 = vmul.f32 %v1809_v4, %v1803_v54  ;;  %v1811_v7 = vpop.eup %1810  ;;  %v1766_v54 = vpack.c.bf16 %v1408_v53, %v1407_v52 }
 0x3a1   : > { %v1109_v10 = vmul.f32 %v1811_v7, %v1801_v49  ;;  %v1760_v49 = vpack.c.bf16 %v1404_v47, %v1403_v46 }
 0x3a2   : > { %1688 = vmatmul.mubr.msk.f32.vlgmr.msra.gmra.mrb[8].mxu1 %vm525_vm2, %v943_v5 }
 0x3a3   : > { %1696 = vmatpush3.msra.mxu1 %v1111_v9  ;;  %1697 = vmatprep.mubr.msk.f32.mxu1 %vm1825_vm0, %v1826_v6 }
 0x3a4   : > { %1753 = vmatprep.subr.bf16.mxu1 %v1824_v3 }
 0x3a6   : > { %1698 = vmatmul.mubr.msk.f32.vlgmr.msra.gmra.mrb[10].mxu1 %vm525_vm2, %v1109_v10  ;;  %v1603_v10 = vld [vmem:[%s2118_s10] ss:$0 sm:$0xff] }
 0x3a7   : > { %1719 = vmatprep.mubr.msk.f32.mxu1 %vm1825_vm0, %v1826_v6 }
 0x440   : > { %v684_v14 = vpop.f32.mrb[4].mxu1 }
 0x441   : > { %v1669_v15 = vpop.f32.mrb[5].mxu1 }
 0x444   : > { %v850_v16 = vpop.f32.mrb[6].mxu1 }
 0x445   : > { %1187 = vrot.lane.b32.xlu1 %v850_v16, %s1838_s27  ;;  %v1679_v17 = vpop.f32.mrb[7].mxu1 }
 0x475   : > { %v1016_v21 = vpop.f32.mrb[8].mxu1 }
 0x476   : > { %1191 = vrot.lane.b32.xlu0 %v1016_v21, %s1839_s15  ;;  %v1689_v22 = vpop.f32.mrb[9].mxu1  ;;  %s435_s15 = scalar_lea.vmem %s2121_s13, %s1581_s18 }
 0x479   : > { %v1182_v23 = vpop.f32.mrb[10].mxu1 }
 0x47a   : > { %1195 = vrot.lane.b32.xlu1 %v1182_v23, %s1840_s16  ;;  %v1699_v24 = vpop.f32.mrb[11].mxu1 }
 0x4b7   : > { %v1188_v25 = vpop.permute.xlu1 %1187 }
 0x4b8   : > { %v1198_v27 = vsel %vm525_vm2, %v684_v14, %v1188_v25  ;;  %v1605_v25 = vld [vmem:[%s2119_s11] ss:$0 sm:$0xff] }
 0x4e8   : > { %v1192_v26 = vpop.permute.xlu0 %1191 }
 0x4e9   : > { %v1200_v28 = vsel %vm1199_vm3, %v1198_v27, %v1192_v26  ;;  %v1606_v27 = vld [vmem:[%s2120_s12] ss:$0 sm:$0xff] }
 0x4ec   : > { %v1196_v29 = vpop.permute.xlu1 %1195 }
 0x4ed   : > { %v1202_v30 = vsel %vm1201_vm4, %v1200_v28, %v1196_v29 }
 0x4ee   : > { %1709 = vmatmul.mubr.msk.f32.vlgmr.msra.gmra.mrb[6].mxu0 %vm448_vm1, %v1202_v30 }
 0x4ef   : > { %1738 = vmatprep.mubr.msk.f32.mxu0 %vm1825_vm0, %v1826_v6  ;;  %v1318_v6 = vld [vmem:[%s2115_s7] sm:$0xff]  ;;  %1761 = vmatpush3.bf16.msra.mxu0 %v1760_v49 }
 0x4f0   : > { %v1754_v43 = vpack.c.bf16 %v1319_v42, %v1318_v6  ;;  %1762 = vmatprep.subr.bf16.mxu0 %v1824_v3 }
 0x4f2   : > { %1755 = vmatpush3.bf16.msra.mxu1 %v1754_v43 }
 0x4f3   : > { %1756 = vmatprep.subr.bf16.mxu1 %v1824_v3  ;;  %1764 = vmatpush3.bf16.msra.mxu0 %v1763_v51 }
 0x4f4   : > { %1765 = vmatprep.subr.bf16.mxu0 %v1824_v3 }
 0x4f7   : > { %1767 = vmatpush3.bf16.msra.mxu0 %v1766_v54 }
 0x4f8   : > { %1768 = vmatprep.subr.bf16.mxu0 %v1824_v3  ;;  %v1409_v3 = vld [vmem:[%s2117_s9 + $0x30] sm:$0xff] }
 0x4f9   : > { %v1769_v1 = vpack.c.bf16 %v1410_v0, %v1409_v3 }
 0x4fb   : > { %1770 = vmatpush3.bf16.msra.mxu0 %v1769_v1 }
 0x5c1   : > { %v1283_v32 = vpop.f32.mrb[6].mxu0 }
 0x5c2   : > { %v1284_v33 = vadd.f32 %v1597_v31, %v1283_v32  ;;  %v1710_v34 = vpop.f32.mrb[7].mxu0 }
 0x5c4   : > { %v1287_v35 = vadd.f32 %v1284_v33, %v1946_v8  ;;  %v1320_v8 = vld [vmem:[%s2115_s7 + $0x10] sm:$0xff] }
 0x5c5   : > { %v1757_v45 = vpack.c.bf16 %v1321_v44, %v1320_v8 }
 0x5c6   : > { %v1290_v36 = vsel %vm448_vm1, %v1287_v35, 0.0 }
 0x5c7   : > { %1291 = vadd.xlane.f32.xlu0 %v1290_v36  ;;  %1758 = vmatpush3.bf16.msra.mxu1 %v1757_v45 }
 0x654   : > { %v1292_v37 = vpop.xlane.xlu0 %1291 }
 0x655   : > { %v1294_v38 = vmul.f32 0.03125, %v1292_v37 }
 0x657   : > { %v1295_v39 = vsub.f32 %v1287_v35, %v1294_v38 }
 0x659   : > { %v1296_v40 = vmul.f32 %v1295_v39, %v1295_v39 }
 0x65b   : > { %v1297_v41 = vsel %vm448_vm1, %v1296_v40, 0.0 }
 0x65c   : > { %1298 = vadd.xlane.f32.xlu1 %v1297_v41 }
 0x6e9   : > { %v1299_v55 = vpop.xlane.xlu1 %1298 }
 0x6ea   : > { %v1300_v56 = vmul.f32 0.03125, %v1299_v55 }
 0x6ec   : > { %v1301_v57 = vadd.f32 1e-05, %v1300_v56 }
 0x6ee   : > { %1812 = vrsqrt.f32 %v1301_v57 }
 0x6f8   : > { %v1813_v58 = vpop.eup %1812 }
 0x6f9   : > { %v1303_v60 = vmul.f32 %v1813_v58, %v1295_v39 }
 0x6fb   : > { %v1310_v62 = vmul.f32 %v1599_v59, %v1303_v60 }
 0x6fd   : > { %v1317_v63 = vadd.f32 %v1600_v61, %v1310_v62 }
 0x6ff   : > { %1720 = vmatmul.mubr.msk.f32.vlgmr.msra.gmra.mrb[12].mxu1 %vm448_vm1, %v1317_v63 }
 0x7d2   : > { %v1398_v4 = vpop.f32.mrb[12].mxu1 }
 0x7d3   : > { %v1399_v5 = vadd.f32 %v1601_v2, %v1398_v4  ;;  %v1721_v7 = vpop.f32.mrb[13].mxu1 }
 0x7d5   : > { %v1402_v9 = vmax.f32 %v1399_v5, 0.0 }
 0x7d7   : > { %1739 = vmatmul.mubr.msk.f32.vlgmr.msra.gmra.mrb[8].mxu0 %vm1418_vm5, %v1402_v9 }
 0x8aa   : > { %v1488_v11 = vpop.f32.mrb[8].mxu0 }
 0x8ab   : > { %v1489_v12 = vadd.f32 %v1603_v10, %v1488_v11  ;;  %v1740_v13 = vpop.f32.mrb[9].mxu0 }
 0x8ad   : > { %v1492_v14 = vadd.f32 %v1489_v12, %v1317_v63 }
 0x8af   : > { %v1495_v15 = vsel %vm448_vm1, %v1492_v14, 0.0 }
 0x8b0   : > { %1496 = vadd.xlane.f32.xlu0 %v1495_v15 }
 0x93d   : > { %v1497_v16 = vpop.xlane.xlu0 %1496 }
 0x93e   : > { %v1498_v17 = vmul.f32 0.03125, %v1497_v16 }
 0x940   : > { %v1499_v18 = vsub.f32 %v1492_v14, %v1498_v17 }
 0x942   : > { %v1500_v19 = vmul.f32 %v1499_v18, %v1499_v18 }
 0x944   : > { %v1501_v20 = vsel %vm448_vm1, %v1500_v19, 0.0 }
 0x945   : > { %1502 = vadd.xlane.f32.xlu0 %v1501_v20 }
 0x9d2   : > { %v1503_v21 = vpop.xlane.xlu0 %1502 }
 0x9d3   : > { %v1504_v22 = vmul.f32 0.03125, %v1503_v21 }
 0x9d5   : > { %v1505_v23 = vadd.f32 1e-05, %v1504_v22 }
 0x9d7   : > { %1814 = vrsqrt.f32 %v1505_v23 }
 0x9e1   : > { %v1815_v24 = vpop.eup %1814 }
 0x9e2   : > { %v1507_v26 = vmul.f32 %v1815_v24, %v1499_v18 }
 0x9e4   : > { %v1514_v28 = vmul.f32 %v1605_v25, %v1507_v26 }
 0x9e6   : > { %v1521_v29 = vadd.f32 %v1606_v27, %v1514_v28 }
 0x9e8   : > { %1522 = vst.msk [vmem:[%s435_s15] sm:$0xff] %vm448_vm1, %v1521_v29 }
 0x9e9 PF: > { %s23_s25 = sadd.s32 1, %s1822_s25  }
 0x9ea   : > { %p20_p4 = scmp.ge.s32.totalorder %s23_s25, 4  }
 0x9ec   :  { %22 = sbr.rel (!%p20_p4) target bundleno = 1 (0x1), region = 102 }

// kernel: transformer_forward.7
= control target key start
LH: loop header
LB: loop body
LE: loop exit
PB: predicated region body
PF: predicated region fallthrough
CT: control target
= control target key end

     0   :  { %s3745_s0 = inlined_call_operand.vmem [shape: f32[2,8,32], index: 0, kind: input, shape index: {}]   ;;  %s3746_s1 = inlined_call_operand.vmem [shape: f32[2,8,32], index: 1, kind: input, shape index: {}]   ;;  %s3747_s2 = inlined_call_operand.vmem [shape: f32[8,8], index: 2, kind: input, shape index: {}]   ;;  %s3748_s3 = inlined_call_operand.vmem [shape: f32[32,96], index: 3, kind: input, shape index: {}]   ;;  %s3749_s4 = inlined_call_operand.vmem [shape: f32[1,96], index: 4, kind: input, shape index: {}]   ;;  %s3750_s5 = inlined_call_operand.vmem [shape: f32[32,32], index: 5, kind: input, shape index: {}]   ;;  %s3751_s6 = inlined_call_operand.vmem [shape: f32[1,32], index: 6, kind: input, shape index: {}]   ;;  %s3752_s7 = inlined_call_operand.vmem [shape: f32[1,32], index: 7, kind: input, shape index: {}]   ;;  %s3753_s8 = inlined_call_operand.vmem [shape: f32[1,32], index: 8, kind: input, shape index: {}]   ;;  %s3754_s9 = inlined_call_operand.vmem [shape: f32[32,32], index: 9, kind: input, shape index: {}]   ;;  %s3755_s10 = inlined_call_operand.vmem [shape: f32[1,32], index: 10, kind: input, shape index: {}]   ;;  %s3756_s11 = inlined_call_operand.vmem [shape: f32[32,64], index: 11, kind: input, shape index: {}]   ;;  %s3757_s12 = inlined_call_operand.vmem [shape: f32[1,64], index: 12, kind: input, shape index: {}]   ;;  %s3758_s13 = inlined_call_operand.vmem [shape: f32[32,32], index: 13, kind: input, shape index: {}]   ;;  %s3759_s14 = inlined_call_operand.vmem [shape: f32[1,32], index: 14, kind: input, shape index: {}]   ;;  %s3760_s15 = inlined_call_operand.vmem [shape: f32[1,32], index: 15, kind: input, shape index: {}]   ;;  %s3761_s16 = inlined_call_operand.vmem [shape: f32[1,32], index: 16, kind: input, shape index: {}]   ;;  %s3762_s17 = inlined_call_operand.vmem [shape: f32[32,64], index: 17, kind: input, shape index: {}]   ;;  %s3763_s18 = inlined_call_operand.vmem [shape: f32[1,64], index: 18, kind: input, shape index: {}]   ;;  %s3764_s19 = inlined_call_operand.vmem [shape: f32[64,32], index: 19, kind: input, shape index: {}]   ;;  %s3765_s20 = inlined_call_operand.vmem [shape: f32[1,32], index: 20, kind: input, shape index: {}]   ;;  %s3766_s21 = inlined_call_operand.vmem [shape: f32[1,32], index: 21, kind: input, shape index: {}]   ;;  %s3767_s22 = inlined_call_operand.vmem [shape: f32[1,32], index: 22, kind: input, shape index: {}]   ;;  %s3768_s23 = inlined_call_operand.vmem [shape: f32[2,8,32], index: 23, kind: output, shape index: {}]  }
   0x1   :  { %3782 = sst [smem:[#allocation2_spill]] %s3745_s0 }
   0x2   :  { %3783 = sst [smem:[#allocation3_spill]] %s3746_s1 }
   0x3   :  { %3784 = sst [smem:[#allocation4_spill]] %s3747_s2 }
   0x4   :  { %3785 = sst [smem:[#allocation5_spill]] %s3748_s3 }
   0x5   :  { %3786 = sst [smem:[#allocation6_spill]] %s3749_s4  ;;  %s3390_s4 = smov 0  }
   0x6   :  { %3787 = sst [smem:[#allocation7_spill]] %s3750_s5 }
   0x7   :  { %3788 = sst [smem:[#allocation8_spill]] %s3751_s6 }
   0x8   :  { %3789 = sst [smem:[#allocation9_spill]] %s3752_s7 }
   0x9 LB: > { %s2842_s30 = sadd.s32 4294967295, %s3250_s4   ;;  %p2846_p0 = scmp.ge.s32.totalorder %s3250_s4, 1  ;;  %s3250_s4 = sphi %s3390_s4, %s33_s4  }
   0xa   : > { %p645_p1 = scmp.lt.s32.totalorder %s3250_s4, 3 }
   0xc   : > { %p646_p2 = pnand %p2846_p0, %p645_p1 }
   0xd   : > { %s3790_s5 = sld [smem:[#allocation5_spill]] (!%p646_p2)  ;;  %v3252_v3 = vmov (!%p646_p2), 0.0|0.0   ;;  %vm3253_vm0 = vmmov (!%p646_p2), 0   ;;  %v3254_v6 = vmov (!%p646_p2), 0.0   ;;  %p711_p3 = scmp.lt.s32.totalorder (!%p646_p2), %s2842_s30, 1  ;;  %vm739_vm1 = vcmask (!%p646_p2), 261120  }
   0xe   : > { %649 = sbr.rel (%p646_p2) target bundleno = 4273 (0x10b1), region = 112  ;;  %3132 = vmatprep.subr.bf16.mxu1 (!%p646_p2), %v3252_v3  ;;  %2975 = vmatprep.mubr.msk.f32.mxu1 (!%p646_p2), %vm3253_vm0, %v3254_v6  ;;  %s3791_s0 = sld [smem:[#allocation2_spill]] (!%p646_p2)  ;;  %vm816_vm2 = vcmask (!%p646_p2), 64512   ;;  %v3262_v22 = vmov (!%p646_p2), -1e+09   ;;  %vm1494_vm4 = vcmask (!%p646_p2), 130048  }
   0xf   : > { %2988 = vmatprep.subr.mxu0 (!%p646_p2), %v3254_v6  ;;  %2990 = vmatprep.mubr.msk.f32.mxu0 (!%p646_p2), %vm3253_vm0, %v3254_v6  ;;  %s3792_s1 = sld [smem:[#allocation6_spill]] (!%p646_p2)  ;;  %s3255_s26 = smov (!%p646_p2), 120   ;;  %vm1496_vm5 = vcmask (!%p646_p2), 195584   ;;  %vm2672_vm6 = vcmask (!%p646_p2), 523264  }
  0x10   : > { %s3777_s2 = smov (!%p646_p2), 96   ;;  %s3773_s6 = smov (!%p646_p2), 80  }
  0x11   : > { %s3771_s27 = smov (!%p646_p2), 88   ;;  %s3772_s7 = smov (!%p646_p2), 72  }
  0x12   : > { %s3780_s29 = smov (!%p646_p2), 112   ;;  %s3778_s3 = smov (!%p646_p2), 104  }
  0x13   : > { %v728_v0 = vld [vmem:[%s3790_s5] sm:$0xff] (!%p646_p2)  ;;  %v729_v1 = vld [vmem:[%s3790_s5 + $0x8] sm:$0xff] (!%p646_p2)  ;;  %v730_v2 = vld [vmem:[%s3790_s5 + $0x10] sm:$0xff] (!%p646_p2)  ;;  %s3793_s25 = sld [smem:[#allocation4_spill]] (!%p646_p2) }
  0x14   : > { %v3133_v4 = vpack.c.bf16 (!%p646_p2), %v729_v1, %v728_v0  ;;  %v731_v5 = vld [vmem:[%s3790_s5 + $0x18] sm:$0xff] (!%p646_p2) }
  0x15   : > { %v3136_v7 = vpack.c.bf16 %v731_v5, %v730_v2  ;;  %s3808_s30 = smov (!%p711_p3, %s2842_s30), 1  ;;  %v2850_v9 = vld [vmem:[%s3792_s1] ss:$0 sm:$0xff]  ;;  %s3264_s1 = smov 64  }
  0x16   : > { %3134 = vmatpush3.bf16.msra.mxu1 %v3133_v4  ;;  %s3417_s28 = sshll.u32 %s3808_s30, 3  ;;  %s3263_s30 = smov 56  }
  0x17   : > { %3135 = vmatprep.subr.bf16.mxu1 %v3252_v3  ;;  %s714_s24 = scalar_lea.vmem %s3791_s0, %s3417_s28  ;;  %s3265_s0 = smov 48  }
  0x18   : > { %v3423_v8 = vld [vmem:[%s714_s24] sm:$0xff]  ;;  %s3266_s24 = smov 40  }
  0x19   : > { %v725_v20 = vld [vmem:[%s3793_s25] sm:$0xff]  ;;  %s3795_s25 = sld [smem:[#allocation8_spill]] }
  0x1a   : > { %3137 = vmatpush3.bf16.msra.mxu1 %v3136_v7  ;;  %vm726_vm3 = vcmp.ne.f32.partialorder %v725_v20, 0.0 }
  0x1b   : > { %2978 = vmatprep.subr.mxu1 %v3254_v6  ;;  %v727_v23 = vsel %vm726_vm3, 0.0, %v3262_v22 }
  0x1d   : > { %2976 = vmatmul.mubr.msk.f32.vlgmr.msra.gmra.mrb[0].mxu1 %vm739_vm1, %v3423_v8 }
  0x1e   : > { %2980 = vmatprep.mubr.msk.f32.mxu1 %vm3253_vm0, %v3254_v6 }
  0xf0   : > { %v809_v10 = vpop.f32.mrb[0].mxu1 }
  0xf1   : > { %v3433_v11 = vadd.f32 %v2850_v9, %v809_v10  ;;  %v2977_v12 = vpop.f32.mrb[1].mxu1 }
  0xf3   : > { %980 = vrot.lane.b32.xlu1 %v3433_v11, %s3255_s26  ;;  %814 = vrot.lane.b32.xlu0 %v3433_v11, %s3777_s2 }
  0xf7   : > { %1149 = vrot.lane.b32.xlu1 %v3433_v11, %s3773_s6  ;;  %982 = vrot.lane.b32.xlu0 %v3433_v11, %s3771_s27  ;;  %s3776_s27 = smov 8   ;;  %s3797_s6 = sld [smem:[#allocation9_spill]] }
  0xfb   : > { %1316 = vrot.lane.b32.xlu1 %v3433_v11, %s3772_s7  ;;  %1147 = vrot.lane.b32.xlu0 %v3433_v11, %s3780_s29  ;;  %s3803_s7 = smov 88  }
  0xff   : > { %1314 = vrot.lane.b32.xlu0 %v3433_v11, %s3778_s3  ;;  %s3796_s3 = sld [smem:[#allocation3_spill]] }
 0x105   : > { %s718_s29 = scalar_lea.vmem %s3796_s3, %s3417_s28 }
 0x165   : > { %v981_v13 = vpop.permute.xlu1 %980  ;;  %v815_v14 = vpop.permute.xlu0 %814 }
 0x166   : > { %2979 = vmatpush3.xpose.msk.msra.mxu1 %vm816_vm2, %v815_v14 }
 0x167   : > { %2983 = vmatprep.subr.mxu1 %v3254_v6 }
 0x169   : > { %2981 = vmatmul.mubr.msk.f32.vlgmr.msra.gmra.mrb[2].mxu1 %vm816_vm2, %v3433_v11  ;;  %v983_v15 = vpop.permute.xlu0 %982  ;;  %v1150_v16 = vpop.permute.xlu1 %1149 }
 0x16a   : > { %2989 = vmatpush3.xpose.msk.msra.mxu0 %vm816_vm2, %v983_v15  ;;  %2985 = vmatprep.mubr.msk.f32.mxu1 %vm3253_vm0, %v3254_v6 }
 0x16b   : > { %2998 = vmatprep.subr.mxu0 %v3254_v6 }
 0x16d   : > { %2991 = vmatmul.mubr.msk.f32.vlgmr.msra.gmra.mrb[0].mxu0 %vm816_vm2, %v981_v13  ;;  %v1148_v17 = vpop.permute.xlu0 %1147  ;;  %v1317_v18 = vpop.permute.xlu1 %1316 }
 0x16e   : > { %2999 = vmatpush3.xpose.msk.msra.mxu0 %vm816_vm2, %v1150_v16  ;;  %3000 = vmatprep.mubr.msk.f32.mxu0 %vm3253_vm0, %v3254_v6 }
 0x16f   : > { %3008 = vmatprep.subr.mxu0 %v3254_v6 }
 0x171   : > { %3001 = vmatmul.mubr.msk.f32.vlgmr.msra.gmra.mrb[2].mxu0 %vm816_vm2, %v1148_v17  ;;  %v1315_v19 = vpop.permute.xlu0 %1314 }
 0x172   : > { %3009 = vmatpush3.xpose.msk.msra.mxu0 %vm816_vm2, %v1317_v18  ;;  %3010 = vmatprep.mubr.msk.f32.mxu0 %vm3253_vm0, %v3254_v6 }
 0x173   : > { %3138 = vmatprep.subr.bf16.mxu0 %v3252_v3 }
 0x175   : > { %3011 = vmatmul.mubr.msk.f32.vlgmr.msra.gmra.mrb[4].mxu0 %vm816_vm2, %v1315_v19 }
 0x176   : > { %3026 = vmatprep.mubr.msk.f32.mxu0 %vm3253_vm0, %v3254_v6 }
 0x23c   : > { %v887_v21 = vpop.f32.mrb[2].mxu1 }
 0x23d   : > { %v891_v24 = vmul.f32 0.35355338, %v887_v21  ;;  %v2982_v25 = vpop.f32.mrb[3].mxu1 }
 0x23f   : > { %v892_v26 = vadd.f32 %v891_v24, %v727_v23 }
 0x240   : > { %v1054_v27 = vpop.f32.mrb[0].mxu0 }
 0x241   : > { %v1058_v28 = vmul.f32 0.35355338, %v1054_v27  ;;  %v2992_v29 = vpop.f32.mrb[1].mxu0  ;;  %v893_v30 = vsel %vm816_vm2, %v892_v26, -inf }
 0x242   : > { %894 = vmax.xlane.f32.xlu1 %v893_v30 }
 0x243   : > { %v1059_v31 = vadd.f32 %v1058_v28, %v727_v23 }
 0x244   : > { %v1221_v32 = vpop.f32.mrb[2].mxu0 }
 0x245   : > { %v1225_v33 = vmul.f32 0.35355338, %v1221_v32  ;;  %v3002_v34 = vpop.f32.mrb[3].mxu0  ;;  %v1060_v35 = vsel %vm816_vm2, %v1059_v31, -inf }
 0x246   : > { %1061 = vmax.xlane.f32.xlu0 %v1060_v35 }
 0x247   : > { %v1226_v36 = vadd.f32 %v1225_v33, %v727_v23 }
 0x248   : > { %v1388_v37 = vpop.f32.mrb[4].mxu0 }
 0x249   : > { %v1392_v38 = vmul.f32 0.35355338, %v1388_v37  ;;  %v3012_v39 = vpop.f32.mrb[5].mxu0  ;;  %v1227_v40 = vsel %vm816_vm2, %v1226_v36, -inf }
 0x24a   : > { %1228 = vmax.xlane.f32.xlu0 %v1227_v40 }
 0x24b   : > { %v1393_v41 = vadd.f32 %v1392_v38, %v727_v23  ;;  %v2864_v38 = vld [vmem:[%s3795_s25] ss:$0 sm:$0xff] }
 0x24d   : > { %v1394_v42 = vsel %vm816_vm2, %v1393_v41, -inf }
 0x24e   : > { %1395 = vmax.xlane.f32.xlu1 %v1394_v42 }
 0x25f   : > { %1071 = vrot.lane.b32.xlu1 %v3433_v11, %s3263_s30  ;;  %s3801_s30 = smov 80  }
 0x2cf   : > { %v895_v43 = vpop.xlane.xlu1 %894 }
 0x2d0   : > { %v896_v44 = vsub.f32 %v892_v26, %v895_v43 }
 0x2d2   : > { %v897_v45 = vmul.f32 1.442695, %v896_v44 }
 0x2d3   : > { %v1062_v46 = vpop.xlane.xlu0 %1061 }
 0x2d4   : > { %3206 = vpow2.f32 %v897_v45  ;;  %v1063_v47 = vsub.f32 %v1059_v31, %v1062_v46 }
 0x2d6   : > { %v1064_v48 = vmul.f32 1.442695, %v1063_v47 }
 0x2d7   : > { %v1229_v58 = vpop.xlane.xlu0 %1228 }
 0x2d8   : > { %3208 = vpow2.f32 %v1064_v48  ;;  %v1230_v59 = vsub.f32 %v1226_v36, %v1229_v58  ;;  %v1615_v58 = vld [vmem:[%s3754_s9 + $0x10] sm:$0xff] }
 0x2da   : > { %v1231_v60 = vmul.f32 1.442695, %v1230_v59  ;;  %v1616_v59 = vld [vmem:[%s3754_s9 + $0x18] sm:$0xff] }
 0x2db   : > { %v1396_v49 = vpop.xlane.xlu1 %1395 }
 0x2dc   : > { %v1397_v50 = vsub.f32 %v1393_v41, %v1396_v49  ;;  %v1697_v49 = vld [vmem:[%s3756_s11] sm:$0xff] }
 0x2de   : > { %v3207_v51 = vpop.eup %3206  ;;  %v1398_v52 = vmul.f32 1.442695, %v1397_v50  ;;  %v1698_v50 = vld [vmem:[%s3756_s11 + $0x8] sm:$0xff] }
 0x2df   : > { %v899_v53 = vsel %vm816_vm2, %v3207_v51, 0.0  ;;  %v1072_v63 = vpop.permute.xlu1 %1071 }
 0x2e0   : > { %3210 = vpow2.f32 %v1398_v52  ;;  %900 = vadd.xlane.f32.xlu0 %v899_v53  ;;  %v1700_v52 = vld [vmem:[%s3756_s11 + $0x18] sm:$0xff] }
 0x2e1   : > { %3212 = vpow2.f32 %v1231_v60  ;;  %v3148_v60 = vpack.c.bf16 %v1616_v59, %v1615_v58 }
 0x2e2   : > { %v3209_v54 = vpop.eup %3208 }
 0x2e3   : > { %v1066_v55 = vsel %vm816_vm2, %v3209_v54, 0.0 }
 0x2e4   : > { %1067 = vadd.xlane.f32.xlu1 %v1066_v55  ;;  %v1613_v55 = vld [vmem:[%s3754_s9] sm:$0xff] }
 0x2ea   : > { %v3211_v56 = vpop.eup %3210 }
 0x2eb   : > { %v1400_v57 = vsel %vm816_vm2, %v3211_v56, 0.0  ;;  %v3213_v61 = vpop.eup %3212 }
 0x2ec   : > { %1401 = vadd.xlane.f32.xlu1 %v1400_v57  ;;  %v1233_v62 = vsel %vm816_vm2, %v3213_v61, 0.0 }
 0x2f6   : > { %904 = vrot.lane.b32.xlu0 %v3433_v11, %s3264_s1  ;;  %s3794_s1 = sld [smem:[#allocation7_spill]] }
 0x2fc   : > { %v1498_v18 = vld [vmem:[%s3794_s1] sm:$0xff]  ;;  %v1499_v19 = vld [vmem:[%s3794_s1 + $0x8] sm:$0xff]  ;;  %v1500_v25 = vld [vmem:[%s3794_s1 + $0x10] sm:$0xff] }
 0x2fd   : > { %1238 = vrot.lane.b32.xlu1 %v3433_v11, %s3265_s0  ;;  %v3139_v20 = vpack.c.bf16 %v1499_v19, %v1498_v18  ;;  %v1501_v26 = vld [vmem:[%s3794_s1 + $0x18] sm:$0xff]  ;;  %s3775_s0 = smov 16  }
 0x2fe   : > { %v3142_v27 = vpack.c.bf16 %v1501_v26, %v1500_v25 }
 0x2ff   : > { %3140 = vmatpush3.bf16.msra.mxu0 %v3139_v20 }
 0x300   : > { %3141 = vmatprep.subr.bf16.mxu0 %v3252_v3 }
 0x303   : > { %3143 = vmatpush3.bf16.msra.mxu0 %v3142_v27 }
 0x304   : > { %3150 = vmatprep.subr.bf16.mxu0 %v3252_v3 }
 0x315   : > { %1234 = vadd.xlane.f32.xlu0 %v1233_v62 }
 0x32b   : > { %1405 = vrot.lane.b32.xlu0 %v3433_v11, %s3266_s24  ;;  %s3774_s24 = smov 24  }
 0x36d   : > { %v901_v0 = vpop.xlane.xlu0 %900 }
 0x36e   : > { %3214 = vrcp.f32 %v901_v0 }
 0x371   : > { %v905_v1 = vpop.permute.xlu0 %904  ;;  %v1068_v2 = vpop.xlane.xlu1 %1067 }
 0x372   : > { %3216 = vrcp.f32 %v1068_v2  ;;  %2984 = vmatpush3.msra.mxu1 %v905_v1  ;;  %v2866_v1 = vld [vmem:[%s3797_s6] ss:$0 sm:$0xff]  ;;  %s3802_s6 = smov 72  }
 0x373   : > { %2993 = vmatprep.subr.mxu1 %v3254_v6 }
 0x378   : > { %v3215_v4 = vpop.eup %3214 }
 0x379   : > { %v903_v5 = vmul.f32 %v3215_v4, %v3207_v51  ;;  %v1402_v7 = vpop.xlane.xlu1 %1401  ;;  %v1699_v51 = vld [vmem:[%s3756_s11 + $0x10] sm:$0xff]  ;;  %v2867_v4 = vld [vmem:[%s3753_s8] ss:$0 sm:$0xff] }
 0x37a   : > { %v3154_v53 = vpack.c.bf16 %v1700_v52, %v1699_v51 }
 0x37b   : > { %2986 = vmatmul.mubr.msk.f32.vlgmr.msra.gmra.mrb[4].mxu1 %vm816_vm2, %v903_v5 }
 0x37c   : > { %v3217_v9 = vpop.eup %3216  ;;  %2994 = vmatpush3.msra.mxu1 %v1072_v63  ;;  %2995 = vmatprep.mubr.msk.f32.mxu1 %vm3253_vm0, %v3254_v6 }
 0x37d   : > { %v1070_v10 = vmul.f32 %v3217_v9, %v3209_v54  ;;  %v1239_v11 = vpop.permute.xlu1 %1238  ;;  %3003 = vmatprep.subr.mxu1 %v3254_v6  ;;  %v724_v54 = vld [vmem:[%s718_s29] sm:$0xff]  ;;  %s3799_s29 = smov 104  }
 0x37e   : > { %v2870_v9 = vld [vmem:[%s3757_s12] ss:$0 sm:$0xff] }
 0x37f   : > { %2996 = vmatmul.mubr.msk.f32.vlgmr.msra.gmra.mrb[6].mxu1 %vm816_vm2, %v1070_v10 }
 0x380   : > { %3004 = vmatpush3.msra.mxu1 %v1239_v11  ;;  %3005 = vmatprep.mubr.msk.f32.mxu1 %vm3253_vm0, %v3254_v6 }
 0x381   : > { %3013 = vmatprep.subr.mxu1 %v3254_v6 }
 0x3a2   : > { %v1235_v12 = vpop.xlane.xlu0 %1234 }
 0x3a3   : > { %3218 = vrcp.f32 %v1235_v12 }
 0x3a4   : > { %3220 = vrcp.f32 %v1402_v7 }
 0x3a6   : > { %v1406_v16 = vpop.permute.xlu0 %1405 }
 0x3ad   : > { %v3219_v13 = vpop.eup %3218 }
 0x3ae   : > { %v1237_v14 = vmul.f32 %v3219_v13, %v3213_v61  ;;  %v3221_v15 = vpop.eup %3220 }
 0x3af   : > { %v1404_v17 = vmul.f32 %v3221_v15, %v3211_v56  ;;  %v1614_v56 = vld [vmem:[%s3754_s9 + $0x8] sm:$0xff] }
 0x3b0   : > { %3006 = vmatmul.mubr.msk.f32.vlgmr.msra.gmra.mrb[8].mxu1 %vm816_vm2, %v1237_v14  ;;  %v3145_v57 = vpack.c.bf16 %v1614_v56, %v1613_v55  ;;  %v2868_v14 = vld [vmem:[%s3755_s10] ss:$0 sm:$0xff] }
 0x3b1   : > { %3014 = vmatpush3.msra.mxu1 %v1406_v16  ;;  %3015 = vmatprep.mubr.msk.f32.mxu1 %vm3253_vm0, %v3254_v6 }
 0x3b2   : > { %3144 = vmatprep.subr.bf16.mxu1 %v3252_v3 }
 0x3b4   : > { %3016 = vmatmul.mubr.msk.f32.vlgmr.msra.gmra.mrb[10].mxu1 %vm816_vm2, %v1404_v17 }
 0x3b5   : > { %3037 = vmatprep.mubr.msk.f32.mxu1 %vm3253_vm0, %v3254_v6  ;;  %3146 = vmatpush3.bf16.msra.mxu1 %v3145_v57 }
 0x3b6   : > { %3147 = vmatprep.subr.bf16.mxu1 %v3252_v3 }
 0x3b9   : > { %3149 = vmatpush3.bf16.msra.mxu1 %v3148_v60 }
 0x3ba   : > { %3051 = vmatprep.subr.mxu1 %v3254_v6 }
 0x44e   : > { %v976_v21 = vpop.f32.mrb[4].mxu1 }
 0x44f   : > { %v2987_v22 = vpop.f32.mrb[5].mxu1 }
 0x452   : > { %v1143_v23 = vpop.f32.mrb[6].mxu1 }
 0x453   : > { %1482 = vrot.lane.b32.xlu1 %v1143_v23, %s3776_s27  ;;  %v2997_v24 = vpop.f32.mrb[7].mxu1  ;;  %s3798_s27 = smov 112  }
 0x483   : > { %v1310_v28 = vpop.f32.mrb[8].mxu1 }
 0x484   : > { %1486 = vrot.lane.b32.xlu0 %v1310_v28, %s3775_s0  ;;  %v3007_v29 = vpop.f32.mrb[9].mxu1 }
 0x487   : > { %v1477_v30 = vpop.f32.mrb[10].mxu1 }
 0x488   : > { %1490 = vrot.lane.b32.xlu1 %v1477_v30, %s3774_s24  ;;  %v3017_v31 = vpop.f32.mrb[11].mxu1 }
 0x4c5   : > { %v1483_v32 = vpop.permute.xlu1 %1482 }
 0x4c6   : > { %v1493_v34 = vsel %vm816_vm2, %v976_v21, %v1483_v32 }
 0x4f6   : > { %v1487_v33 = vpop.permute.xlu0 %1486 }
 0x4f7   : > { %v1495_v35 = vsel %vm1494_vm4, %v1493_v34, %v1487_v33 }
 0x4fa   : > { %v1491_v36 = vpop.permute.xlu1 %1490 }
 0x4fb   : > { %v1497_v37 = vsel %vm1496_vm5, %v1495_v35, %v1491_v36 }
 0x4fc   : > { %3027 = vmatmul.mubr.msk.f32.vlgmr.msra.gmra.mrb[6].mxu0 %vm739_vm1, %v1497_v37 }
 0x4fd   : > { %3048 = vmatprep.mubr.msk.f32.mxu0 %vm3253_vm0, %v3254_v6 }
 0x5cf   : > { %v1578_v39 = vpop.f32.mrb[6].mxu0 }
 0x5d0   : > { %v1579_v40 = vadd.f32 %v2864_v38, %v1578_v39  ;;  %v3028_v41 = vpop.f32.mrb[7].mxu0 }
 0x5d2   : > { %v1582_v42 = vadd.f32 %v1579_v40, %v3423_v8  ;;  %v3151_v8 = vpack.c.bf16 %v1698_v50, %v1697_v49 }
 0x5d4   : > { %v1585_v43 = vsel %vm739_vm1, %v1582_v42, 0.0  ;;  %3152 = vmatpush3.bf16.msra.mxu0 %v3151_v8 }
 0x5d5   : > { %1586 = vadd.xlane.f32.xlu0 %v1585_v43  ;;  %3153 = vmatprep.subr.bf16.mxu0 %v3252_v3 }
 0x5d8   : > { %3155 = vmatpush3.bf16.msra.mxu0 %v3154_v53 }
 0x5d9   : > { %3061 = vmatprep.subr.mxu0 %v3254_v6 }
 0x5db   : > { %3049 = vmatmul.mubr.msk.f32.vlgmr.msra.gmra.mrb[8].mxu0 %vm739_vm1, %v724_v54 }
 0x5dc   : > { %3063 = vmatprep.mubr.msk.f32.mxu0 %vm3253_vm0, %v3254_v6 }
 0x662   : > { %v1587_v44 = vpop.xlane.xlu0 %1586 }
 0x663   : > { %v1589_v45 = vmul.f32 0.03125, %v1587_v44 }
 0x665   : > { %v1590_v46 = vsub.f32 %v1582_v42, %v1589_v45 }
 0x667   : > { %v1591_v47 = vmul.f32 %v1590_v46, %v1590_v46 }
 0x669   : > { %v1592_v48 = vsel %vm739_vm1, %v1591_v47, 0.0 }
 0x66a   : > { %1593 = vadd.xlane.f32.xlu1 %v1592_v48 }
 0x6ae   : > { %v1777_v10 = vpop.f32.mrb[8].mxu0 }
 0x6af   : > { %v3580_v11 = vadd.f32 %v2870_v9, %v1777_v10  ;;  %v3050_v12 = vpop.f32.mrb[9].mxu0 }
 0x6b1   : > { %1947 = vrot.lane.b32.xlu0 %v3580_v11, %s3255_s26 }
 0x6b5   : > { %2113 = vrot.lane.b32.xlu0 %v3580_v11, %s3798_s27 }
 0x6b9   : > { %2279 = vrot.lane.b32.xlu0 %v3580_v11, %s3799_s29 }
 0x6f7   : > { %v1594_v61 = vpop.xlane.xlu1 %1593 }
 0x6f8   : > { %v1595_v62 = vmul.f32 0.03125, %v1594_v61 }
 0x6fa   : > { %v1596_v63 = vadd.f32 1e-05, %v1595_v62 }
 0x6fc   : > { %3222 = vrsqrt.f32 %v1596_v63 }
 0x706   : > { %v3223_v0 = vpop.eup %3222 }
 0x707   : > { %v1598_v2 = vmul.f32 %v3223_v0, %v1590_v46 }
 0x709   : > { %v1605_v5 = vmul.f32 %v2866_v1, %v1598_v2 }
 0x70b   : > { %v3571_v7 = vadd.f32 %v2867_v4, %v1605_v5 }
 0x70d   : > { %3038 = vmatmul.mubr.msk.f32.vlgmr.msra.gmra.mrb[12].mxu1 %vm739_vm1, %v3571_v7 }
 0x70e   : > { %3053 = vmatprep.mubr.msk.f32.mxu1 %vm3253_vm0, %v3254_v6  ;;  %3052 = vmatpush3.xpose.msk.msra.mxu1 %vm816_vm2, %v3580_v11 }
 0x70f   : > { %3056 = vmatprep.subr.mxu1 %v3254_v6 }
 0x723   : > { %v1948_v13 = vpop.permute.xlu0 %1947 }
 0x724   : > { %3062 = vmatpush3.xpose.msk.msra.mxu0 %vm816_vm2, %v1948_v13 }
 0x725   : > { %3071 = vmatprep.subr.mxu0 %v3254_v6 }
 0x727   : > { %v2114_v18 = vpop.permute.xlu0 %2113 }
 0x72b   : > { %v2280_v21 = vpop.permute.xlu0 %2279 }
 0x7e0   : > { %v1693_v15 = vpop.f32.mrb[12].mxu1 }
 0x7e1   : > { %v1694_v16 = vadd.f32 %v2868_v14, %v1693_v15  ;;  %v3039_v17 = vpop.f32.mrb[13].mxu1 }
 0x7e2   : > { %v2459_v17 = vld [vmem:[%s3758_s13 + $0x8] sm:$0xff] }
 0x7e3   : > { %1945 = vrot.lane.b32.xlu1 %v1694_v16, %s3255_s26  ;;  %3054 = vmatmul.mubr.msk.f32.vlgmr.msra.gmra.mrb[14].mxu1 %vm816_vm2, %v1694_v16  ;;  %s3800_s26 = smov 96  }
 0x7e4   : > { %3058 = vmatprep.mubr.msk.f32.mxu1 %vm3253_vm0, %v3254_v6 }
 0x7e7   : > { %2111 = vrot.lane.b32.xlu1 %v1694_v16, %s3798_s27 }
 0x7eb   : > { %2277 = vrot.lane.b32.xlu1 %v1694_v16, %s3799_s29  ;;  %v2458_v16 = vld [vmem:[%s3758_s13] sm:$0xff] }
 0x855   : > { %v1946_v19 = vpop.permute.xlu1 %1945 }
 0x856   : > { %3064 = vmatmul.mubr.msk.f32.vlgmr.msra.gmra.mrb[10].mxu0 %vm816_vm2, %v1946_v19  ;;  %v2460_v19 = vld [vmem:[%s3758_s13 + $0x10] sm:$0xff] }
 0x857   : > { %3072 = vmatpush3.xpose.msk.msra.mxu0 %vm816_vm2, %v2114_v18  ;;  %3073 = vmatprep.mubr.msk.f32.mxu0 %vm3253_vm0, %v3254_v6  ;;  %v3157_v18 = vpack.c.bf16 %v2459_v17, %v2458_v16 }
 0x858   : > { %3081 = vmatprep.subr.mxu0 %v3254_v6 }
 0x859   : > { %v2112_v20 = vpop.permute.xlu1 %2111 }
 0x85a   : > { %3074 = vmatmul.mubr.msk.f32.vlgmr.msra.gmra.mrb[12].mxu0 %vm816_vm2, %v2112_v20  ;;  %v2461_v20 = vld [vmem:[%s3758_s13 + $0x18] sm:$0xff] }
 0x85b   : > { %3082 = vmatpush3.xpose.msk.msra.mxu0 %vm816_vm2, %v2280_v21  ;;  %3083 = vmatprep.mubr.msk.f32.mxu0 %vm3253_vm0, %v3254_v6  ;;  %v3160_v21 = vpack.c.bf16 %v2461_v20, %v2460_v19 }
 0x85c   : > { %3156 = vmatprep.subr.bf16.mxu0 %v3252_v3 }
 0x85d   : > { %v2278_v22 = vpop.permute.xlu1 %2277 }
 0x85e   : > { %3084 = vmatmul.mubr.msk.f32.vlgmr.msra.gmra.mrb[14].mxu0 %vm816_vm2, %v2278_v22 }
 0x85f   : > { %3099 = vmatprep.mubr.msk.f32.mxu0 %vm3253_vm0, %v3254_v6  ;;  %3158 = vmatpush3.bf16.msra.mxu0 %v3157_v18 }
 0x860   : > { %3159 = vmatprep.subr.bf16.mxu0 %v3252_v3 }
 0x863   : > { %3161 = vmatpush3.bf16.msra.mxu0 %v3160_v21 }
 0x864   : > { %3168 = vmatprep.subr.bf16.mxu0 %v3252_v3 }
 0x8b6   : > { %v1853_v23 = vpop.f32.mrb[14].mxu1 }
 0x8b7   : > { %v1857_v24 = vmul.f32 0.35355338, %v1853_v23  ;;  %v3055_v25 = vpop.f32.mrb[15].mxu1 }
 0x8b9   : > { %v1858_v26 = vsel %vm816_vm2, %v1857_v24, -inf }
 0x8ba   : > { %1859 = vmax.xlane.f32.xlu0 %v1858_v26 }
 0x929   : > { %v2019_v27 = vpop.f32.mrb[10].mxu0 }
 0x92a   : > { %v2023_v28 = vmul.f32 0.35355338, %v2019_v27  ;;  %v3065_v29 = vpop.f32.mrb[11].mxu0 }
 0x92c   : > { %v2024_v30 = vsel %vm816_vm2, %v2023_v28, -inf }
 0x92d   : > { %2025 = vmax.xlane.f32.xlu1 %v2024_v30  ;;  %v2185_v31 = vpop.f32.mrb[12].mxu0 }
 0x92e   : > { %v2189_v32 = vmul.f32 0.35355338, %v2185_v31  ;;  %v3075_v33 = vpop.f32.mrb[13].mxu0 }
 0x930   : > { %v2190_v34 = vsel %vm816_vm2, %v2189_v32, -inf }
 0x931   : > { %v2351_v35 = vpop.f32.mrb[14].mxu0  ;;  %2191 = vmax.xlane.f32.xlu0 %v2190_v34  ;;  %v2884_v34 = vld [vmem:[%s3759_s14] ss:$0 sm:$0xff] }
 0x932   : > { %v2355_v36 = vmul.f32 0.35355338, %v2351_v35  ;;  %v3085_v37 = vpop.f32.mrb[15].mxu0 }
 0x934   : > { %v2356_v38 = vsel %vm816_vm2, %v2355_v36, -inf }
 0x935   : > { %2357 = vmax.xlane.f32.xlu0 %v2356_v38 }
 0x93e   : > { %1869 = vrot.lane.b32.xlu1 %v3580_v11, %s3800_s26  ;;  %s722_s26 = scalar_lea.vmem %s3768_s23, %s3417_s28 }
 0x947   : > { %v1860_v39 = vpop.xlane.xlu0 %1859 }
 0x948   : > { %v1861_v40 = vsub.f32 %v1857_v24, %v1860_v39 }
 0x94a   : > { %v1862_v41 = vmul.f32 1.442695, %v1861_v40 }
 0x94c   : > { %3224 = vpow2.f32 %v1862_v41 }
 0x956   : > { %v3225_v42 = vpop.eup %3224 }
 0x957   : > { %v1864_v43 = vsel %vm816_vm2, %v3225_v42, 0.0 }
 0x962   : > { %1865 = vadd.xlane.f32.xlu1 %v1864_v43 }
 0x9ba   : > { %v2026_v44 = vpop.xlane.xlu1 %2025 }
 0x9bb   : > { %v2027_v45 = vsub.f32 %v2023_v28, %v2026_v44 }
 0x9bd   : > { %v2028_v46 = vmul.f32 1.442695, %v2027_v45  ;;  %v2573_v45 = vld [vmem:[%s3762_s17 + $0x8] sm:$0xff] }
 0x9be   : > { %v1870_v47 = vpop.permute.xlu1 %1869  ;;  %v2192_v48 = vpop.xlane.xlu0 %2191 }
 0x9bf   : > { %3226 = vpow2.f32 %v2028_v46  ;;  %v2193_v49 = vsub.f32 %v2189_v32, %v2192_v48  ;;  %3057 = vmatpush3.msra.mxu1 %v1870_v47  ;;  %v2575_v47 = vld [vmem:[%s3762_s17 + $0x18] sm:$0xff] }
 0x9c0   : > { %3066 = vmatprep.subr.mxu1 %v3254_v6 }
 0x9c1   : > { %v2194_v50 = vmul.f32 1.442695, %v2193_v49  ;;  %v2657_v49 = vld [vmem:[%s3764_s19] sm:$0xff] }
 0x9c2   : > { %v2358_v8 = vpop.xlane.xlu0 %2357 }
 0x9c3   : > { %3228 = vpow2.f32 %v2194_v50  ;;  %v2359_v51 = vsub.f32 %v2355_v36, %v2358_v8  ;;  %v2658_v50 = vld [vmem:[%s3764_s19 + $0x8] sm:$0xff]  ;;  %v2659_v8 = vld [vmem:[%s3764_s19 + $0x10] sm:$0xff] }
 0x9c5   : > { %v2360_v52 = vmul.f32 1.442695, %v2359_v51  ;;  %v3169_v51 = vpack.c.bf16 %v2658_v50, %v2657_v49 }
 0x9c7   : > { %3230 = vpow2.f32 %v2360_v52  ;;  %v2660_v52 = vld [vmem:[%s3764_s19 + $0x18] sm:$0xff] }
 0x9c9   : > { %v3227_v53 = vpop.eup %3226 }
 0x9ca   : > { %v2030_v54 = vsel %vm816_vm2, %v3227_v53, 0.0 }
 0x9cb   : > { %2031 = vadd.xlane.f32.xlu0 %v2030_v54  ;;  %v2661_v54 = vld [vmem:[%s3764_s19 + $0x20] sm:$0xff] }
 0x9cd   : > { %v3229_v55 = vpop.eup %3228 }
 0x9ce   : > { %v2196_v56 = vsel %vm816_vm2, %v3229_v55, 0.0 }
 0x9cf   : > { %2197 = vadd.xlane.f32.xlu1 %v2196_v56 }
 0x9d1   : > { %v3231_v57 = vpop.eup %3230 }
 0x9d2   : > { %v2362_v58 = vsel %vm816_vm2, %v3231_v57, 0.0 }
 0x9d3   : > { %2363 = vadd.xlane.f32.xlu0 %v2362_v58 }
 0x9e0   : > { %2201 = vrot.lane.b32.xlu1 %v3580_v11, %s3801_s30  ;;  %s3804_s30 = smov 8  }
 0x9e4   : > { %2367 = vrot.lane.b32.xlu1 %v3580_v11, %s3802_s6  ;;  %s3805_s6 = smov 16  }
 0x9e9   : > { %2035 = vrot.lane.b32.xlu0 %v3580_v11, %s3803_s7  ;;  %s3806_s7 = smov 24  }
 0x9ef   : > { %v1866_v59 = vpop.xlane.xlu1 %1865 }
 0x9f0   : > { %3232 = vrcp.f32 %v1866_v59 }
 0x9fa   : > { %v3233_v60 = vpop.eup %3232 }
 0x9fb   : > { %v1868_v61 = vmul.f32 %v3233_v60, %v3225_v42 }
 0x9fd   : > { %3059 = vmatmul.mubr.msk.f32.vlgmr.msra.gmra.mrb[16].mxu1 %vm816_vm2, %v1868_v61  ;;  %v2886_v61 = vld [vmem:[%s3760_s15] ss:$0 sm:$0xff] }
 0x9fe   : > { %3068 = vmatprep.mubr.msk.f32.mxu1 %vm3253_vm0, %v3254_v6 }
 0xa58   : > { %v2032_v62 = vpop.xlane.xlu0 %2031 }
 0xa59   : > { %3234 = vrcp.f32 %v2032_v62 }
 0xa5c   : > { %v2198_v63 = vpop.xlane.xlu1 %2197 }
 0xa5d   : > { %3236 = vrcp.f32 %v2198_v63  ;;  %v2887_v63 = vld [vmem:[%s3761_s16] ss:$0 sm:$0xff] }
 0xa60   : > { %v2364_v0 = vpop.xlane.xlu0 %2363  ;;  %v2202_v4 = vpop.permute.xlu1 %2201 }
 0xa61   : > { %3238 = vrcp.f32 %v2364_v0 }
 0xa63   : > { %v3235_v1 = vpop.eup %3234 }
 0xa64   : > { %v2034_v2 = vmul.f32 %v3235_v1, %v3227_v53  ;;  %v2036_v5 = vpop.permute.xlu0 %2035  ;;  %v2368_v11 = vpop.permute.xlu1 %2367  ;;  %v3172_v53 = vpack.c.bf16 %v2660_v52, %v2659_v8 }
 0xa65   : > { %3067 = vmatpush3.msra.mxu1 %v2036_v5  ;;  %v2888_v5 = vld [vmem:[%s3763_s18] ss:$0 sm:$0xff] }
 0xa66   : > { %3069 = vmatmul.mubr.msk.f32.vlgmr.msra.gmra.mrb[18].mxu1 %vm816_vm2, %v2034_v2  ;;  %3076 = vmatprep.subr.mxu1 %v3254_v6  ;;  %v2664_v2 = vld [vmem:[%s3764_s19 + $0x38] sm:$0xff] }
 0xa67   : > { %v3237_v9 = vpop.eup %3236  ;;  %3077 = vmatpush3.msra.mxu1 %v2202_v4  ;;  %3078 = vmatprep.mubr.msk.f32.mxu1 %vm3253_vm0, %v3254_v6 }
 0xa68   : > { %v2200_v10 = vmul.f32 %v3237_v9, %v3229_v55  ;;  %3086 = vmatprep.subr.mxu1 %v3254_v6  ;;  %v2662_v55 = vld [vmem:[%s3764_s19 + $0x28] sm:$0xff] }
 0xa69   : > { %v3175_v56 = vpack.c.bf16 %v2662_v55, %v2661_v54 }
 0xa6a   : > { %3079 = vmatmul.mubr.msk.f32.vlgmr.msra.gmra.mrb[20].mxu1 %vm816_vm2, %v2200_v10 }
 0xa6b   : > { %v3239_v12 = vpop.eup %3238  ;;  %3087 = vmatpush3.msra.mxu1 %v2368_v11  ;;  %3088 = vmatprep.mubr.msk.f32.mxu1 %vm3253_vm0, %v3254_v6 }
 0xa6c   : > { %v2366_v13 = vmul.f32 %v3239_v12, %v3231_v57  ;;  %3162 = vmatprep.subr.bf16.mxu1 %v3252_v3 }
 0xa6e   : > { %3089 = vmatmul.mubr.msk.f32.vlgmr.msra.gmra.mrb[22].mxu1 %vm816_vm2, %v2366_v13  ;;  %v2890_v13 = vld [vmem:[%s3765_s20] ss:$0 sm:$0xff] }
 0xa6f   : > { %3110 = vmatprep.mubr.msk.f32.mxu1 %vm3253_vm0, %v3254_v6 }
 0xad0   : > { %v1941_v14 = vpop.f32.mrb[16].mxu1 }
 0xad1   : > { %v3060_v15 = vpop.f32.mrb[17].mxu1 }
 0xb39   : > { %v2107_v22 = vpop.f32.mrb[18].mxu1 }
 0xb3a   : > { %2444 = vrot.lane.b32.xlu0 %v2107_v22, %s3804_s30  ;;  %v3070_v23 = vpop.f32.mrb[19].mxu1 }
 0xb3d   : > { %v2273_v24 = vpop.f32.mrb[20].mxu1 }
 0xb3e   : > { %2448 = vrot.lane.b32.xlu1 %v2273_v24, %s3805_s6  ;;  %v3080_v25 = vpop.f32.mrb[21].mxu1 }
 0xb41   : > { %v2439_v26 = vpop.f32.mrb[22].mxu1 }
 0xb42   : > { %2452 = vrot.lane.b32.xlu0 %v2439_v26, %s3806_s7  ;;  %v3090_v27 = vpop.f32.mrb[23].mxu1 }
 0xbac   : > { %v2445_v28 = vpop.permute.xlu0 %2444 }
 0xbad   : > { %v2455_v30 = vsel %vm816_vm2, %v1941_v14, %v2445_v28  ;;  %v2892_v28 = vld [vmem:[%s3766_s21] ss:$0 sm:$0xff] }
 0xbb0   : > { %v2449_v29 = vpop.permute.xlu1 %2448 }
 0xbb1   : > { %v2456_v31 = vsel %vm1494_vm4, %v2455_v30, %v2449_v29  ;;  %v2893_v30 = vld [vmem:[%s3767_s22] ss:$0 sm:$0xff] }
 0xbb4   : > { %v2453_v32 = vpop.permute.xlu0 %2452 }
 0xbb5   : > { %v2457_v33 = vsel %vm1496_vm5, %v2456_v31, %v2453_v32 }
 0xbb6   : > { %3100 = vmatmul.mubr.msk.f32.vlgmr.msra.gmra.mrb[16].mxu0 %vm739_vm1, %v2457_v33 }
 0xbb7   : > { %3129 = vmatprep.mubr.msk.f32.mxu0 %vm3253_vm0, %v3254_v6  ;;  %v2572_v6 = vld [vmem:[%s3762_s17] sm:$0xff]  ;;  %3170 = vmatpush3.bf16.msra.mxu0 %v3169_v51 }
 0xbb8   : > { %v3163_v46 = vpack.c.bf16 %v2573_v45, %v2572_v6  ;;  %3171 = vmatprep.subr.bf16.mxu0 %v3252_v3 }
 0xbba   : > { %3164 = vmatpush3.bf16.msra.mxu1 %v3163_v46 }
 0xbbb   : > { %3165 = vmatprep.subr.bf16.mxu1 %v3252_v3  ;;  %3173 = vmatpush3.bf16.msra.mxu0 %v3172_v53 }
 0xbbc   : > { %3174 = vmatprep.subr.bf16.mxu0 %v3252_v3 }
 0xbbf   : > { %3176 = vmatpush3.bf16.msra.mxu0 %v3175_v56 }
 0xbc0   : > { %3177 = vmatprep.subr.bf16.mxu0 %v3252_v3  ;;  %v2663_v3 = vld [vmem:[%s3764_s19 + $0x30] sm:$0xff] }
 0xbc1   : > { %v3178_v4 = vpack.c.bf16 %v2664_v2, %v2663_v3 }
 0xbc3   : > { %3179 = vmatpush3.bf16.msra.mxu0 %v3178_v4 }
 0xc89   : > { %v2538_v35 = vpop.f32.mrb[16].mxu0 }
 0xc8a   : > { %v2539_v36 = vadd.f32 %v2884_v34, %v2538_v35  ;;  %v3101_v37 = vpop.f32.mrb[17].mxu0 }
 0xc8c   : > { %v2542_v38 = vadd.f32 %v2539_v36, %v3571_v7  ;;  %v2574_v7 = vld [vmem:[%s3762_s17 + $0x10] sm:$0xff] }
 0xc8d   : > { %v3166_v48 = vpack.c.bf16 %v2575_v47, %v2574_v7 }
 0xc8e   : > { %v2545_v39 = vsel %vm739_vm1, %v2542_v38, 0.0 }
 0xc8f   : > { %2546 = vadd.xlane.f32.xlu1 %v2545_v39  ;;  %3167 = vmatpush3.bf16.msra.mxu1 %v3166_v48 }
 0xd1c   : > { %v2547_v40 = vpop.xlane.xlu1 %2546 }
 0xd1d   : > { %v2548_v41 = vmul.f32 0.03125, %v2547_v40 }
 0xd1f   : > { %v2549_v42 = vsub.f32 %v2542_v38, %v2548_v41 }
 0xd21   : > { %v2550_v43 = vmul.f32 %v2549_v42, %v2549_v42 }
 0xd23   : > { %v2551_v44 = vsel %vm739_vm1, %v2550_v43, 0.0 }
 0xd24   : > { %2552 = vadd.xlane.f32.xlu0 %v2551_v44 }
 0xdb1   : > { %v2553_v57 = vpop.xlane.xlu0 %2552 }
 0xdb2   : > { %v2554_v58 = vmul.f32 0.03125, %v2553_v57 }
 0xdb4   : > { %v2555_v59 = vadd.f32 1e-05, %v2554_v58 }
 0xdb6   : > { %3240 = vrsqrt.f32 %v2555_v59 }
 0xdc0   : > { %v3241_v60 = vpop.eup %3240 }
 0xdc1   : > { %v2557_v62 = vmul.f32 %v3241_v60, %v2549_v42 }
 0xdc3   : > { %v2564_v0 = vmul.f32 %v2886_v61, %v2557_v62 }
 0xdc5   : > { %v2571_v1 = vadd.f32 %v2887_v63, %v2564_v0 }
 0xdc7   : > { %3111 = vmatmul.mubr.msk.f32.vlgmr.msra.gmra.mrb[24].mxu1 %vm739_vm1, %v2571_v1 }
 0xe9a   : > { %v2652_v9 = vpop.f32.mrb[24].mxu1 }
 0xe9b   : > { %v2653_v10 = vadd.f32 %v2888_v5, %v2652_v9  ;;  %v3112_v11 = vpop.f32.mrb[25].mxu1 }
 0xe9d   : > { %v2656_v12 = vmax.f32 %v2653_v10, 0.0 }
 0xe9f   : > { %3130 = vmatmul.mubr.msk.f32.vlgmr.msra.gmra.mrb[18].mxu0 %vm2672_vm6, %v2656_v12 }
 0xf72   : > { %v2742_v14 = vpop.f32.mrb[18].mxu0 }
 0xf73   : > { %v2743_v15 = vadd.f32 %v2890_v13, %v2742_v14  ;;  %v3131_v16 = vpop.f32.mrb[19].mxu0 }
 0xf75   : > { %v2746_v17 = vadd.f32 %v2743_v15, %v2571_v1 }
 0xf77   : > { %v2749_v18 = vsel %vm739_vm1, %v2746_v17, 0.0 }
 0xf78   : > { %2750 = vadd.xlane.f32.xlu0 %v2749_v18 }
0x1005   : > { %v2751_v19 = vpop.xlane.xlu0 %2750 }
0x1006   : > { %v2752_v20 = vmul.f32 0.03125, %v2751_v19 }
0x1008   : > { %v2753_v21 = vsub.f32 %v2746_v17, %v2752_v20 }
0x100a   : > { %v2754_v22 = vmul.f32 %v2753_v21, %v2753_v21 }
0x100c   : > { %v2755_v23 = vsel %vm739_vm1, %v2754_v22, 0.0 }
0x100d   : > { %2756 = vadd.xlane.f32.xlu1 %v2755_v23 }
0x109a   : > { %v2757_v24 = vpop.xlane.xlu1 %2756 }
0x109b   : > { %v2758_v25 = vmul.f32 0.03125, %v2757_v24 }
0x109d   : > { %v2759_v26 = vadd.f32 1e-05, %v2758_v25 }
0x109f   : > { %3242 = vrsqrt.f32 %v2759_v26 }
0x10a9   : > { %v3243_v27 = vpop.eup %3242 }
0x10aa   : > { %v2761_v29 = vmul.f32 %v3243_v27, %v2753_v21 }
0x10ac   : > { %v2768_v31 = vmul.f32 %v2892_v28, %v2761_v29 }
0x10ae   : > { %v2775_v32 = vadd.f32 %v2893_v30, %v2768_v31 }
0x10b0   : > { %2776 = vst.msk [vmem:[%s722_s26] sm:$0xff] %vm739_vm1, %v2775_v32 }
0x10b1 PF: > { %s33_s4 = sadd.s32 1, %s3250_s4  }
0x10b2   : > { %p30_p4 = scmp.ge.s32.totalorder %s33_s4, 4  }
0x10b4   :  { %32 = sbr.rel (!%p30_p4) target bundleno = 9 (0x9), region = 145 }

// kernel: transformer_forward.8
= control target key start
LH: loop header
LB: loop body
LE: loop exit
PB: predicated region body
PF: predicated region fallthrough
CT: control target
= control target key end

     0   :  { %s4040_s0 = inlined_call_operand.vmem [shape: f32[2,8,32], index: 0, kind: input, shape index: {}]   ;;  %s4041_s1 = inlined_call_operand.vmem [shape: f32[2,8,32], index: 1, kind: input, shape index: {}]   ;;  %s4042_s2 = inlined_call_operand.vmem [shape: f32[8,8], index: 2, kind: input, shape index: {}]   ;;  %s4043_s3 = inlined_call_operand.vmem [shape: f32[32,96], index: 3, kind: input, shape index: {}]   ;;  %s4044_s4 = inlined_call_operand.vmem [shape: f32[1,96], index: 4, kind: input, shape index: {}]   ;;  %s4045_s5 = inlined_call_operand.vmem [shape: f32[32,32], index: 5, kind: input, shape index: {}]   ;;  %s4046_s6 = inlined_call_operand.vmem [shape: f32[1,32], index: 6, kind: input, shape index: {}]   ;;  %s4047_s7 = inlined_call_operand.vmem [shape: f32[1,32], index: 7, kind: input, shape index: {}]   ;;  %s4048_s8 = inlined_call_operand.vmem [shape: f32[1,32], index: 8, kind: input, shape index: {}]   ;;  %s4049_s9 = inlined_call_operand.vmem [shape: f32[32,32], index: 9, kind: input, shape index: {}]   ;;  %s4050_s10 = inlined_call_operand.vmem [shape: f32[1,32], index: 10, kind: input, shape index: {}]   ;;  %s4051_s11 = inlined_call_operand.vmem [shape: f32[32,64], index: 11, kind: input, shape index: {}]   ;;  %s4052_s12 = inlined_call_operand.vmem [shape: f32[1,64], index: 12, kind: input, shape index: {}]   ;;  %s4053_s13 = inlined_call_operand.vmem [shape: f32[32,32], index: 13, kind: input, shape index: {}]   ;;  %s4054_s14 = inlined_call_operand.vmem [shape: f32[1,32], index: 14, kind: input, shape index: {}]   ;;  %s4055_s15 = inlined_call_operand.vmem [shape: f32[1,32], index: 15, kind: input, shape index: {}]   ;;  %s4056_s16 = inlined_call_operand.vmem [shape: f32[1,32], index: 16, kind: input, shape index: {}]   ;;  %s4057_s17 = inlined_call_operand.vmem [shape: f32[32,64], index: 17, kind: input, shape index: {}]   ;;  %s4058_s18 = inlined_call_operand.vmem [shape: f32[1,64], index: 18, kind: input, shape index: {}]   ;;  %s4059_s19 = inlined_call_operand.vmem [shape: f32[64,32], index: 19, kind: input, shape index: {}]   ;;  %s4060_s20 = inlined_call_operand.hbm [shape: f32[1,32], index: 20, kind: input, shape index: {}]   ;;  %s4061_s21 = inlined_call_operand.hbm [shape: f32[1,32], index: 21, kind: input, shape index: {}]   ;;  %s4062_s22 = inlined_call_operand.hbm [shape: f32[1,32], index: 22, kind: input, shape index: {}]   ;;  %s4063_s23 = inlined_call_operand.vmem [shape: f32[2,8,32], index: 23, kind: output, shape index: {}]  }
   0x1   :  { %4076 = sst [smem:[#allocation10_spill]] %s4040_s0 }
   0x2   :  { %4077 = sst [smem:[#allocation11_spill]] %s4041_s1 }
   0x3   :  { %4078 = sst [smem:[#allocation12_spill]] %s4042_s2 }
   0x4   :  { %4079 = sst [smem:[#allocation13_spill]] %s4043_s3 }
   0x5   :  { %4080 = sst [smem:[#allocation14_spill]] %s4044_s4 }
   0x6   :  { %4081 = sst [smem:[#allocation15_spill]] %s4045_s5 }
   0x7   :  { %4082 = sst [smem:[#allocation16_spill]] %s4046_s6 }
   0x8   :  { %4083 = sst [smem:[#allocation17_spill]] %s4047_s7 }
   0x9   :  { %4084 = sst [smem:[#allocation18_spill]] %s4063_s23 }
   0xa   :  { %28 = vsyncpa [#allocation3], 0 }
   0xb   :  { %29 = vsyncpa [#allocation5], 0  ;;  %s3591_s4 = smov 0  }
   0xc LB: > { %4085 = sst [smem:[#allocation9_spill]] %s3448_s4  ;;  %s3597_s30 = sadd.s32 4294967295, %s3448_s4   ;;  %s3448_s4 = sphi %s3591_s4, %s35_s4  }
   0xd   : > { %p2913_p0 = scmp.ge.s32.totalorder %s3448_s4, 1  ;;  %p559_p1 = scmp.lt.s32.totalorder %s3448_s4, 3 }
   0xe   : > { %p4066_p2 = scmp.eq.s32.totalorder %s3597_s30, 0  ;;  %s3450_s25 = smov [#allocation4]  }
   0xf   : > { %p3602_p3 = pnand %p2913_p0, %p559_p1  ;;  %s637_s5 = sshll.u32 %s3450_s25, 4  ;;  %s638_s5 = int_to_ptr.vmem [resolvable:$true] %s637_s5 }
  0x10   : > { %s3451_s1 = smov [#allocation2]   ;;  %s3452_s2 = smov [#allocation6]  }
  0x11   : > { %s4086_s24 = scalar_select %p3602_p3, 1, 0 }
  0x12   : > { %p3267_p4 = pneg %p3602_p3  ;;  %s626_s26 = sshll.u32 %s3451_s1, 4  ;;  %s3614_s26 = int_to_ptr.vmem [resolvable:$true] %s626_s26 }
  0x13   : > { %s648_s6 = sshll.u32 %s3452_s2, 4  ;;  %s3350_s29 = scalar_lea.hbm %s4061_s21, 16  ;;  %s3616_s6 = int_to_ptr.vmem [resolvable:$true] %s648_s6 }
  0x14   : > { %p3610_p5 = pnand %p4066_p2, %p3267_p4  ;;  %p3351_p6 = scmp.ne.s32.totalorder %s4061_s21, %s3350_s29 }
  0x15   : > { %p3357_p10 = scmp.lt.u32.totalorder %s3350_s29, %s4061_s21 }
  0x16   : > { %p3626_p7 = pneg %p3610_p5 }
  0x18   : > { %p3353_p8 = pnand %p3626_p7, %p3351_p6 }
  0x1a   : > { %p3354_p9 = pneg %p3353_p8 }
  0x1c   : > { %p3359_p11 = pnand %p3357_p10, %p3354_p9 }
  0x1e   : > { %3362 = shalt.err (!%p3359_p11)
}
  0x1f   : > { %s3363_s7 = scalar_lea.vmem %s638_s5, 16  ;;  %s3370_s28 = scalar_lea.vmem %s638_s5, 32 }
  0x20   : > { %p3364_p12 = scmp.ne.s32.totalorder %s638_s5, %s3363_s7  ;;  %p3371_p1 = scmp.lt.s32.totalorder %s638_s5, %s638_s5 }
  0x21   : > { %p3372_p4 = scmp.lt.s32.totalorder %s3370_s28, %s3363_s7 }
  0x22   : > { %p3366_p13 = pnand %p3364_p12, %p3626_p7 }
  0x23   : > { %p3373_p2 = por %p3372_p4, %p3371_p1 }
  0x24   : > { %p3367_p0 = pneg %p3366_p13 }
  0x26   : > { %p3374_p3 = pnand %p3373_p2, %p3367_p0 }
  0x28   : > { %3377 = shalt.err (!%p3374_p3)
}
  0x29   : > { %3273 = dma.hbm_to_vmem [thread:$0]  (!%p3610_p5), %s4061_s21, 16, %s638_s5, [#allocation5]  }
  0x2a   : > { %s3378_s2 = scalar_lea.hbm %s4060_s20, 16 }
  0x2b   : > { %p3379_p6 = scmp.ne.s32.totalorder %s4060_s20, %s3378_s2  ;;  %p3385_p2 = scmp.lt.u32.totalorder %s3378_s2, %s4060_s20 }
  0x2d   : > { %p3381_p8 = pnand %p3379_p6, %p3626_p7 }
  0x2f   : > { %p3382_p9 = pneg %p3381_p8 }
  0x31   : > { %p3387_p3 = pnand %p3385_p2, %p3382_p9 }
  0x33   : > { %3390 = shalt.err (!%p3387_p3)
}
  0x34   : > { %s3391_s5 = scalar_lea.vmem %s3614_s26, 16  ;;  %s3398_s23 = scalar_lea.vmem %s3614_s26, 32 }
  0x35   : > { %p3392_p10 = scmp.ne.s32.totalorder %s3614_s26, %s3391_s5  ;;  %p3399_p13 = scmp.lt.s32.totalorder %s3614_s26, %s3614_s26 }
  0x36   : > { %p3400_p0 = scmp.lt.s32.totalorder %s3398_s23, %s3391_s5 }
  0x37   : > { %p3394_p11 = pnand %p3392_p10, %p3626_p7 }
  0x38   : > { %p3401_p1 = por %p3400_p0, %p3399_p13 }
  0x39   : > { %p3395_p12 = pneg %p3394_p11 }
  0x3b   : > { %p3402_p4 = pnand %p3401_p1, %p3395_p12 }
  0x3d   : > { %3405 = shalt.err (!%p3402_p4)
}
  0x3e   : > { %3270 = dma.hbm_to_vmem [thread:$0]  (!%p3610_p5), %s4060_s20, 16, %s3614_s26, [#allocation3]  }
  0x3f   : > { %s3406_s1 = scalar_lea.hbm %s4062_s22, 16 }
  0x40   : > { %p3407_p6 = scmp.ne.s32.totalorder %s4062_s22, %s3406_s1  ;;  %p3413_p2 = scmp.lt.u32.totalorder %s3406_s1, %s4062_s22 }
  0x42   : > { %p3409_p8 = pnand %p3407_p6, %p3626_p7 }
  0x44   : > { %p3410_p9 = pneg %p3409_p8 }
  0x46   : > { %p3415_p3 = pnand %p3413_p2, %p3410_p9 }
  0x48   : > { %3418 = shalt.err (!%p3415_p3)
}
  0x49   : > { %s3419_s26 = scalar_lea.vmem %s3616_s6, 16  ;;  %s3426_s23 = scalar_lea.vmem %s3616_s6, 32 }
  0x4a   : > { %p3420_p10 = scmp.ne.s32.totalorder %s3616_s6, %s3419_s26  ;;  %p3427_p13 = scmp.lt.s32.totalorder %s3616_s6, %s3616_s6 }
  0x4b   : > { %p3428_p0 = scmp.lt.s32.totalorder %s3426_s23, %s3419_s26 }
  0x4c   : > { %p3422_p11 = pnand %p3420_p10, %p3626_p7 }
  0x4d   : > { %p3429_p1 = por %p3428_p0, %p3427_p13 }
  0x4e   : > { %p3423_p12 = pneg %p3422_p11 }
  0x50   : > { %p3430_p4 = pnand %p3429_p1, %p3423_p12 }
  0x52   : > { %3433 = shalt.err (!%p3430_p4)
}
  0x53   : > { %3276 = dma.hbm_to_vmem [thread:$0]  (!%p3610_p5), %s4062_s22, 16, %s3616_s6, [#allocation5]  }
  0x54   : > { %p4089_p6 = scmp.ne.s32.totalorder %s4086_s24, 0 }
  0x55   : > { %p4090_p7 = scmp.eq.s32.totalorder (!%p4089_p6), %s3597_s30, 0 }
  0x56   : > { %675 = sbr.rel (%p4089_p6) target bundleno = 4357 (0x1105), region = 112 }
  0x5d   : > { %3439 = dma.done.wait (%p4090_p7), [#allocation3], 16   ;;  %p4091_p8 = pmov %p4090_p7 }
  0x5e   : > { %p4092_p9 = pmov %p4090_p7 }
  0x5f   : > { %3441 = vsyncadd (%p4091_p8), [#allocation3], 4294967280 }
  0x60   : > { %3443 = dma.done.wait (%p4092_p9), [#allocation5], 32   ;;  %p4093_p2 = pmov %p4090_p7 }
  0x61   : > { %p749_p3 = scmp.lt.s32.totalorder %s3597_s30, 1  ;;  %v3453_v0 = vmov 0.0|0.0   ;;  %vm3454_vm0 = vmmov 0   ;;  %v3455_v1 = vmov 0.0   ;;  %s4094_s27 = sld [smem:[#allocation13_spill]]  ;;  %vm777_vm1 = vcmask 261120  }
  0x62   : > { %3445 = vsyncadd (%p4093_p2), [#allocation5], 4294967264  ;;  %3207 = vmatprep.subr.bf16.mxu1 %v3453_v0  ;;  %3050 = vmatprep.mubr.msk.f32.mxu1 %vm3454_vm0, %v3455_v1  ;;  %s4095_s23 = sld [smem:[#allocation10_spill]]  ;;  %s4096_s24 = sld [smem:[#allocation14_spill]]  ;;  %vm854_vm2 = vcmask 64512   ;;  %vm1532_vm4 = vcmask 130048  }
  0x63   : > { %3063 = vmatprep.subr.mxu0 %v3455_v1  ;;  %3065 = vmatprep.mubr.msk.f32.mxu0 %vm3454_vm0, %v3455_v1  ;;  %s4112_s30 = smov (!%p749_p3, %s3597_s30), 1  ;;  %s3456_s6 = smov 120   ;;  %v3463_v22 = vmov -1e+09   ;;  %vm1534_vm5 = vcmask 195584   ;;  %vm2710_vm6 = vcmask 523264  }
  0x64   : > { %s3720_s28 = sshll.u32 %s4112_s30, 3  ;;  %s4075_s25 = smov 96  }
  0x65   : > { %s4074_s0 = smov 80   ;;  %s4069_s29 = smov 88  }
  0x66   : > { %s4073_s1 = smov 72   ;;  %s3461_s2 = smov 112  }
  0x67   : > { %v766_v2 = vld [vmem:[%s4094_s27] sm:$0xff]  ;;  %v767_v3 = vld [vmem:[%s4094_s27 + $0x8] sm:$0xff]  ;;  %v768_v4 = vld [vmem:[%s4094_s27 + $0x10] sm:$0xff]  ;;  %s3462_s7 = smov 104   ;;  %s3465_s30 = smov 64  }
  0x68   : > { %v3208_v5 = vpack.c.bf16 %v767_v3, %v766_v2  ;;  %v769_v6 = vld [vmem:[%s4094_s27 + $0x18] sm:$0xff]  ;;  %s752_s4 = scalar_lea.vmem %s4095_s23, %s3720_s28  ;;  %v2925_v9 = vld [vmem:[%s4096_s24] ss:$0 sm:$0xff]  ;;  %s4097_s23 = sld [smem:[#allocation12_spill]] }
  0x69   : > { %v3211_v7 = vpack.c.bf16 %v769_v6, %v768_v4  ;;  %v3727_v8 = vld [vmem:[%s752_s4] sm:$0xff]  ;;  %s3464_s4 = smov 56   ;;  %s3466_s3 = smov 48  }
  0x6a   : > { %3209 = vmatpush3.bf16.msra.mxu1 %v3208_v5  ;;  %s3467_s24 = smov 40   ;;  %s4099_s5 = sld [smem:[#allocation16_spill]] }
  0x6b   : > { %3210 = vmatprep.subr.bf16.mxu1 %v3453_v0 }
  0x6e   : > { %3212 = vmatpush3.bf16.msra.mxu1 %v3211_v7  ;;  %v763_v20 = vld [vmem:[%s4097_s23] sm:$0xff]  ;;  %s4098_s23 = sld [smem:[#allocation15_spill]] }
  0x6f   : > { %3053 = vmatprep.subr.mxu1 %v3455_v1  ;;  %vm764_vm3 = vcmp.ne.f32.partialorder %v763_v20, 0.0 }
  0x70   : > { %v765_v23 = vsel %vm764_vm3, 0.0, %v3463_v22 }
  0x71   : > { %3051 = vmatmul.mubr.msk.f32.vlgmr.msra.gmra.mrb[0].mxu1 %vm777_vm1, %v3727_v8 }
  0x72   : > { %3055 = vmatprep.mubr.msk.f32.mxu1 %vm3454_vm0, %v3455_v1 }
 0x144   : > { %v847_v10 = vpop.f32.mrb[0].mxu1 }
 0x145   : > { %v3737_v11 = vadd.f32 %v2925_v9, %v847_v10  ;;  %v3052_v12 = vpop.f32.mrb[1].mxu1 }
 0x147   : > { %1018 = vrot.lane.b32.xlu1 %v3737_v11, %s3456_s6  ;;  %852 = vrot.lane.b32.xlu0 %v3737_v11, %s4075_s25 }
 0x14b   : > { %1187 = vrot.lane.b32.xlu1 %v3737_v11, %s4074_s0  ;;  %1020 = vrot.lane.b32.xlu0 %v3737_v11, %s4069_s29  ;;  %s4100_s0 = sld [smem:[#allocation11_spill]]  ;;  %s4101_s29 = sld [smem:[#allocation17_spill]] }
 0x14f   : > { %1354 = vrot.lane.b32.xlu1 %v3737_v11, %s4073_s1  ;;  %1185 = vrot.lane.b32.xlu0 %v3737_v11, %s3461_s2  ;;  %s4109_s1 = sld [smem:[#allocation18_spill]] }
 0x151   : > { %s756_s25 = scalar_lea.vmem %s4100_s0, %s3720_s28 }
 0x153   : > { %1352 = vrot.lane.b32.xlu0 %v3737_v11, %s3462_s7 }
 0x155   : > { %s760_s0 = scalar_lea.vmem %s4109_s1, %s3720_s28 }
 0x1b9   : > { %v1019_v13 = vpop.permute.xlu1 %1018  ;;  %v853_v14 = vpop.permute.xlu0 %852 }
 0x1ba   : > { %3054 = vmatpush3.xpose.msk.msra.mxu1 %vm854_vm2, %v853_v14 }
 0x1bb   : > { %3058 = vmatprep.subr.mxu1 %v3455_v1 }
 0x1bd   : > { %3056 = vmatmul.mubr.msk.f32.vlgmr.msra.gmra.mrb[2].mxu1 %vm854_vm2, %v3737_v11  ;;  %v1021_v15 = vpop.permute.xlu0 %1020  ;;  %v1188_v16 = vpop.permute.xlu1 %1187 }
 0x1be   : > { %3064 = vmatpush3.xpose.msk.msra.mxu0 %vm854_vm2, %v1021_v15  ;;  %3060 = vmatprep.mubr.msk.f32.mxu1 %vm3454_vm0, %v3455_v1 }
 0x1bf   : > { %3073 = vmatprep.subr.mxu0 %v3455_v1 }
 0x1c1   : > { %3066 = vmatmul.mubr.msk.f32.vlgmr.msra.gmra.mrb[0].mxu0 %vm854_vm2, %v1019_v13  ;;  %v1186_v17 = vpop.permute.xlu0 %1185  ;;  %v1355_v18 = vpop.permute.xlu1 %1354 }
 0x1c2   : > { %3074 = vmatpush3.xpose.msk.msra.mxu0 %vm854_vm2, %v1188_v16  ;;  %3075 = vmatprep.mubr.msk.f32.mxu0 %vm3454_vm0, %v3455_v1 }
 0x1c3   : > { %3083 = vmatprep.subr.mxu0 %v3455_v1 }
 0x1c5   : > { %3076 = vmatmul.mubr.msk.f32.vlgmr.msra.gmra.mrb[2].mxu0 %vm854_vm2, %v1186_v17  ;;  %v1353_v19 = vpop.permute.xlu0 %1352 }
 0x1c6   : > { %3084 = vmatpush3.xpose.msk.msra.mxu0 %vm854_vm2, %v1355_v18  ;;  %3085 = vmatprep.mubr.msk.f32.mxu0 %vm3454_vm0, %v3455_v1  ;;  %v1536_v18 = vld [vmem:[%s4098_s23] sm:$0xff] }
 0x1c7   : > { %3213 = vmatprep.subr.bf16.mxu0 %v3453_v0 }
 0x1c9   : > { %3086 = vmatmul.mubr.msk.f32.vlgmr.msra.gmra.mrb[4].mxu0 %vm854_vm2, %v1353_v19  ;;  %v1537_v19 = vld [vmem:[%s4098_s23 + $0x8] sm:$0xff] }
 0x1ca   : > { %3101 = vmatprep.mubr.msk.f32.mxu0 %vm3454_vm0, %v3455_v1  ;;  %v3214_v20 = vpack.c.bf16 %v1537_v19, %v1536_v18 }
 0x1cc   : > { %3215 = vmatpush3.bf16.msra.mxu0 %v3214_v20 }
 0x1cd   : > { %3216 = vmatprep.subr.bf16.mxu0 %v3453_v0 }
 0x290   : > { %v925_v21 = vpop.f32.mrb[2].mxu1 }
 0x291   : > { %v929_v24 = vmul.f32 0.35355338, %v925_v21  ;;  %v3057_v25 = vpop.f32.mrb[3].mxu1 }
 0x292   : > { %v1538_v25 = vld [vmem:[%s4098_s23 + $0x10] sm:$0xff] }
 0x293   : > { %v930_v26 = vadd.f32 %v929_v24, %v765_v23 }
 0x294   : > { %v1092_v27 = vpop.f32.mrb[0].mxu0 }
 0x295   : > { %v1096_v28 = vmul.f32 0.35355338, %v1092_v27  ;;  %v3067_v29 = vpop.f32.mrb[1].mxu0  ;;  %v931_v30 = vsel %vm854_vm2, %v930_v26, -inf }
 0x296   : > { %932 = vmax.xlane.f32.xlu1 %v931_v30 }
 0x297   : > { %v1097_v31 = vadd.f32 %v1096_v28, %v765_v23 }
 0x298   : > { %v1259_v32 = vpop.f32.mrb[2].mxu0 }
 0x299   : > { %v1263_v33 = vmul.f32 0.35355338, %v1259_v32  ;;  %v3077_v34 = vpop.f32.mrb[3].mxu0  ;;  %v1098_v35 = vsel %vm854_vm2, %v1097_v31, -inf }
 0x29a   : > { %1099 = vmax.xlane.f32.xlu0 %v1098_v35 }
 0x29b   : > { %v1264_v36 = vadd.f32 %v1263_v33, %v765_v23 }
 0x29c   : > { %v1426_v37 = vpop.f32.mrb[4].mxu0 }
 0x29d   : > { %v1430_v38 = vmul.f32 0.35355338, %v1426_v37  ;;  %v3087_v39 = vpop.f32.mrb[5].mxu0  ;;  %v1265_v40 = vsel %vm854_vm2, %v1264_v36, -inf }
 0x29e   : > { %1266 = vmax.xlane.f32.xlu0 %v1265_v40 }
 0x29f   : > { %v1431_v41 = vadd.f32 %v1430_v38, %v765_v23  ;;  %v2939_v38 = vld [vmem:[%s4099_s5] ss:$0 sm:$0xff] }
 0x2a1   : > { %v1432_v42 = vsel %vm854_vm2, %v1431_v41, -inf }
 0x2a2   : > { %1433 = vmax.xlane.f32.xlu1 %v1432_v42 }
 0x2b3   : > { %1109 = vrot.lane.b32.xlu1 %v3737_v11, %s3464_s4  ;;  %s4071_s4 = smov 16  }
 0x323   : > { %v933_v43 = vpop.xlane.xlu1 %932 }
 0x324   : > { %v934_v44 = vsub.f32 %v930_v26, %v933_v43  ;;  %v1539_v26 = vld [vmem:[%s4098_s23 + $0x18] sm:$0xff] }
 0x325   : > { %v3217_v27 = vpack.c.bf16 %v1539_v26, %v1538_v25 }
 0x326   : > { %v935_v45 = vmul.f32 1.442695, %v934_v44 }
 0x327   : > { %v1100_v46 = vpop.xlane.xlu0 %1099  ;;  %3218 = vmatpush3.bf16.msra.mxu0 %v3217_v27 }
 0x328   : > { %3312 = vpow2.f32 %v935_v45  ;;  %v1101_v47 = vsub.f32 %v1097_v31, %v1100_v46  ;;  %3225 = vmatprep.subr.bf16.mxu0 %v3453_v0 }
 0x32a   : > { %v1102_v48 = vmul.f32 1.442695, %v1101_v47 }
 0x32b   : > { %v1267_v58 = vpop.xlane.xlu0 %1266 }
 0x32c   : > { %3314 = vpow2.f32 %v1102_v48  ;;  %v1268_v59 = vsub.f32 %v1264_v36, %v1267_v58  ;;  %v1653_v58 = vld [vmem:[%s4049_s9 + $0x10] sm:$0xff] }
 0x32e   : > { %v1269_v60 = vmul.f32 1.442695, %v1268_v59  ;;  %v1654_v59 = vld [vmem:[%s4049_s9 + $0x18] sm:$0xff] }
 0x32f   : > { %v1434_v49 = vpop.xlane.xlu1 %1433 }
 0x330   : > { %v1435_v50 = vsub.f32 %v1431_v41, %v1434_v49  ;;  %v1735_v49 = vld [vmem:[%s4051_s11] sm:$0xff] }
 0x332   : > { %v3313_v51 = vpop.eup %3312  ;;  %v1436_v52 = vmul.f32 1.442695, %v1435_v50  ;;  %v1736_v50 = vld [vmem:[%s4051_s11 + $0x8] sm:$0xff] }
 0x333   : > { %v937_v53 = vsel %vm854_vm2, %v3313_v51, 0.0  ;;  %v1110_v63 = vpop.permute.xlu1 %1109 }
 0x334   : > { %3316 = vpow2.f32 %v1436_v52  ;;  %938 = vadd.xlane.f32.xlu0 %v937_v53  ;;  %v1738_v52 = vld [vmem:[%s4051_s11 + $0x18] sm:$0xff] }
 0x335   : > { %3318 = vpow2.f32 %v1269_v60  ;;  %v3223_v60 = vpack.c.bf16 %v1654_v59, %v1653_v58 }
 0x336   : > { %v3315_v54 = vpop.eup %3314 }
 0x337   : > { %v1104_v55 = vsel %vm854_vm2, %v3315_v54, 0.0 }
 0x338   : > { %1105 = vadd.xlane.f32.xlu1 %v1104_v55  ;;  %v1651_v55 = vld [vmem:[%s4049_s9] sm:$0xff] }
 0x33e   : > { %v3317_v56 = vpop.eup %3316 }
 0x33f   : > { %v1438_v57 = vsel %vm854_vm2, %v3317_v56, 0.0  ;;  %v3319_v61 = vpop.eup %3318 }
 0x340   : > { %1439 = vadd.xlane.f32.xlu1 %v1438_v57  ;;  %v1271_v62 = vsel %vm854_vm2, %v3319_v61, 0.0 }
 0x34a   : > { %942 = vrot.lane.b32.xlu0 %v3737_v11, %s3465_s30  ;;  %s4070_s30 = smov 24  }
 0x351   : > { %1276 = vrot.lane.b32.xlu1 %v3737_v11, %s3466_s3  ;;  %s4072_s3 = smov 8  }
 0x369   : > { %1272 = vadd.xlane.f32.xlu0 %v1271_v62 }
 0x37f   : > { %1443 = vrot.lane.b32.xlu0 %v3737_v11, %s3467_s24 }
 0x3c1   : > { %v939_v2 = vpop.xlane.xlu0 %938 }
 0x3c2   : > { %3320 = vrcp.f32 %v939_v2 }
 0x3c5   : > { %v943_v3 = vpop.permute.xlu0 %942  ;;  %v1106_v4 = vpop.xlane.xlu1 %1105 }
 0x3c6   : > { %3322 = vrcp.f32 %v1106_v4  ;;  %3059 = vmatpush3.msra.mxu1 %v943_v3  ;;  %v2941_v3 = vld [vmem:[%s4101_s29] ss:$0 sm:$0xff] }
 0x3c7   : > { %3068 = vmatprep.subr.mxu1 %v3455_v1 }
 0x3cc   : > { %v3321_v5 = vpop.eup %3320 }
 0x3cd   : > { %v941_v6 = vmul.f32 %v3321_v5, %v3313_v51  ;;  %v1440_v7 = vpop.xlane.xlu1 %1439  ;;  %v1737_v51 = vld [vmem:[%s4051_s11 + $0x10] sm:$0xff]  ;;  %v2942_v5 = vld [vmem:[%s4048_s8] ss:$0 sm:$0xff] }
 0x3ce   : > { %v3229_v53 = vpack.c.bf16 %v1738_v52, %v1737_v51 }
 0x3cf   : > { %3061 = vmatmul.mubr.msk.f32.vlgmr.msra.gmra.mrb[4].mxu1 %vm854_vm2, %v941_v6 }
 0x3d0   : > { %v3323_v9 = vpop.eup %3322  ;;  %3069 = vmatpush3.msra.mxu1 %v1110_v63  ;;  %3070 = vmatprep.mubr.msk.f32.mxu1 %vm3454_vm0, %v3455_v1 }
 0x3d1   : > { %v1108_v10 = vmul.f32 %v3323_v9, %v3315_v54  ;;  %v1277_v11 = vpop.permute.xlu1 %1276  ;;  %3078 = vmatprep.subr.mxu1 %v3455_v1  ;;  %v762_v54 = vld [vmem:[%s756_s25] sm:$0xff]  ;;  %s4106_s25 = smov 8  }
 0x3d2   : > { %v2945_v9 = vld [vmem:[%s4052_s12] ss:$0 sm:$0xff] }
 0x3d3   : > { %3071 = vmatmul.mubr.msk.f32.vlgmr.msra.gmra.mrb[6].mxu1 %vm854_vm2, %v1108_v10 }
 0x3d4   : > { %3079 = vmatpush3.msra.mxu1 %v1277_v11  ;;  %3080 = vmatprep.mubr.msk.f32.mxu1 %vm3454_vm0, %v3455_v1 }
 0x3d5   : > { %3088 = vmatprep.subr.mxu1 %v3455_v1 }
 0x3f6   : > { %v1273_v12 = vpop.xlane.xlu0 %1272 }
 0x3f7   : > { %3324 = vrcp.f32 %v1273_v12 }
 0x3f8   : > { %3326 = vrcp.f32 %v1440_v7 }
 0x3fa   : > { %v1444_v16 = vpop.permute.xlu0 %1443 }
 0x401   : > { %v3325_v13 = vpop.eup %3324 }
 0x402   : > { %v1275_v14 = vmul.f32 %v3325_v13, %v3319_v61  ;;  %v3327_v15 = vpop.eup %3326 }
 0x403   : > { %v1442_v17 = vmul.f32 %v3327_v15, %v3317_v56  ;;  %v1652_v56 = vld [vmem:[%s4049_s9 + $0x8] sm:$0xff] }
 0x404   : > { %3081 = vmatmul.mubr.msk.f32.vlgmr.msra.gmra.mrb[8].mxu1 %vm854_vm2, %v1275_v14  ;;  %v3220_v57 = vpack.c.bf16 %v1652_v56, %v1651_v55  ;;  %v2943_v14 = vld [vmem:[%s4050_s10] ss:$0 sm:$0xff] }
 0x405   : > { %3089 = vmatpush3.msra.mxu1 %v1444_v16  ;;  %3090 = vmatprep.mubr.msk.f32.mxu1 %vm3454_vm0, %v3455_v1 }
 0x406   : > { %3219 = vmatprep.subr.bf16.mxu1 %v3453_v0 }
 0x408   : > { %3091 = vmatmul.mubr.msk.f32.vlgmr.msra.gmra.mrb[10].mxu1 %vm854_vm2, %v1442_v17 }
 0x409   : > { %3112 = vmatprep.mubr.msk.f32.mxu1 %vm3454_vm0, %v3455_v1  ;;  %3221 = vmatpush3.bf16.msra.mxu1 %v3220_v57 }
 0x40a   : > { %3222 = vmatprep.subr.bf16.mxu1 %v3453_v0 }
 0x40d   : > { %3224 = vmatpush3.bf16.msra.mxu1 %v3223_v60 }
 0x40e   : > { %3126 = vmatprep.subr.mxu1 %v3455_v1 }
 0x4a2   : > { %v1014_v21 = vpop.f32.mrb[4].mxu1 }
 0x4a3   : > { %v3062_v22 = vpop.f32.mrb[5].mxu1 }
 0x4a6   : > { %v1181_v23 = vpop.f32.mrb[6].mxu1 }
 0x4a7   : > { %1520 = vrot.lane.b32.xlu1 %v1181_v23, %s4072_s3  ;;  %v3072_v24 = vpop.f32.mrb[7].mxu1  ;;  %s4105_s3 = smov 88  }
 0x4d7   : > { %v1348_v28 = vpop.f32.mrb[8].mxu1 }
 0x4d8   : > { %1524 = vrot.lane.b32.xlu0 %v1348_v28, %s4071_s4  ;;  %v3082_v29 = vpop.f32.mrb[9].mxu1 }
 0x4db   : > { %v1515_v30 = vpop.f32.mrb[10].mxu1 }
 0x4dc   : > { %1528 = vrot.lane.b32.xlu1 %v1515_v30, %s4070_s30  ;;  %v3092_v31 = vpop.f32.mrb[11].mxu1 }
 0x519   : > { %v1521_v32 = vpop.permute.xlu1 %1520 }
 0x51a   : > { %v1531_v34 = vsel %vm854_vm2, %v1014_v21, %v1521_v32 }
 0x54a   : > { %v1525_v33 = vpop.permute.xlu0 %1524 }
 0x54b   : > { %v1533_v35 = vsel %vm1532_vm4, %v1531_v34, %v1525_v33 }
 0x54e   : > { %v1529_v36 = vpop.permute.xlu1 %1528 }
 0x54f   : > { %v1535_v37 = vsel %vm1534_vm5, %v1533_v35, %v1529_v36 }
 0x550   : > { %3102 = vmatmul.mubr.msk.f32.vlgmr.msra.gmra.mrb[6].mxu0 %vm777_vm1, %v1535_v37 }
 0x551   : > { %3123 = vmatprep.mubr.msk.f32.mxu0 %vm3454_vm0, %v3455_v1 }
 0x623   : > { %v1616_v39 = vpop.f32.mrb[6].mxu0 }
 0x624   : > { %v1617_v40 = vadd.f32 %v2939_v38, %v1616_v39  ;;  %v3103_v41 = vpop.f32.mrb[7].mxu0 }
 0x626   : > { %v1620_v42 = vadd.f32 %v1617_v40, %v3727_v8  ;;  %v3226_v8 = vpack.c.bf16 %v1736_v50, %v1735_v49 }
 0x628   : > { %v1623_v43 = vsel %vm777_vm1, %v1620_v42, 0.0  ;;  %3227 = vmatpush3.bf16.msra.mxu0 %v3226_v8 }
 0x629   : > { %1624 = vadd.xlane.f32.xlu0 %v1623_v43  ;;  %3228 = vmatprep.subr.bf16.mxu0 %v3453_v0 }
 0x62c   : > { %3230 = vmatpush3.bf16.msra.mxu0 %v3229_v53 }
 0x62d   : > { %3136 = vmatprep.subr.mxu0 %v3455_v1 }
 0x62f   : > { %3124 = vmatmul.mubr.msk.f32.vlgmr.msra.gmra.mrb[8].mxu0 %vm777_vm1, %v762_v54 }
 0x630   : > { %3138 = vmatprep.mubr.msk.f32.mxu0 %vm3454_vm0, %v3455_v1 }
 0x6b6   : > { %v1625_v44 = vpop.xlane.xlu0 %1624 }
 0x6b7   : > { %v1627_v45 = vmul.f32 0.03125, %v1625_v44 }
 0x6b9   : > { %v1628_v46 = vsub.f32 %v1620_v42, %v1627_v45 }
 0x6bb   : > { %v1629_v47 = vmul.f32 %v1628_v46, %v1628_v46 }
 0x6bd   : > { %v1630_v48 = vsel %vm777_vm1, %v1629_v47, 0.0 }
 0x6be   : > { %1631 = vadd.xlane.f32.xlu1 %v1630_v48 }
 0x702   : > { %v1815_v10 = vpop.f32.mrb[8].mxu0 }
 0x703   : > { %v3884_v11 = vadd.f32 %v2945_v9, %v1815_v10  ;;  %v3125_v12 = vpop.f32.mrb[9].mxu0 }
 0x705   : > { %1985 = vrot.lane.b32.xlu0 %v3884_v11, %s3456_s6 }
 0x709   : > { %2151 = vrot.lane.b32.xlu0 %v3884_v11, %s3461_s2 }
 0x70d   : > { %2317 = vrot.lane.b32.xlu0 %v3884_v11, %s3462_s7 }
 0x74b   : > { %v1632_v61 = vpop.xlane.xlu1 %1631 }
 0x74c   : > { %v1633_v62 = vmul.f32 0.03125, %v1632_v61 }
 0x74e   : > { %v1634_v63 = vadd.f32 1e-05, %v1633_v62 }
 0x750   : > { %3328 = vrsqrt.f32 %v1634_v63 }
 0x75a   : > { %v3329_v2 = vpop.eup %3328 }
 0x75b   : > { %v1636_v4 = vmul.f32 %v3329_v2, %v1628_v46 }
 0x75d   : > { %v1643_v6 = vmul.f32 %v2941_v3, %v1636_v4 }
 0x75f   : > { %v3875_v7 = vadd.f32 %v2942_v5, %v1643_v6 }
 0x761   : > { %3113 = vmatmul.mubr.msk.f32.vlgmr.msra.gmra.mrb[12].mxu1 %vm777_vm1, %v3875_v7 }
 0x762   : > { %3128 = vmatprep.mubr.msk.f32.mxu1 %vm3454_vm0, %v3455_v1  ;;  %3127 = vmatpush3.xpose.msk.msra.mxu1 %vm854_vm2, %v3884_v11 }
 0x763   : > { %3131 = vmatprep.subr.mxu1 %v3455_v1 }
 0x777   : > { %v1986_v13 = vpop.permute.xlu0 %1985 }
 0x778   : > { %3137 = vmatpush3.xpose.msk.msra.mxu0 %vm854_vm2, %v1986_v13 }
 0x779   : > { %3146 = vmatprep.subr.mxu0 %v3455_v1 }
 0x77b   : > { %v2152_v18 = vpop.permute.xlu0 %2151 }
 0x77f   : > { %v2318_v21 = vpop.permute.xlu0 %2317 }
 0x834   : > { %v1731_v15 = vpop.f32.mrb[12].mxu1 }
 0x835   : > { %v1732_v16 = vadd.f32 %v2943_v14, %v1731_v15  ;;  %v3114_v17 = vpop.f32.mrb[13].mxu1 }
 0x836   : > { %v2497_v17 = vld [vmem:[%s4053_s13 + $0x8] sm:$0xff] }
 0x837   : > { %1983 = vrot.lane.b32.xlu1 %v1732_v16, %s3456_s6  ;;  %3129 = vmatmul.mubr.msk.f32.vlgmr.msra.gmra.mrb[14].mxu1 %vm854_vm2, %v1732_v16  ;;  %s4102_s6 = smov 96  }
 0x838   : > { %3133 = vmatprep.mubr.msk.f32.mxu1 %vm3454_vm0, %v3455_v1 }
 0x83b   : > { %2149 = vrot.lane.b32.xlu1 %v1732_v16, %s3461_s2  ;;  %s4103_s2 = smov 80  }
 0x83f   : > { %2315 = vrot.lane.b32.xlu1 %v1732_v16, %s3462_s7  ;;  %s4104_s7 = smov 72   ;;  %v2496_v16 = vld [vmem:[%s4053_s13] sm:$0xff] }
 0x8a9   : > { %v1984_v19 = vpop.permute.xlu1 %1983 }
 0x8aa   : > { %3139 = vmatmul.mubr.msk.f32.vlgmr.msra.gmra.mrb[10].mxu0 %vm854_vm2, %v1984_v19  ;;  %v2498_v19 = vld [vmem:[%s4053_s13 + $0x10] sm:$0xff] }
 0x8ab   : > { %3147 = vmatpush3.xpose.msk.msra.mxu0 %vm854_vm2, %v2152_v18  ;;  %3148 = vmatprep.mubr.msk.f32.mxu0 %vm3454_vm0, %v3455_v1  ;;  %v3232_v18 = vpack.c.bf16 %v2497_v17, %v2496_v16 }
 0x8ac   : > { %3156 = vmatprep.subr.mxu0 %v3455_v1 }
 0x8ad   : > { %v2150_v20 = vpop.permute.xlu1 %2149 }
 0x8ae   : > { %3149 = vmatmul.mubr.msk.f32.vlgmr.msra.gmra.mrb[12].mxu0 %vm854_vm2, %v2150_v20  ;;  %v2499_v20 = vld [vmem:[%s4053_s13 + $0x18] sm:$0xff] }
 0x8af   : > { %3157 = vmatpush3.xpose.msk.msra.mxu0 %vm854_vm2, %v2318_v21  ;;  %3158 = vmatprep.mubr.msk.f32.mxu0 %vm3454_vm0, %v3455_v1  ;;  %v3235_v21 = vpack.c.bf16 %v2499_v20, %v2498_v19 }
 0x8b0   : > { %3231 = vmatprep.subr.bf16.mxu0 %v3453_v0 }
 0x8b1   : > { %v2316_v22 = vpop.permute.xlu1 %2315 }
 0x8b2   : > { %3159 = vmatmul.mubr.msk.f32.vlgmr.msra.gmra.mrb[14].mxu0 %vm854_vm2, %v2316_v22 }
 0x8b3   : > { %3174 = vmatprep.mubr.msk.f32.mxu0 %vm3454_vm0, %v3455_v1  ;;  %3233 = vmatpush3.bf16.msra.mxu0 %v3232_v18 }
 0x8b4   : > { %3234 = vmatprep.subr.bf16.mxu0 %v3453_v0 }
 0x8b7   : > { %3236 = vmatpush3.bf16.msra.mxu0 %v3235_v21 }
 0x8b8   : > { %3243 = vmatprep.subr.bf16.mxu0 %v3453_v0 }
 0x90a   : > { %v1891_v23 = vpop.f32.mrb[14].mxu1 }
 0x90b   : > { %v1895_v24 = vmul.f32 0.35355338, %v1891_v23  ;;  %v3130_v25 = vpop.f32.mrb[15].mxu1 }
 0x90d   : > { %v1896_v26 = vsel %vm854_vm2, %v1895_v24, -inf }
 0x90e   : > { %1897 = vmax.xlane.f32.xlu0 %v1896_v26 }
 0x97d   : > { %v2057_v27 = vpop.f32.mrb[10].mxu0 }
 0x97e   : > { %v2061_v28 = vmul.f32 0.35355338, %v2057_v27  ;;  %v3140_v29 = vpop.f32.mrb[11].mxu0 }
 0x980   : > { %v2062_v30 = vsel %vm854_vm2, %v2061_v28, -inf }
 0x981   : > { %2063 = vmax.xlane.f32.xlu1 %v2062_v30  ;;  %v2223_v31 = vpop.f32.mrb[12].mxu0 }
 0x982   : > { %v2227_v32 = vmul.f32 0.35355338, %v2223_v31  ;;  %v3150_v33 = vpop.f32.mrb[13].mxu0 }
 0x984   : > { %v2228_v34 = vsel %vm854_vm2, %v2227_v32, -inf }
 0x985   : > { %v2389_v35 = vpop.f32.mrb[14].mxu0  ;;  %2229 = vmax.xlane.f32.xlu0 %v2228_v34  ;;  %v2959_v34 = vld [vmem:[%s4054_s14] ss:$0 sm:$0xff] }
 0x986   : > { %v2393_v36 = vmul.f32 0.35355338, %v2389_v35  ;;  %v3160_v37 = vpop.f32.mrb[15].mxu0 }
 0x988   : > { %v2394_v38 = vsel %vm854_vm2, %v2393_v36, -inf }
 0x989   : > { %2395 = vmax.xlane.f32.xlu0 %v2394_v38 }
 0x992   : > { %1907 = vrot.lane.b32.xlu1 %v3884_v11, %s4102_s6  ;;  %s4107_s6 = smov 16  }
 0x99b   : > { %v1898_v39 = vpop.xlane.xlu0 %1897 }
 0x99c   : > { %v1899_v40 = vsub.f32 %v1895_v24, %v1898_v39 }
 0x99e   : > { %v1900_v41 = vmul.f32 1.442695, %v1899_v40 }
 0x9a0   : > { %3330 = vpow2.f32 %v1900_v41 }
 0x9aa   : > { %v3331_v42 = vpop.eup %3330 }
 0x9ab   : > { %v1902_v43 = vsel %vm854_vm2, %v3331_v42, 0.0 }
 0x9b6   : > { %1903 = vadd.xlane.f32.xlu1 %v1902_v43 }
 0xa0e   : > { %v2064_v44 = vpop.xlane.xlu1 %2063 }
 0xa0f   : > { %v2065_v45 = vsub.f32 %v2061_v28, %v2064_v44 }
 0xa11   : > { %v2066_v46 = vmul.f32 1.442695, %v2065_v45  ;;  %v2611_v45 = vld [vmem:[%s4057_s17 + $0x8] sm:$0xff] }
 0xa12   : > { %v1908_v47 = vpop.permute.xlu1 %1907  ;;  %v2230_v48 = vpop.xlane.xlu0 %2229 }
 0xa13   : > { %3332 = vpow2.f32 %v2066_v46  ;;  %v2231_v49 = vsub.f32 %v2227_v32, %v2230_v48  ;;  %3132 = vmatpush3.msra.mxu1 %v1908_v47  ;;  %v2613_v47 = vld [vmem:[%s4057_s17 + $0x18] sm:$0xff] }
 0xa14   : > { %3141 = vmatprep.subr.mxu1 %v3455_v1 }
 0xa15   : > { %v2232_v50 = vmul.f32 1.442695, %v2231_v49  ;;  %v2695_v49 = vld [vmem:[%s4059_s19] sm:$0xff] }
 0xa16   : > { %v2396_v8 = vpop.xlane.xlu0 %2395 }
 0xa17   : > { %3334 = vpow2.f32 %v2232_v50  ;;  %v2397_v51 = vsub.f32 %v2393_v36, %v2396_v8  ;;  %v2696_v50 = vld [vmem:[%s4059_s19 + $0x8] sm:$0xff]  ;;  %v2697_v8 = vld [vmem:[%s4059_s19 + $0x10] sm:$0xff] }
 0xa19   : > { %v2398_v52 = vmul.f32 1.442695, %v2397_v51  ;;  %v3244_v51 = vpack.c.bf16 %v2696_v50, %v2695_v49 }
 0xa1b   : > { %3336 = vpow2.f32 %v2398_v52  ;;  %v2698_v52 = vld [vmem:[%s4059_s19 + $0x18] sm:$0xff] }
 0xa1d   : > { %v3333_v53 = vpop.eup %3332 }
 0xa1e   : > { %v2068_v54 = vsel %vm854_vm2, %v3333_v53, 0.0 }
 0xa1f   : > { %2069 = vadd.xlane.f32.xlu0 %v2068_v54  ;;  %v2699_v54 = vld [vmem:[%s4059_s19 + $0x20] sm:$0xff] }
 0xa21   : > { %v3335_v55 = vpop.eup %3334 }
 0xa22   : > { %v2234_v56 = vsel %vm854_vm2, %v3335_v55, 0.0 }
 0xa23   : > { %2235 = vadd.xlane.f32.xlu1 %v2234_v56 }
 0xa25   : > { %v3337_v57 = vpop.eup %3336 }
 0xa26   : > { %v2400_v58 = vsel %vm854_vm2, %v3337_v57, 0.0 }
 0xa27   : > { %2401 = vadd.xlane.f32.xlu0 %v2400_v58 }
 0xa34   : > { %2239 = vrot.lane.b32.xlu1 %v3884_v11, %s4103_s2  ;;  %s4108_s2 = smov 24  }
 0xa38   : > { %2405 = vrot.lane.b32.xlu1 %v3884_v11, %s4104_s7 }
 0xa3d   : > { %2073 = vrot.lane.b32.xlu0 %v3884_v11, %s4105_s3 }
 0xa43   : > { %v1904_v59 = vpop.xlane.xlu1 %1903 }
 0xa44   : > { %3338 = vrcp.f32 %v1904_v59 }
 0xa4e   : > { %v3339_v60 = vpop.eup %3338 }
 0xa4f   : > { %v1906_v61 = vmul.f32 %v3339_v60, %v3331_v42 }
 0xa51   : > { %3134 = vmatmul.mubr.msk.f32.vlgmr.msra.gmra.mrb[16].mxu1 %vm854_vm2, %v1906_v61  ;;  %v2961_v61 = vld [vmem:[%s4055_s15] ss:$0 sm:$0xff] }
 0xa52   : > { %3143 = vmatprep.mubr.msk.f32.mxu1 %vm3454_vm0, %v3455_v1 }
 0xaac   : > { %v2070_v62 = vpop.xlane.xlu0 %2069 }
 0xaad   : > { %3340 = vrcp.f32 %v2070_v62 }
 0xab0   : > { %v2236_v63 = vpop.xlane.xlu1 %2235 }
 0xab1   : > { %3342 = vrcp.f32 %v2236_v63  ;;  %v2962_v63 = vld [vmem:[%s4056_s16] ss:$0 sm:$0xff] }
 0xab4   : > { %v2402_v2 = vpop.xlane.xlu0 %2401  ;;  %v2240_v5 = vpop.permute.xlu1 %2239 }
 0xab5   : > { %3344 = vrcp.f32 %v2402_v2 }
 0xab7   : > { %v3341_v3 = vpop.eup %3340 }
 0xab8   : > { %v2072_v4 = vmul.f32 %v3341_v3, %v3333_v53  ;;  %v2074_v6 = vpop.permute.xlu0 %2073  ;;  %v2406_v11 = vpop.permute.xlu1 %2405  ;;  %v3247_v53 = vpack.c.bf16 %v2698_v52, %v2697_v8 }
 0xab9   : > { %3142 = vmatpush3.msra.mxu1 %v2074_v6  ;;  %v2963_v6 = vld [vmem:[%s4058_s18] ss:$0 sm:$0xff] }
 0xaba   : > { %3144 = vmatmul.mubr.msk.f32.vlgmr.msra.gmra.mrb[18].mxu1 %vm854_vm2, %v2072_v4  ;;  %3151 = vmatprep.subr.mxu1 %v3455_v1  ;;  %v2702_v4 = vld [vmem:[%s4059_s19 + $0x38] sm:$0xff] }
 0xabb   : > { %v3343_v9 = vpop.eup %3342  ;;  %3152 = vmatpush3.msra.mxu1 %v2240_v5  ;;  %3153 = vmatprep.mubr.msk.f32.mxu1 %vm3454_vm0, %v3455_v1 }
 0xabc   : > { %v2238_v10 = vmul.f32 %v3343_v9, %v3335_v55  ;;  %3161 = vmatprep.subr.mxu1 %v3455_v1  ;;  %v2700_v55 = vld [vmem:[%s4059_s19 + $0x28] sm:$0xff] }
 0xabd   : > { %v3250_v56 = vpack.c.bf16 %v2700_v55, %v2699_v54 }
 0xabe   : > { %3154 = vmatmul.mubr.msk.f32.vlgmr.msra.gmra.mrb[20].mxu1 %vm854_vm2, %v2238_v10 }
 0xabf   : > { %v3345_v12 = vpop.eup %3344  ;;  %3162 = vmatpush3.msra.mxu1 %v2406_v11  ;;  %3163 = vmatprep.mubr.msk.f32.mxu1 %vm3454_vm0, %v3455_v1 }
 0xac0   : > { %v2404_v13 = vmul.f32 %v3345_v12, %v3337_v57  ;;  %3237 = vmatprep.subr.bf16.mxu1 %v3453_v0 }
 0xac2   : > { %3164 = vmatmul.mubr.msk.f32.vlgmr.msra.gmra.mrb[22].mxu1 %vm854_vm2, %v2404_v13  ;;  %v2965_v13 = vld [vmem:[#allocation2] ss:$0 sm:$0xff] }
 0xac3   : > { %3185 = vmatprep.mubr.msk.f32.mxu1 %vm3454_vm0, %v3455_v1 }
 0xb24   : > { %v1979_v14 = vpop.f32.mrb[16].mxu1 }
 0xb25   : > { %v3135_v15 = vpop.f32.mrb[17].mxu1 }
 0xb8d   : > { %v2145_v22 = vpop.f32.mrb[18].mxu1 }
 0xb8e   : > { %2482 = vrot.lane.b32.xlu0 %v2145_v22, %s4106_s25  ;;  %v3145_v23 = vpop.f32.mrb[19].mxu1 }
 0xb91   : > { %v2311_v24 = vpop.f32.mrb[20].mxu1 }
 0xb92   : > { %2486 = vrot.lane.b32.xlu1 %v2311_v24, %s4107_s6  ;;  %v3155_v25 = vpop.f32.mrb[21].mxu1 }
 0xb95   : > { %v2477_v26 = vpop.f32.mrb[22].mxu1 }
 0xb96   : > { %2490 = vrot.lane.b32.xlu0 %v2477_v26, %s4108_s2  ;;  %v3165_v27 = vpop.f32.mrb[23].mxu1 }
 0xc00   : > { %v2483_v28 = vpop.permute.xlu0 %2482 }
 0xc01   : > { %v2493_v30 = vsel %vm854_vm2, %v1979_v14, %v2483_v28  ;;  %v2967_v28 = vld [vmem:[#allocation4] ss:$0 sm:$0xff] }
 0xc04   : > { %v2487_v29 = vpop.permute.xlu1 %2486 }
 0xc05   : > { %v2494_v31 = vsel %vm1532_vm4, %v2493_v30, %v2487_v29  ;;  %v2968_v30 = vld [vmem:[#allocation6] ss:$0 sm:$0xff] }
 0xc08   : > { %v2491_v32 = vpop.permute.xlu0 %2490 }
 0xc09   : > { %v2495_v33 = vsel %vm1534_vm5, %v2494_v31, %v2491_v32 }
 0xc0a   : > { %3175 = vmatmul.mubr.msk.f32.vlgmr.msra.gmra.mrb[16].mxu0 %vm777_vm1, %v2495_v33 }
 0xc0b   : > { %3204 = vmatprep.mubr.msk.f32.mxu0 %vm3454_vm0, %v3455_v1  ;;  %v2610_v1 = vld [vmem:[%s4057_s17] sm:$0xff]  ;;  %3245 = vmatpush3.bf16.msra.mxu0 %v3244_v51 }
 0xc0c   : > { %v3238_v46 = vpack.c.bf16 %v2611_v45, %v2610_v1  ;;  %3246 = vmatprep.subr.bf16.mxu0 %v3453_v0 }
 0xc0e   : > { %3239 = vmatpush3.bf16.msra.mxu1 %v3238_v46 }
 0xc0f   : > { %3240 = vmatprep.subr.bf16.mxu1 %v3453_v0  ;;  %3248 = vmatpush3.bf16.msra.mxu0 %v3247_v53 }
 0xc10   : > { %3249 = vmatprep.subr.bf16.mxu0 %v3453_v0 }
 0xc13   : > { %3251 = vmatpush3.bf16.msra.mxu0 %v3250_v56 }
 0xc14   : > { %3252 = vmatprep.subr.bf16.mxu0 %v3453_v0  ;;  %v2701_v0 = vld [vmem:[%s4059_s19 + $0x30] sm:$0xff] }
 0xc15   : > { %v3253_v5 = vpack.c.bf16 %v2702_v4, %v2701_v0 }
 0xc17   : > { %3254 = vmatpush3.bf16.msra.mxu0 %v3253_v5 }
 0xcdd   : > { %v2576_v35 = vpop.f32.mrb[16].mxu0 }
 0xcde   : > { %v2577_v36 = vadd.f32 %v2959_v34, %v2576_v35  ;;  %v3176_v37 = vpop.f32.mrb[17].mxu0 }
 0xce0   : > { %v2580_v38 = vadd.f32 %v2577_v36, %v3875_v7  ;;  %v2612_v7 = vld [vmem:[%s4057_s17 + $0x10] sm:$0xff] }
 0xce1   : > { %v3241_v48 = vpack.c.bf16 %v2613_v47, %v2612_v7 }
 0xce2   : > { %v2583_v39 = vsel %vm777_vm1, %v2580_v38, 0.0 }
 0xce3   : > { %2584 = vadd.xlane.f32.xlu1 %v2583_v39  ;;  %3242 = vmatpush3.bf16.msra.mxu1 %v3241_v48 }
 0xd70   : > { %v2585_v40 = vpop.xlane.xlu1 %2584 }
 0xd71   : > { %v2586_v41 = vmul.f32 0.03125, %v2585_v40 }
 0xd73   : > { %v2587_v42 = vsub.f32 %v2580_v38, %v2586_v41 }
 0xd75   : > { %v2588_v43 = vmul.f32 %v2587_v42, %v2587_v42 }
 0xd77   : > { %v2589_v44 = vsel %vm777_vm1, %v2588_v43, 0.0 }
 0xd78   : > { %2590 = vadd.xlane.f32.xlu0 %v2589_v44 }
 0xe05   : > { %v2591_v57 = vpop.xlane.xlu0 %2590 }
 0xe06   : > { %v2592_v58 = vmul.f32 0.03125, %v2591_v57 }
 0xe08   : > { %v2593_v59 = vadd.f32 1e-05, %v2592_v58 }
 0xe0a   : > { %3346 = vrsqrt.f32 %v2593_v59 }
 0xe14   : > { %v3347_v60 = vpop.eup %3346 }
 0xe15   : > { %v2595_v62 = vmul.f32 %v3347_v60, %v2587_v42 }
 0xe17   : > { %v2602_v2 = vmul.f32 %v2961_v61, %v2595_v62 }
 0xe19   : > { %v2609_v3 = vadd.f32 %v2962_v63, %v2602_v2 }
 0xe1b   : > { %3186 = vmatmul.mubr.msk.f32.vlgmr.msra.gmra.mrb[24].mxu1 %vm777_vm1, %v2609_v3 }
 0xeee   : > { %v2690_v9 = vpop.f32.mrb[24].mxu1 }
 0xeef   : > { %v2691_v10 = vadd.f32 %v2963_v6, %v2690_v9  ;;  %v3187_v11 = vpop.f32.mrb[25].mxu1 }
 0xef1   : > { %v2694_v12 = vmax.f32 %v2691_v10, 0.0 }
 0xef3   : > { %3205 = vmatmul.mubr.msk.f32.vlgmr.msra.gmra.mrb[18].mxu0 %vm2710_vm6, %v2694_v12 }
 0xfc6   : > { %v2780_v14 = vpop.f32.mrb[18].mxu0 }
 0xfc7   : > { %v2781_v15 = vadd.f32 %v2965_v13, %v2780_v14  ;;  %v3206_v16 = vpop.f32.mrb[19].mxu0 }
 0xfc9   : > { %v2784_v17 = vadd.f32 %v2781_v15, %v2609_v3 }
 0xfcb   : > { %v2787_v18 = vsel %vm777_vm1, %v2784_v17, 0.0 }
 0xfcc   : > { %2788 = vadd.xlane.f32.xlu0 %v2787_v18 }
0x1059   : > { %v2789_v19 = vpop.xlane.xlu0 %2788 }
0x105a   : > { %v2790_v20 = vmul.f32 0.03125, %v2789_v19 }
0x105c   : > { %v2791_v21 = vsub.f32 %v2784_v17, %v2790_v20 }
0x105e   : > { %v2792_v22 = vmul.f32 %v2791_v21, %v2791_v21 }
0x1060   : > { %v2793_v23 = vsel %vm777_vm1, %v2792_v22, 0.0 }
0x1061   : > { %2794 = vadd.xlane.f32.xlu1 %v2793_v23 }
0x10ee   : > { %v2795_v24 = vpop.xlane.xlu1 %2794 }
0x10ef   : > { %v2796_v25 = vmul.f32 0.03125, %v2795_v24 }
0x10f1   : > { %v2797_v26 = vadd.f32 1e-05, %v2796_v25 }
0x10f3   : > { %3348 = vrsqrt.f32 %v2797_v26 }
0x10fd   : > { %v3349_v27 = vpop.eup %3348 }
0x10fe   : > { %v2799_v29 = vmul.f32 %v3349_v27, %v2791_v21 }
0x1100   : > { %v2806_v31 = vmul.f32 %v2967_v28, %v2799_v29 }
0x1102   : > { %v2813_v32 = vadd.f32 %v2968_v30, %v2806_v31 }
0x1104   : > { %2814 = vst.msk [vmem:[%s760_s0] sm:$0xff] %vm777_vm1, %v2813_v32 }
0x1105 PF: > { %s4110_s25 = sld [smem:[#allocation9_spill]] }
0x110b   : > { %s35_s4 = sadd.s32 1, %s4110_s25  }
0x110c   : > { %p32_p5 = scmp.ge.s32.totalorder %s35_s4, 4  }
0x110e   :  { %34 = sbr.rel (!%p32_p5) target bundleno = 12 (0xc), region = 158 }
0x1115   :  { %2834 = vsyncpa [#allocation3], 1 }
0x1116   :  { %2836 = vsyncpa [#allocation3 + $0x1], 1 }
0x1117   :  { %2837 = vsyncpa [#allocation5], 1 }

</bundles_post_ra>
